<compile_context>
chip_gen: v5e
topology: v5e:2x2
jax: 0.10.0
libtpu: 0.0.40
codegen_flags: <defaults>
</compile_context>

<pallas_src>
import jax
import jax.numpy as jnp
from jax.experimental import pallas as pl
from jax.experimental.pallas import tpu as pltpu

INPUT_SIZE = 300
HIDDEN_SIZE = 60      # gru_len
GATE_STRIDE = 128     # one 128-lane tile per gate


def gru_bidir_kernel(x_ref,                       # (T*Bp, I)      bf16
                     wih_ref,                     # (I, 6G)        bf16  [rf|zf|nf|rb|zb|nb]
                     bih_ref,                     # (1, 6G)        f32
                     whh_f_ref, whh_b_ref,        # (H, 3G)        bf16
                     bhn_f_ref, bhn_b_ref,        # (1, H)         f32
                     out_ref,                     # (T, Bp, 128)   f32
                     hn_ref,                      # (2, Bp, H)     f32
                     gates):                      # (T*Bp, 6G)     f32 scratch
    T, Bp, _ = out_ref.shape
    H = hn_ref.shape[2]
    G = gates.shape[1] // 6

    # Fused, hoisted input projection for BOTH directions: one MXU pass,
    # bf16 operands with f32 accumulation, biases folded in.
    gates[...] = (jnp.dot(x_ref[...], wih_ref[...],
                          preferred_element_type=jnp.float32) + bih_ref[...])

    # Recurrent weights resident for the whole loop.
    whh_f = whh_f_ref[...]                         # (H, 3G) bf16
    whh_b = whh_b_ref[...]
    # Hoist the (1,H)->(Bp,H) broadcasts out of the unrolled loop.
    bhn_f = jnp.broadcast_to(bhn_f_ref[...], (Bp, H))
    bhn_b = jnp.broadcast_to(bhn_b_ref[...], (Bp, H))

    def cell(g_in, h_prev, whh, bhn):
        # Single fused recurrent matmul per step: (Bp, H) x (H, 3G) -> (Bp, 3G).
        gh = jnp.dot(h_prev.astype(whh.dtype), whh,
                     preferred_element_type=jnp.float32)
        # Every gate slice starts at lane 0 of its own 128-lane tile.
        r = jax.nn.sigmoid(g_in[:, 0 * G:0 * G + H] + gh[:, 0 * G:0 * G + H])
        z = jax.nn.sigmoid(g_in[:, 1 * G:1 * G + H] + gh[:, 1 * G:1 * G + H])
        # PyTorch: n = tanh(i_n + b_in + r * (h @ W_hn^T + b_hn))
        n = jnp.tanh(g_in[:, 2 * G:2 * G + H] + r * (gh[:, 2 * G:2 * G + H] + bhn))
        return (1.0 - z) * n + z * h_prev

    h_f = jnp.zeros((Bp, H), jnp.float32)
    h_b = jnp.zeros((Bp, H), jnp.float32)

    # T is small & static: fully unrolled, all slice starts static and 8/128-aligned.
    for t in range(T):
        tb = T - 1 - t
        h_f = cell(gates[t * Bp:(t + 1) * Bp, 0:3 * G], h_f, whh_f, bhn_f)
        h_b = cell(gates[tb * Bp:(tb + 1) * Bp, 3 * G:6 * G], h_b, whh_b, bhn_b)
        out_ref[t, :, 0:H] = h_f.astype(out_ref.dtype)
        out_ref[tb, :, H:2 * H] = h_b.astype(out_ref.dtype)

    hn_ref[0] = h_f.astype(hn_ref.dtype)
    hn_ref[1] = h_b.astype(hn_ref.dtype)


def _prep_direction(w_ih, w_hh, b_ih, b_hh, gate_stride):
    """PyTorch-layout GRU weights -> lane-padded, fused kernel layout."""
    H = w_hh.shape[1]
    G = gate_stride
    w_ir, w_iz, w_in = jnp.split(w_ih, 3, axis=0)     # (H, I) each
    w_hr, w_hz, w_hn = jnp.split(w_hh, 3, axis=0)     # (H, H) each
    b_ir, b_iz, b_in = jnp.split(b_ih, 3)
    b_hr, b_hz, b_hn = jnp.split(b_hh, 3)

    def pack(cols):   # list of (rows, H) -> (rows, 3G); gate g lives at lanes [g*G, g*G+H)
        return jnp.concatenate(
            [jnp.pad(c, ((0, 0), (0, G - H))) for c in cols], axis=1)

    wih = pack([w_ir.T, w_iz.T, w_in.T])                                   # (I, 3G)
    whh = pack([w_hr.T, w_hz.T, w_hn.T])                                   # (H, 3G)
    bih = pack([(b_ir + b_hr)[None, :], (b_iz + b_hz)[None, :],
                b_in[None, :]])                                            # (1, 3G)
    bhn = b_hn.reshape(1, H)
    return wih, whh, bih, bhn


def gru_layer_forward(x, params):
    """Equivalent of GRU_Layer.forward: returns (output, h_n)."""
    T, B, I = x.shape
    H = params["w_hh_l0"].shape[1]
    G = GATE_STRIDE
    Bp = max(8, ((B + 7) // 8) * 8)                  # pad batch to full sublanes
    out_lanes = ((2 * H + 127) // 128) * 128         # = 128 for H = 60

    wih_f, whh_f, bih_f, bhn_f = _prep_direction(
        params["w_ih_l0"], params["w_hh_l0"],
        params["b_ih_l0"], params["b_hh_l0"], G)
    wih_b, whh_b, bih_b, bhn_b = _prep_direction(
        params["w_ih_l0_rev"], params["w_hh_l0_rev"],
        params["b_ih_l0_rev"], params["b_hh_l0_rev"], G)

    # Fuse both directions' input projections into one weight slab; bf16 matmul operands.
    wih = jnp.concatenate([wih_f, wih_b], axis=1).astype(jnp.bfloat16)     # (I, 6G)
    bih = jnp.concatenate([bih_f, bih_b], axis=1)                          # (1, 6G) f32
    whh_f = whh_f.astype(jnp.bfloat16)                                     # (H, 3G)
    whh_b = whh_b.astype(jnp.bfloat16)

    x_pad = jnp.pad(x, ((0, 0), (0, Bp - B), (0, 0)))                      # (T, Bp, I)
    x2d = x_pad.reshape(T * Bp, I).astype(jnp.bfloat16)

    out_pad, hn_pad = pl.pallas_call(
        gru_bidir_kernel,
        out_shape=(jax.ShapeDtypeStruct((T, Bp, out_lanes), jnp.float32),
                   jax.ShapeDtypeStruct((2, Bp, H), jnp.float32)),
        scratch_shapes=[pltpu.VMEM((T * Bp, 6 * G), jnp.float32)],
    )(x2d, wih, bih, whh_f, whh_b, bhn_f, bhn_b)

    output = out_pad[:, :B, :2 * H].astype(x.dtype)                        # (T, B, 2H)
    h_n = hn_pad[:, :B, :].astype(x.dtype)                                 # (2, B, H)
    return output, h_n


# ---- pure-JAX reference (for correctness check) -----------------------------
def _gru_direction_ref(x, w_ih, w_hh, b_ih, b_hh):
    H = w_hh.shape[1]

    def step(h, x_t):
        gi = x_t @ w_ih.T + b_ih
        gh = h @ w_hh.T + b_hh
        i_r, i_z, i_n = jnp.split(gi, 3, axis=-1)
        h_r, h_z, h_n = jnp.split(gh, 3, axis=-1)
        r = jax.nn.sigmoid(i_r + h_r)
        z = jax.nn.sigmoid(i_z + h_z)
        n = jnp.tanh(i_n + r * h_n)
        h_new = (1.0 - z) * n + z * h
        return h_new, h_new

    h0 = jnp.zeros((x.shape[1], H), x.dtype)
    hT, ys = jax.lax.scan(step, h0, x)
    return ys, hT


def _gru_layer_ref(x, params):
    out_f, hn_f = _gru_direction_ref(
        x, params["w_ih_l0"], params["w_hh_l0"],
        params["b_ih_l0"], params["b_hh_l0"])
    out_b_rev, hn_b = _gru_direction_ref(
        x[::-1], params["w_ih_l0_rev"], params["w_hh_l0_rev"],
        params["b_ih_l0_rev"], params["b_hh_l0_rev"])
    out_b = out_b_rev[::-1]
    return jnp.concatenate([out_f, out_b], axis=-1), jnp.stack([hn_f, hn_b], axis=0)


def init_params(key, input_size=INPUT_SIZE, hidden_size=HIDDEN_SIZE):
    """Deterministic init mirroring PyTorch's default U(-1/sqrt(H), 1/sqrt(H))."""
    k = 1.0 / jnp.sqrt(jnp.float32(hidden_size))
    names_shapes = [
        ("w_ih_l0", (3 * hidden_size, input_size)),
        ("w_hh_l0", (3 * hidden_size, hidden_size)),
        ("b_ih_l0", (3 * hidden_size,)),
        ("b_hh_l0", (3 * hidden_size,)),
        ("w_ih_l0_rev", (3 * hidden_size, input_size)),
        ("w_hh_l0_rev", (3 * hidden_size, hidden_size)),
        ("b_ih_l0_rev", (3 * hidden_size,)),
        ("b_hh_l0_rev", (3 * hidden_size,)),
    ]
    keys = jax.random.split(key, len(names_shapes))
    return {name: jax.random.uniform(kk, shape, jnp.float32, -k, k)
            for kk, (name, shape) in zip(keys, names_shapes)}


if __name__ == "__main__":
    key = jax.random.PRNGKey(0)
    pkey, xkey = jax.random.split(key)

    T, B = 8, 2   # seq_len=8, batch=2; input_size fixed at 300 by the module
    params = init_params(pkey)
    x = jax.random.normal(xkey, (T, B, INPUT_SIZE), jnp.float32)

    output, h_n = jax.jit(gru_layer_forward)(x, params)
    jax.block_until_ready((output, h_n))

    # Sanity check against pure-f32 JAX reference. Kernel uses bf16 matmul
    # operands with f32 accumulation, so tolerance is loosened accordingly.
    out_ref_, hn_ref_ = jax.jit(_gru_layer_ref)(x, params)
    assert output.shape == (T, B, 2 * HIDDEN_SIZE)
    assert h_n.shape == (2, B, HIDDEN_SIZE)
    assert jnp.allclose(output, out_ref_, atol=2e-2, rtol=0.0)
    assert jnp.allclose(h_n, hn_ref_, atol=2e-2, rtol=0.0)

    print("KERNEL_OK")
</pallas_src>

<mosaic_0001>
module attributes {stable_mosaic.version = 11 : i64} {
  func.func @gru_bidir_kernel(%arg0: memref<64x300xbf16, #tpu.memory_space<vmem>>, %arg1: memref<300x768xbf16, #tpu.memory_space<vmem>>, %arg2: memref<1x768xf32, #tpu.memory_space<vmem>>, %arg3: memref<60x384xbf16, #tpu.memory_space<vmem>>, %arg4: memref<60x384xbf16, #tpu.memory_space<vmem>>, %arg5: memref<1x60xf32, #tpu.memory_space<vmem>>, %arg6: memref<1x60xf32, #tpu.memory_space<vmem>>, %arg7: memref<8x8x128xf32, #tpu.memory_space<vmem>>, %arg8: memref<2x8x60xf32, #tpu.memory_space<vmem>>, %arg9: memref<64x768xf32, #tpu.memory_space<vmem>>) attributes {dimension_semantics = [], scalar_prefetch = 0 : i64, scratch_operands = 1 : i64, tpu.core_type = #tpu.core_type<tc>} {
    %c0 = arith.constant 0 : index
    %c0_0 = arith.constant 0 : index
    %0 = vector.load %arg0[%c0, %c0_0] : memref<64x300xbf16, #tpu.memory_space<vmem>>, vector<64x300xbf16>
    %c0_1 = arith.constant 0 : index
    %c0_2 = arith.constant 0 : index
    %1 = vector.load %arg1[%c0_1, %c0_2] : memref<300x768xbf16, #tpu.memory_space<vmem>>, vector<300x768xbf16>
    %cst = arith.constant dense<0.000000e+00> : vector<64x768xf32>
    %2 = tpu.matmul %0, %1, %cst {dimension_numbers = #tpu.dot_dimension_numbers<[1], [0], [0], [1], [0, 0, 1, 1], [], []>} : vector<64x300xbf16>, vector<300x768xbf16>, vector<64x768xf32> -> vector<64x768xf32>
    %c0_3 = arith.constant 0 : index
    %c0_4 = arith.constant 0 : index
    %3 = vector.load %arg2[%c0_3, %c0_4] : memref<1x768xf32, #tpu.memory_space<vmem>>, vector<1x768xf32>
    %4 = vector.broadcast %3 : vector<1x768xf32> to vector<64x768xf32>
    %5 = arith.addf %2, %4 : vector<64x768xf32>
    %c0_5 = arith.constant 0 : index
    %c0_6 = arith.constant 0 : index
    %6 = vector.load %arg9[%c0_5, %c0_6] : memref<64x768xf32, #tpu.memory_space<vmem>>, vector<64x768xf32>
    tpu.vector_store %arg9[%c0_5, %c0_6], %5 {strides = array<i32>} : memref<64x768xf32, #tpu.memory_space<vmem>>, vector<64x768xf32>,
    %c0_7 = arith.constant 0 : index
    %c0_8 = arith.constant 0 : index
    %7 = vector.load %arg3[%c0_7, %c0_8] : memref<60x384xbf16, #tpu.memory_space<vmem>>, vector<60x384xbf16>
    %c0_9 = arith.constant 0 : index
    %c0_10 = arith.constant 0 : index
    %8 = vector.load %arg4[%c0_9, %c0_10] : memref<60x384xbf16, #tpu.memory_space<vmem>>, vector<60x384xbf16>
    %c0_11 = arith.constant 0 : index
    %c0_12 = arith.constant 0 : index
    %9 = vector.load %arg5[%c0_11, %c0_12] : memref<1x60xf32, #tpu.memory_space<vmem>>, vector<1x60xf32>
    %10 = vector.shape_cast %9 : vector<1x60xf32> to vector<1x60xf32>
    %11 = vector.broadcast %10 : vector<1x60xf32> to vector<8x60xf32>
    %c0_13 = arith.constant 0 : index
    %c0_14 = arith.constant 0 : index
    %12 = vector.load %arg6[%c0_13, %c0_14] : memref<1x60xf32, #tpu.memory_space<vmem>>, vector<1x60xf32>
    %13 = vector.shape_cast %12 : vector<1x60xf32> to vector<1x60xf32>
    %14 = vector.broadcast %13 : vector<1x60xf32> to vector<8x60xf32>
    %cst_15 = arith.constant 0.000000e+00 : f32
    %15 = vector.broadcast %cst_15 : f32 to vector<8x60xf32>
    %cst_16 = arith.constant 0.000000e+00 : f32
    %16 = vector.broadcast %cst_16 : f32 to vector<8x60xf32>
    %c0_17 = arith.constant 0 : index
    %c0_18 = arith.constant 0 : index
    %17 = vector.load %arg9[%c0_17, %c0_18] : memref<64x768xf32, #tpu.memory_space<vmem>>, vector<8x384xf32>
    %18 = arith.truncf %15 : vector<8x60xf32> to vector<8x60xbf16>
    %cst_19 = arith.constant dense<0.000000e+00> : vector<8x384xf32>
    %19 = tpu.matmul %18, %7, %cst_19 {dimension_numbers = #tpu.dot_dimension_numbers<[1], [0], [0], [1], [0, 0, 1, 1], [], []>} : vector<8x60xbf16>, vector<60x384xbf16>, vector<8x384xf32> -> vector<8x384xf32>
    %20 = vector.extract_strided_slice %17 {offsets = [0, 0], sizes = [8, 60], strides = [1, 1]} : vector<8x384xf32> to vector<8x60xf32>
    %21 = vector.extract_strided_slice %19 {offsets = [0, 0], sizes = [8, 60], strides = [1, 1]} : vector<8x384xf32> to vector<8x60xf32>
    %22 = arith.addf %20, %21 : vector<8x60xf32>
    %23 = arith.negf %22 : vector<8x60xf32>
    %24 = math.exp %23 : vector<8x60xf32>
    %cst_20 = arith.constant 1.000000e+00 : f32
    %25 = vector.broadcast %cst_20 : f32 to vector<8x60xf32>
    %26 = arith.addf %25, %24 : vector<8x60xf32>
    %27 = arith.divf %25, %26 : vector<8x60xf32>
    %28 = vector.extract_strided_slice %17 {offsets = [0, 128], sizes = [8, 60], strides = [1, 1]} : vector<8x384xf32> to vector<8x60xf32>
    %29 = vector.extract_strided_slice %19 {offsets = [0, 128], sizes = [8, 60], strides = [1, 1]} : vector<8x384xf32> to vector<8x60xf32>
    %30 = arith.addf %28, %29 : vector<8x60xf32>
    %31 = arith.negf %30 : vector<8x60xf32>
    %32 = math.exp %31 : vector<8x60xf32>
    %cst_21 = arith.constant 1.000000e+00 : f32
    %33 = vector.broadcast %cst_21 : f32 to vector<8x60xf32>
    %34 = arith.addf %33, %32 : vector<8x60xf32>
    %35 = arith.divf %33, %34 : vector<8x60xf32>
    %36 = vector.extract_strided_slice %17 {offsets = [0, 256], sizes = [8, 60], strides = [1, 1]} : vector<8x384xf32> to vector<8x60xf32>
    %37 = vector.extract_strided_slice %19 {offsets = [0, 256], sizes = [8, 60], strides = [1, 1]} : vector<8x384xf32> to vector<8x60xf32>
    %38 = arith.addf %37, %11 : vector<8x60xf32>
    %39 = arith.mulf %27, %38 : vector<8x60xf32>
    %40 = arith.addf %36, %39 : vector<8x60xf32>
    %41 = math.tanh %40 : vector<8x60xf32>
    %cst_22 = arith.constant 1.000000e+00 : f32
    %42 = vector.broadcast %cst_22 : f32 to vector<8x60xf32>
    %43 = arith.subf %42, %35 : vector<8x60xf32>
    %44 = arith.mulf %43, %41 : vector<8x60xf32>
    %45 = arith.mulf %35, %15 : vector<8x60xf32>
    %46 = arith.addf %44, %45 : vector<8x60xf32>
    %c56 = arith.constant 56 : index
    %c384 = arith.constant 384 : index
    %47 = vector.load %arg9[%c56, %c384] : memref<64x768xf32, #tpu.memory_space<vmem>>, vector<8x384xf32>
    %48 = arith.truncf %16 : vector<8x60xf32> to vector<8x60xbf16>
    %cst_23 = arith.constant dense<0.000000e+00> : vector<8x384xf32>
    %49 = tpu.matmul %48, %8, %cst_23 {dimension_numbers = #tpu.dot_dimension_numbers<[1], [0], [0], [1], [0, 0, 1, 1], [], []>} : vector<8x60xbf16>, vector<60x384xbf16>, vector<8x384xf32> -> vector<8x384xf32>
    %50 = vector.extract_strided_slice %47 {offsets = [0, 0], sizes = [8, 60], strides = [1, 1]} : vector<8x384xf32> to vector<8x60xf32>
    %51 = vector.extract_strided_slice %49 {offsets = [0, 0], sizes = [8, 60], strides = [1, 1]} : vector<8x384xf32> to vector<8x60xf32>
    %52 = arith.addf %50, %51 : vector<8x60xf32>
    %53 = arith.negf %52 : vector<8x60xf32>
    %54 = math.exp %53 : vector<8x60xf32>
    %cst_24 = arith.constant 1.000000e+00 : f32
    %55 = vector.broadcast %cst_24 : f32 to vector<8x60xf32>
    %56 = arith.addf %55, %54 : vector<8x60xf32>
    %57 = arith.divf %55, %56 : vector<8x60xf32>
    %58 = vector.extract_strided_slice %47 {offsets = [0, 128], sizes = [8, 60], strides = [1, 1]} : vector<8x384xf32> to vector<8x60xf32>
    %59 = vector.extract_strided_slice %49 {offsets = [0, 128], sizes = [8, 60], strides = [1, 1]} : vector<8x384xf32> to vector<8x60xf32>
    %60 = arith.addf %58, %59 : vector<8x60xf32>
    %61 = arith.negf %60 : vector<8x60xf32>
    %62 = math.exp %61 : vector<8x60xf32>
    %cst_25 = arith.constant 1.000000e+00 : f32
    %63 = vector.broadcast %cst_25 : f32 to vector<8x60xf32>
    %64 = arith.addf %63, %62 : vector<8x60xf32>
    %65 = arith.divf %63, %64 : vector<8x60xf32>
    %66 = vector.extract_strided_slice %47 {offsets = [0, 256], sizes = [8, 60], strides = [1, 1]} : vector<8x384xf32> to vector<8x60xf32>
    %67 = vector.extract_strided_slice %49 {offsets = [0, 256], sizes = [8, 60], strides = [1, 1]} : vector<8x384xf32> to vector<8x60xf32>
    %68 = arith.addf %67, %14 : vector<8x60xf32>
    %69 = arith.mulf %57, %68 : vector<8x60xf32>
    %70 = arith.addf %66, %69 : vector<8x60xf32>
    %71 = math.tanh %70 : vector<8x60xf32>
    %cst_26 = arith.constant 1.000000e+00 : f32
    %72 = vector.broadcast %cst_26 : f32 to vector<8x60xf32>
    %73 = arith.subf %72, %65 : vector<8x60xf32>
    %74 = arith.mulf %73, %71 : vector<8x60xf32>
    %75 = arith.mulf %65, %16 : vector<8x60xf32>
    %76 = arith.addf %74, %75 : vector<8x60xf32>
    %c0_27 = arith.constant 0 : index
    %c0_28 = arith.constant 0 : index
    %c0_29 = arith.constant 0 : index
    %77 = vector.load %arg7[%c0_27, %c0_28, %c0_29] : memref<8x8x128xf32, #tpu.memory_space<vmem>>, vector<1x8x60xf32>
    %78 = vector.shape_cast %77 : vector<1x8x60xf32> to vector<8x60xf32>
    %79 = vector.shape_cast %46 : vector<8x60xf32> to vector<1x8x60xf32>
    tpu.vector_store %arg7[%c0_27, %c0_28, %c0_29], %79 {strides = array<i32>} : memref<8x8x128xf32, #tpu.memory_space<vmem>>, vector<1x8x60xf32>,
    %c7 = arith.constant 7 : index
    %c0_30 = arith.constant 0 : index
    %c60 = arith.constant 60 : index
    %80 = vector.load %arg7[%c7, %c0_30, %c60] : memref<8x8x128xf32, #tpu.memory_space<vmem>>, vector<1x8x60xf32>
    %81 = vector.shape_cast %80 : vector<1x8x60xf32> to vector<8x60xf32>
    %82 = vector.shape_cast %76 : vector<8x60xf32> to vector<1x8x60xf32>
    tpu.vector_store %arg7[%c7, %c0_30, %c60], %82 {strides = array<i32>} : memref<8x8x128xf32, #tpu.memory_space<vmem>>, vector<1x8x60xf32>,
    %c8 = arith.constant 8 : index
    %c0_31 = arith.constant 0 : index
    %83 = vector.load %arg9[%c8, %c0_31] : memref<64x768xf32, #tpu.memory_space<vmem>>, vector<8x384xf32>
    %84 = arith.truncf %46 : vector<8x60xf32> to vector<8x60xbf16>
    %cst_32 = arith.constant dense<0.000000e+00> : vector<8x384xf32>
    %85 = tpu.matmul %84, %7, %cst_32 {dimension_numbers = #tpu.dot_dimension_numbers<[1], [0], [0], [1], [0, 0, 1, 1], [], []>} : vector<8x60xbf16>, vector<60x384xbf16>, vector<8x384xf32> -> vector<8x384xf32>
    %86 = vector.extract_strided_slice %83 {offsets = [0, 0], sizes = [8, 60], strides = [1, 1]} : vector<8x384xf32> to vector<8x60xf32>
    %87 = vector.extract_strided_slice %85 {offsets = [0, 0], sizes = [8, 60], strides = [1, 1]} : vector<8x384xf32> to vector<8x60xf32>
    %88 = arith.addf %86, %87 : vector<8x60xf32>
    %89 = arith.negf %88 : vector<8x60xf32>
    %90 = math.exp %89 : vector<8x60xf32>
    %cst_33 = arith.constant 1.000000e+00 : f32
    %91 = vector.broadcast %cst_33 : f32 to vector<8x60xf32>
    %92 = arith.addf %91, %90 : vector<8x60xf32>
    %93 = arith.divf %91, %92 : vector<8x60xf32>
    %94 = vector.extract_strided_slice %83 {offsets = [0, 128], sizes = [8, 60], strides = [1, 1]} : vector<8x384xf32> to vector<8x60xf32>
    %95 = vector.extract_strided_slice %85 {offsets = [0, 128], sizes = [8, 60], strides = [1, 1]} : vector<8x384xf32> to vector<8x60xf32>
    %96 = arith.addf %94, %95 : vector<8x60xf32>
    %97 = arith.negf %96 : vector<8x60xf32>
    %98 = math.exp %97 : vector<8x60xf32>
    %cst_34 = arith.constant 1.000000e+00 : f32
    %99 = vector.broadcast %cst_34 : f32 to vector<8x60xf32>
    %100 = arith.addf %99, %98 : vector<8x60xf32>
    %101 = arith.divf %99, %100 : vector<8x60xf32>
    %102 = vector.extract_strided_slice %83 {offsets = [0, 256], sizes = [8, 60], strides = [1, 1]} : vector<8x384xf32> to vector<8x60xf32>
    %103 = vector.extract_strided_slice %85 {offsets = [0, 256], sizes = [8, 60], strides = [1, 1]} : vector<8x384xf32> to vector<8x60xf32>
    %104 = arith.addf %103, %11 : vector<8x60xf32>
    %105 = arith.mulf %93, %104 : vector<8x60xf32>
    %106 = arith.addf %102, %105 : vector<8x60xf32>
    %107 = math.tanh %106 : vector<8x60xf32>
    %cst_35 = arith.constant 1.000000e+00 : f32
    %108 = vector.broadcast %cst_35 : f32 to vector<8x60xf32>
    %109 = arith.subf %108, %101 : vector<8x60xf32>
    %110 = arith.mulf %109, %107 : vector<8x60xf32>
    %111 = arith.mulf %101, %46 : vector<8x60xf32>
    %112 = arith.addf %110, %111 : vector<8x60xf32>
    %c48 = arith.constant 48 : index
    %c384_36 = arith.constant 384 : index
    %113 = vector.load %arg9[%c48, %c384_36] : memref<64x768xf32, #tpu.memory_space<vmem>>, vector<8x384xf32>
    %114 = arith.truncf %76 : vector<8x60xf32> to vector<8x60xbf16>
    %cst_37 = arith.constant dense<0.000000e+00> : vector<8x384xf32>
    %115 = tpu.matmul %114, %8, %cst_37 {dimension_numbers = #tpu.dot_dimension_numbers<[1], [0], [0], [1], [0, 0, 1, 1], [], []>} : vector<8x60xbf16>, vector<60x384xbf16>, vector<8x384xf32> -> vector<8x384xf32>
    %116 = vector.extract_strided_slice %113 {offsets = [0, 0], sizes = [8, 60], strides = [1, 1]} : vector<8x384xf32> to vector<8x60xf32>
    %117 = vector.extract_strided_slice %115 {offsets = [0, 0], sizes = [8, 60], strides = [1, 1]} : vector<8x384xf32> to vector<8x60xf32>
    %118 = arith.addf %116, %117 : vector<8x60xf32>
    %119 = arith.negf %118 : vector<8x60xf32>
    %120 = math.exp %119 : vector<8x60xf32>
    %cst_38 = arith.constant 1.000000e+00 : f32
    %121 = vector.broadcast %cst_38 : f32 to vector<8x60xf32>
    %122 = arith.addf %121, %120 : vector<8x60xf32>
    %123 = arith.divf %121, %122 : vector<8x60xf32>
    %124 = vector.extract_strided_slice %113 {offsets = [0, 128], sizes = [8, 60], strides = [1, 1]} : vector<8x384xf32> to vector<8x60xf32>
    %125 = vector.extract_strided_slice %115 {offsets = [0, 128], sizes = [8, 60], strides = [1, 1]} : vector<8x384xf32> to vector<8x60xf32>
    %126 = arith.addf %124, %125 : vector<8x60xf32>
    %127 = arith.negf %126 : vector<8x60xf32>
    %128 = math.exp %127 : vector<8x60xf32>
    %cst_39 = arith.constant 1.000000e+00 : f32
    %129 = vector.broadcast %cst_39 : f32 to vector<8x60xf32>
    %130 = arith.addf %129, %128 : vector<8x60xf32>
    %131 = arith.divf %129, %130 : vector<8x60xf32>
    %132 = vector.extract_strided_slice %113 {offsets = [0, 256], sizes = [8, 60], strides = [1, 1]} : vector<8x384xf32> to vector<8x60xf32>
    %133 = vector.extract_strided_slice %115 {offsets = [0, 256], sizes = [8, 60], strides = [1, 1]} : vector<8x384xf32> to vector<8x60xf32>
    %134 = arith.addf %133, %14 : vector<8x60xf32>
    %135 = arith.mulf %123, %134 : vector<8x60xf32>
    %136 = arith.addf %132, %135 : vector<8x60xf32>
    %137 = math.tanh %136 : vector<8x60xf32>
    %cst_40 = arith.constant 1.000000e+00 : f32
    %138 = vector.broadcast %cst_40 : f32 to vector<8x60xf32>
    %139 = arith.subf %138, %131 : vector<8x60xf32>
    %140 = arith.mulf %139, %137 : vector<8x60xf32>
    %141 = arith.mulf %131, %76 : vector<8x60xf32>
    %142 = arith.addf %140, %141 : vector<8x60xf32>
    %c1 = arith.constant 1 : index
    %c0_41 = arith.constant 0 : index
    %c0_42 = arith.constant 0 : index
    %143 = vector.load %arg7[%c1, %c0_41, %c0_42] : memref<8x8x128xf32, #tpu.memory_space<vmem>>, vector<1x8x60xf32>
    %144 = vector.shape_cast %143 : vector<1x8x60xf32> to vector<8x60xf32>
    %145 = vector.shape_cast %112 : vector<8x60xf32> to vector<1x8x60xf32>
    tpu.vector_store %arg7[%c1, %c0_41, %c0_42], %145 {strides = array<i32>} : memref<8x8x128xf32, #tpu.memory_space<vmem>>, vector<1x8x60xf32>,
    %c6 = arith.constant 6 : index
    %c0_43 = arith.constant 0 : index
    %c60_44 = arith.constant 60 : index
    %146 = vector.load %arg7[%c6, %c0_43, %c60_44] : memref<8x8x128xf32, #tpu.memory_space<vmem>>, vector<1x8x60xf32>
    %147 = vector.shape_cast %146 : vector<1x8x60xf32> to vector<8x60xf32>
    %148 = vector.shape_cast %142 : vector<8x60xf32> to vector<1x8x60xf32>
    tpu.vector_store %arg7[%c6, %c0_43, %c60_44], %148 {strides = array<i32>} : memref<8x8x128xf32, #tpu.memory_space<vmem>>, vector<1x8x60xf32>,
    %c16 = arith.constant 16 : index
    %c0_45 = arith.constant 0 : index
    %149 = vector.load %arg9[%c16, %c0_45] : memref<64x768xf32, #tpu.memory_space<vmem>>, vector<8x384xf32>
    %150 = arith.truncf %112 : vector<8x60xf32> to vector<8x60xbf16>
    %cst_46 = arith.constant dense<0.000000e+00> : vector<8x384xf32>
    %151 = tpu.matmul %150, %7, %cst_46 {dimension_numbers = #tpu.dot_dimension_numbers<[1], [0], [0], [1], [0, 0, 1, 1], [], []>} : vector<8x60xbf16>, vector<60x384xbf16>, vector<8x384xf32> -> vector<8x384xf32>
    %152 = vector.extract_strided_slice %149 {offsets = [0, 0], sizes = [8, 60], strides = [1, 1]} : vector<8x384xf32> to vector<8x60xf32>
    %153 = vector.extract_strided_slice %151 {offsets = [0, 0], sizes = [8, 60], strides = [1, 1]} : vector<8x384xf32> to vector<8x60xf32>
    %154 = arith.addf %152, %153 : vector<8x60xf32>
    %155 = arith.negf %154 : vector<8x60xf32>
    %156 = math.exp %155 : vector<8x60xf32>
    %cst_47 = arith.constant 1.000000e+00 : f32
    %157 = vector.broadcast %cst_47 : f32 to vector<8x60xf32>
    %158 = arith.addf %157, %156 : vector<8x60xf32>
    %159 = arith.divf %157, %158 : vector<8x60xf32>
    %160 = vector.extract_strided_slice %149 {offsets = [0, 128], sizes = [8, 60], strides = [1, 1]} : vector<8x384xf32> to vector<8x60xf32>
    %161 = vector.extract_strided_slice %151 {offsets = [0, 128], sizes = [8, 60], strides = [1, 1]} : vector<8x384xf32> to vector<8x60xf32>
    %162 = arith.addf %160, %161 : vector<8x60xf32>
    %163 = arith.negf %162 : vector<8x60xf32>
    %164 = math.exp %163 : vector<8x60xf32>
    %cst_48 = arith.constant 1.000000e+00 : f32
    %165 = vector.broadcast %cst_48 : f32 to vector<8x60xf32>
    %166 = arith.addf %165, %164 : vector<8x60xf32>
    %167 = arith.divf %165, %166 : vector<8x60xf32>
    %168 = vector.extract_strided_slice %149 {offsets = [0, 256], sizes = [8, 60], strides = [1, 1]} : vector<8x384xf32> to vector<8x60xf32>
    %169 = vector.extract_strided_slice %151 {offsets = [0, 256], sizes = [8, 60], strides = [1, 1]} : vector<8x384xf32> to vector<8x60xf32>
    %170 = arith.addf %169, %11 : vector<8x60xf32>
    %171 = arith.mulf %159, %170 : vector<8x60xf32>
    %172 = arith.addf %168, %171 : vector<8x60xf32>
    %173 = math.tanh %172 : vector<8x60xf32>
    %cst_49 = arith.constant 1.000000e+00 : f32
    %174 = vector.broadcast %cst_49 : f32 to vector<8x60xf32>
    %175 = arith.subf %174, %167 : vector<8x60xf32>
    %176 = arith.mulf %175, %173 : vector<8x60xf32>
    %177 = arith.mulf %167, %112 : vector<8x60xf32>
    %178 = arith.addf %176, %177 : vector<8x60xf32>
    %c40 = arith.constant 40 : index
    %c384_50 = arith.constant 384 : index
    %179 = vector.load %arg9[%c40, %c384_50] : memref<64x768xf32, #tpu.memory_space<vmem>>, vector<8x384xf32>
    %180 = arith.truncf %142 : vector<8x60xf32> to vector<8x60xbf16>
    %cst_51 = arith.constant dense<0.000000e+00> : vector<8x384xf32>
    %181 = tpu.matmul %180, %8, %cst_51 {dimension_numbers = #tpu.dot_dimension_numbers<[1], [0], [0], [1], [0, 0, 1, 1], [], []>} : vector<8x60xbf16>, vector<60x384xbf16>, vector<8x384xf32> -> vector<8x384xf32>
    %182 = vector.extract_strided_slice %179 {offsets = [0, 0], sizes = [8, 60], strides = [1, 1]} : vector<8x384xf32> to vector<8x60xf32>
    %183 = vector.extract_strided_slice %181 {offsets = [0, 0], sizes = [8, 60], strides = [1, 1]} : vector<8x384xf32> to vector<8x60xf32>
    %184 = arith.addf %182, %183 : vector<8x60xf32>
    %185 = arith.negf %184 : vector<8x60xf32>
    %186 = math.exp %185 : vector<8x60xf32>
    %cst_52 = arith.constant 1.000000e+00 : f32
    %187 = vector.broadcast %cst_52 : f32 to vector<8x60xf32>
    %188 = arith.addf %187, %186 : vector<8x60xf32>
    %189 = arith.divf %187, %188 : vector<8x60xf32>
    %190 = vector.extract_strided_slice %179 {offsets = [0, 128], sizes = [8, 60], strides = [1, 1]} : vector<8x384xf32> to vector<8x60xf32>
    %191 = vector.extract_strided_slice %181 {offsets = [0, 128], sizes = [8, 60], strides = [1, 1]} : vector<8x384xf32> to vector<8x60xf32>
    %192 = arith.addf %190, %191 : vector<8x60xf32>
    %193 = arith.negf %192 : vector<8x60xf32>
    %194 = math.exp %193 : vector<8x60xf32>
    %cst_53 = arith.constant 1.000000e+00 : f32
    %195 = vector.broadcast %cst_53 : f32 to vector<8x60xf32>
    %196 = arith.addf %195, %194 : vector<8x60xf32>
    %197 = arith.divf %195, %196 : vector<8x60xf32>
    %198 = vector.extract_strided_slice %179 {offsets = [0, 256], sizes = [8, 60], strides = [1, 1]} : vector<8x384xf32> to vector<8x60xf32>
    %199 = vector.extract_strided_slice %181 {offsets = [0, 256], sizes = [8, 60], strides = [1, 1]} : vector<8x384xf32> to vector<8x60xf32>
    %200 = arith.addf %199, %14 : vector<8x60xf32>
    %201 = arith.mulf %189, %200 : vector<8x60xf32>
    %202 = arith.addf %198, %201 : vector<8x60xf32>
    %203 = math.tanh %202 : vector<8x60xf32>
    %cst_54 = arith.constant 1.000000e+00 : f32
    %204 = vector.broadcast %cst_54 : f32 to vector<8x60xf32>
    %205 = arith.subf %204, %197 : vector<8x60xf32>
    %206 = arith.mulf %205, %203 : vector<8x60xf32>
    %207 = arith.mulf %197, %142 : vector<8x60xf32>
    %208 = arith.addf %206, %207 : vector<8x60xf32>
    %c2 = arith.constant 2 : index
    %c0_55 = arith.constant 0 : index
    %c0_56 = arith.constant 0 : index
    %209 = vector.load %arg7[%c2, %c0_55, %c0_56] : memref<8x8x128xf32, #tpu.memory_space<vmem>>, vector<1x8x60xf32>
    %210 = vector.shape_cast %209 : vector<1x8x60xf32> to vector<8x60xf32>
    %211 = vector.shape_cast %178 : vector<8x60xf32> to vector<1x8x60xf32>
    tpu.vector_store %arg7[%c2, %c0_55, %c0_56], %211 {strides = array<i32>} : memref<8x8x128xf32, #tpu.memory_space<vmem>>, vector<1x8x60xf32>,
    %c5 = arith.constant 5 : index
    %c0_57 = arith.constant 0 : index
    %c60_58 = arith.constant 60 : index
    %212 = vector.load %arg7[%c5, %c0_57, %c60_58] : memref<8x8x128xf32, #tpu.memory_space<vmem>>, vector<1x8x60xf32>
    %213 = vector.shape_cast %212 : vector<1x8x60xf32> to vector<8x60xf32>
    %214 = vector.shape_cast %208 : vector<8x60xf32> to vector<1x8x60xf32>
    tpu.vector_store %arg7[%c5, %c0_57, %c60_58], %214 {strides = array<i32>} : memref<8x8x128xf32, #tpu.memory_space<vmem>>, vector<1x8x60xf32>,
    %c24 = arith.constant 24 : index
    %c0_59 = arith.constant 0 : index
    %215 = vector.load %arg9[%c24, %c0_59] : memref<64x768xf32, #tpu.memory_space<vmem>>, vector<8x384xf32>
    %216 = arith.truncf %178 : vector<8x60xf32> to vector<8x60xbf16>
    %cst_60 = arith.constant dense<0.000000e+00> : vector<8x384xf32>
    %217 = tpu.matmul %216, %7, %cst_60 {dimension_numbers = #tpu.dot_dimension_numbers<[1], [0], [0], [1], [0, 0, 1, 1], [], []>} : vector<8x60xbf16>, vector<60x384xbf16>, vector<8x384xf32> -> vector<8x384xf32>
    %218 = vector.extract_strided_slice %215 {offsets = [0, 0], sizes = [8, 60], strides = [1, 1]} : vector<8x384xf32> to vector<8x60xf32>
    %219 = vector.extract_strided_slice %217 {offsets = [0, 0], sizes = [8, 60], strides = [1, 1]} : vector<8x384xf32> to vector<8x60xf32>
    %220 = arith.addf %218, %219 : vector<8x60xf32>
    %221 = arith.negf %220 : vector<8x60xf32>
    %222 = math.exp %221 : vector<8x60xf32>
    %cst_61 = arith.constant 1.000000e+00 : f32
    %223 = vector.broadcast %cst_61 : f32 to vector<8x60xf32>
    %224 = arith.addf %223, %222 : vector<8x60xf32>
    %225 = arith.divf %223, %224 : vector<8x60xf32>
    %226 = vector.extract_strided_slice %215 {offsets = [0, 128], sizes = [8, 60], strides = [1, 1]} : vector<8x384xf32> to vector<8x60xf32>
    %227 = vector.extract_strided_slice %217 {offsets = [0, 128], sizes = [8, 60], strides = [1, 1]} : vector<8x384xf32> to vector<8x60xf32>
    %228 = arith.addf %226, %227 : vector<8x60xf32>
    %229 = arith.negf %228 : vector<8x60xf32>
    %230 = math.exp %229 : vector<8x60xf32>
    %cst_62 = arith.constant 1.000000e+00 : f32
    %231 = vector.broadcast %cst_62 : f32 to vector<8x60xf32>
    %232 = arith.addf %231, %230 : vector<8x60xf32>
    %233 = arith.divf %231, %232 : vector<8x60xf32>
    %234 = vector.extract_strided_slice %215 {offsets = [0, 256], sizes = [8, 60], strides = [1, 1]} : vector<8x384xf32> to vector<8x60xf32>
    %235 = vector.extract_strided_slice %217 {offsets = [0, 256], sizes = [8, 60], strides = [1, 1]} : vector<8x384xf32> to vector<8x60xf32>
    %236 = arith.addf %235, %11 : vector<8x60xf32>
    %237 = arith.mulf %225, %236 : vector<8x60xf32>
    %238 = arith.addf %234, %237 : vector<8x60xf32>
    %239 = math.tanh %238 : vector<8x60xf32>
    %cst_63 = arith.constant 1.000000e+00 : f32
    %240 = vector.broadcast %cst_63 : f32 to vector<8x60xf32>
    %241 = arith.subf %240, %233 : vector<8x60xf32>
    %242 = arith.mulf %241, %239 : vector<8x60xf32>
    %243 = arith.mulf %233, %178 : vector<8x60xf32>
    %244 = arith.addf %242, %243 : vector<8x60xf32>
    %c32 = arith.constant 32 : index
    %c384_64 = arith.constant 384 : index
    %245 = vector.load %arg9[%c32, %c384_64] : memref<64x768xf32, #tpu.memory_space<vmem>>, vector<8x384xf32>
    %246 = arith.truncf %208 : vector<8x60xf32> to vector<8x60xbf16>
    %cst_65 = arith.constant dense<0.000000e+00> : vector<8x384xf32>
    %247 = tpu.matmul %246, %8, %cst_65 {dimension_numbers = #tpu.dot_dimension_numbers<[1], [0], [0], [1], [0, 0, 1, 1], [], []>} : vector<8x60xbf16>, vector<60x384xbf16>, vector<8x384xf32> -> vector<8x384xf32>
    %248 = vector.extract_strided_slice %245 {offsets = [0, 0], sizes = [8, 60], strides = [1, 1]} : vector<8x384xf32> to vector<8x60xf32>
    %249 = vector.extract_strided_slice %247 {offsets = [0, 0], sizes = [8, 60], strides = [1, 1]} : vector<8x384xf32> to vector<8x60xf32>
    %250 = arith.addf %248, %249 : vector<8x60xf32>
    %251 = arith.negf %250 : vector<8x60xf32>
    %252 = math.exp %251 : vector<8x60xf32>
    %cst_66 = arith.constant 1.000000e+00 : f32
    %253 = vector.broadcast %cst_66 : f32 to vector<8x60xf32>
    %254 = arith.addf %253, %252 : vector<8x60xf32>
    %255 = arith.divf %253, %254 : vector<8x60xf32>
    %256 = vector.extract_strided_slice %245 {offsets = [0, 128], sizes = [8, 60], strides = [1, 1]} : vector<8x384xf32> to vector<8x60xf32>
    %257 = vector.extract_strided_slice %247 {offsets = [0, 128], sizes = [8, 60], strides = [1, 1]} : vector<8x384xf32> to vector<8x60xf32>
    %258 = arith.addf %256, %257 : vector<8x60xf32>
    %259 = arith.negf %258 : vector<8x60xf32>
    %260 = math.exp %259 : vector<8x60xf32>
    %cst_67 = arith.constant 1.000000e+00 : f32
    %261 = vector.broadcast %cst_67 : f32 to vector<8x60xf32>
    %262 = arith.addf %261, %260 : vector<8x60xf32>
    %263 = arith.divf %261, %262 : vector<8x60xf32>
    %264 = vector.extract_strided_slice %245 {offsets = [0, 256], sizes = [8, 60], strides = [1, 1]} : vector<8x384xf32> to vector<8x60xf32>
    %265 = vector.extract_strided_slice %247 {offsets = [0, 256], sizes = [8, 60], strides = [1, 1]} : vector<8x384xf32> to vector<8x60xf32>
    %266 = arith.addf %265, %14 : vector<8x60xf32>
    %267 = arith.mulf %255, %266 : vector<8x60xf32>
    %268 = arith.addf %264, %267 : vector<8x60xf32>
    %269 = math.tanh %268 : vector<8x60xf32>
    %cst_68 = arith.constant 1.000000e+00 : f32
    %270 = vector.broadcast %cst_68 : f32 to vector<8x60xf32>
    %271 = arith.subf %270, %263 : vector<8x60xf32>
    %272 = arith.mulf %271, %269 : vector<8x60xf32>
    %273 = arith.mulf %263, %208 : vector<8x60xf32>
    %274 = arith.addf %272, %273 : vector<8x60xf32>
    %c3 = arith.constant 3 : index
    %c0_69 = arith.constant 0 : index
    %c0_70 = arith.constant 0 : index
    %275 = vector.load %arg7[%c3, %c0_69, %c0_70] : memref<8x8x128xf32, #tpu.memory_space<vmem>>, vector<1x8x60xf32>
    %276 = vector.shape_cast %275 : vector<1x8x60xf32> to vector<8x60xf32>
    %277 = vector.shape_cast %244 : vector<8x60xf32> to vector<1x8x60xf32>
    tpu.vector_store %arg7[%c3, %c0_69, %c0_70], %277 {strides = array<i32>} : memref<8x8x128xf32, #tpu.memory_space<vmem>>, vector<1x8x60xf32>,
    %c4 = arith.constant 4 : index
    %c0_71 = arith.constant 0 : index
    %c60_72 = arith.constant 60 : index
    %278 = vector.load %arg7[%c4, %c0_71, %c60_72] : memref<8x8x128xf32, #tpu.memory_space<vmem>>, vector<1x8x60xf32>
    %279 = vector.shape_cast %278 : vector<1x8x60xf32> to vector<8x60xf32>
    %280 = vector.shape_cast %274 : vector<8x60xf32> to vector<1x8x60xf32>
    tpu.vector_store %arg7[%c4, %c0_71, %c60_72], %280 {strides = array<i32>} : memref<8x8x128xf32, #tpu.memory_space<vmem>>, vector<1x8x60xf32>,
    %c32_73 = arith.constant 32 : index
    %c0_74 = arith.constant 0 : index
    %281 = vector.load %arg9[%c32_73, %c0_74] : memref<64x768xf32, #tpu.memory_space<vmem>>, vector<8x384xf32>
    %282 = arith.truncf %244 : vector<8x60xf32> to vector<8x60xbf16>
    %cst_75 = arith.constant dense<0.000000e+00> : vector<8x384xf32>
    %283 = tpu.matmul %282, %7, %cst_75 {dimension_numbers = #tpu.dot_dimension_numbers<[1], [0], [0], [1], [0, 0, 1, 1], [], []>} : vector<8x60xbf16>, vector<60x384xbf16>, vector<8x384xf32> -> vector<8x384xf32>
    %284 = vector.extract_strided_slice %281 {offsets = [0, 0], sizes = [8, 60], strides = [1, 1]} : vector<8x384xf32> to vector<8x60xf32>
    %285 = vector.extract_strided_slice %283 {offsets = [0, 0], sizes = [8, 60], strides = [1, 1]} : vector<8x384xf32> to vector<8x60xf32>
    %286 = arith.addf %284, %285 : vector<8x60xf32>
    %287 = arith.negf %286 : vector<8x60xf32>
    %288 = math.exp %287 : vector<8x60xf32>
    %cst_76 = arith.constant 1.000000e+00 : f32
    %289 = vector.broadcast %cst_76 : f32 to vector<8x60xf32>
    %290 = arith.addf %289, %288 : vector<8x60xf32>
    %291 = arith.divf %289, %290 : vector<8x60xf32>
    %292 = vector.extract_strided_slice %281 {offsets = [0, 128], sizes = [8, 60], strides = [1, 1]} : vector<8x384xf32> to vector<8x60xf32>
    %293 = vector.extract_strided_slice %283 {offsets = [0, 128], sizes = [8, 60], strides = [1, 1]} : vector<8x384xf32> to vector<8x60xf32>
    %294 = arith.addf %292, %293 : vector<8x60xf32>
    %295 = arith.negf %294 : vector<8x60xf32>
    %296 = math.exp %295 : vector<8x60xf32>
    %cst_77 = arith.constant 1.000000e+00 : f32
    %297 = vector.broadcast %cst_77 : f32 to vector<8x60xf32>
    %298 = arith.addf %297, %296 : vector<8x60xf32>
    %299 = arith.divf %297, %298 : vector<8x60xf32>
    %300 = vector.extract_strided_slice %281 {offsets = [0, 256], sizes = [8, 60], strides = [1, 1]} : vector<8x384xf32> to vector<8x60xf32>
    %301 = vector.extract_strided_slice %283 {offsets = [0, 256], sizes = [8, 60], strides = [1, 1]} : vector<8x384xf32> to vector<8x60xf32>
    %302 = arith.addf %301, %11 : vector<8x60xf32>
    %303 = arith.mulf %291, %302 : vector<8x60xf32>
    %304 = arith.addf %300, %303 : vector<8x60xf32>
    %305 = math.tanh %304 : vector<8x60xf32>
    %cst_78 = arith.constant 1.000000e+00 : f32
    %306 = vector.broadcast %cst_78 : f32 to vector<8x60xf32>
    %307 = arith.subf %306, %299 : vector<8x60xf32>
    %308 = arith.mulf %307, %305 : vector<8x60xf32>
    %309 = arith.mulf %299, %244 : vector<8x60xf32>
    %310 = arith.addf %308, %309 : vector<8x60xf32>
    %c24_79 = arith.constant 24 : index
    %c384_80 = arith.constant 384 : index
    %311 = vector.load %arg9[%c24_79, %c384_80] : memref<64x768xf32, #tpu.memory_space<vmem>>, vector<8x384xf32>
    %312 = arith.truncf %274 : vector<8x60xf32> to vector<8x60xbf16>
    %cst_81 = arith.constant dense<0.000000e+00> : vector<8x384xf32>
    %313 = tpu.matmul %312, %8, %cst_81 {dimension_numbers = #tpu.dot_dimension_numbers<[1], [0], [0], [1], [0, 0, 1, 1], [], []>} : vector<8x60xbf16>, vector<60x384xbf16>, vector<8x384xf32> -> vector<8x384xf32>
    %314 = vector.extract_strided_slice %311 {offsets = [0, 0], sizes = [8, 60], strides = [1, 1]} : vector<8x384xf32> to vector<8x60xf32>
    %315 = vector.extract_strided_slice %313 {offsets = [0, 0], sizes = [8, 60], strides = [1, 1]} : vector<8x384xf32> to vector<8x60xf32>
    %316 = arith.addf %314, %315 : vector<8x60xf32>
    %317 = arith.negf %316 : vector<8x60xf32>
    %318 = math.exp %317 : vector<8x60xf32>
    %cst_82 = arith.constant 1.000000e+00 : f32
    %319 = vector.broadcast %cst_82 : f32 to vector<8x60xf32>
    %320 = arith.addf %319, %318 : vector<8x60xf32>
    %321 = arith.divf %319, %320 : vector<8x60xf32>
    %322 = vector.extract_strided_slice %311 {offsets = [0, 128], sizes = [8, 60], strides = [1, 1]} : vector<8x384xf32> to vector<8x60xf32>
    %323 = vector.extract_strided_slice %313 {offsets = [0, 128], sizes = [8, 60], strides = [1, 1]} : vector<8x384xf32> to vector<8x60xf32>
    %324 = arith.addf %322, %323 : vector<8x60xf32>
    %325 = arith.negf %324 : vector<8x60xf32>
    %326 = math.exp %325 : vector<8x60xf32>
    %cst_83 = arith.constant 1.000000e+00 : f32
    %327 = vector.broadcast %cst_83 : f32 to vector<8x60xf32>
    %328 = arith.addf %327, %326 : vector<8x60xf32>
    %329 = arith.divf %327, %328 : vector<8x60xf32>
    %330 = vector.extract_strided_slice %311 {offsets = [0, 256], sizes = [8, 60], strides = [1, 1]} : vector<8x384xf32> to vector<8x60xf32>
    %331 = vector.extract_strided_slice %313 {offsets = [0, 256], sizes = [8, 60], strides = [1, 1]} : vector<8x384xf32> to vector<8x60xf32>
    %332 = arith.addf %331, %14 : vector<8x60xf32>
    %333 = arith.mulf %321, %332 : vector<8x60xf32>
    %334 = arith.addf %330, %333 : vector<8x60xf32>
    %335 = math.tanh %334 : vector<8x60xf32>
    %cst_84 = arith.constant 1.000000e+00 : f32
    %336 = vector.broadcast %cst_84 : f32 to vector<8x60xf32>
    %337 = arith.subf %336, %329 : vector<8x60xf32>
    %338 = arith.mulf %337, %335 : vector<8x60xf32>
    %339 = arith.mulf %329, %274 : vector<8x60xf32>
    %340 = arith.addf %338, %339 : vector<8x60xf32>
    %c4_85 = arith.constant 4 : index
    %c0_86 = arith.constant 0 : index
    %c0_87 = arith.constant 0 : index
    %341 = vector.load %arg7[%c4_85, %c0_86, %c0_87] : memref<8x8x128xf32, #tpu.memory_space<vmem>>, vector<1x8x60xf32>
    %342 = vector.shape_cast %341 : vector<1x8x60xf32> to vector<8x60xf32>
    %343 = vector.shape_cast %310 : vector<8x60xf32> to vector<1x8x60xf32>
    tpu.vector_store %arg7[%c4_85, %c0_86, %c0_87], %343 {strides = array<i32>} : memref<8x8x128xf32, #tpu.memory_space<vmem>>, vector<1x8x60xf32>,
    %c3_88 = arith.constant 3 : index
    %c0_89 = arith.constant 0 : index
    %c60_90 = arith.constant 60 : index
    %344 = vector.load %arg7[%c3_88, %c0_89, %c60_90] : memref<8x8x128xf32, #tpu.memory_space<vmem>>, vector<1x8x60xf32>
    %345 = vector.shape_cast %344 : vector<1x8x60xf32> to vector<8x60xf32>
    %346 = vector.shape_cast %340 : vector<8x60xf32> to vector<1x8x60xf32>
    tpu.vector_store %arg7[%c3_88, %c0_89, %c60_90], %346 {strides = array<i32>} : memref<8x8x128xf32, #tpu.memory_space<vmem>>, vector<1x8x60xf32>,
    %c40_91 = arith.constant 40 : index
    %c0_92 = arith.constant 0 : index
    %347 = vector.load %arg9[%c40_91, %c0_92] : memref<64x768xf32, #tpu.memory_space<vmem>>, vector<8x384xf32>
    %348 = arith.truncf %310 : vector<8x60xf32> to vector<8x60xbf16>
    %cst_93 = arith.constant dense<0.000000e+00> : vector<8x384xf32>
    %349 = tpu.matmul %348, %7, %cst_93 {dimension_numbers = #tpu.dot_dimension_numbers<[1], [0], [0], [1], [0, 0, 1, 1], [], []>} : vector<8x60xbf16>, vector<60x384xbf16>, vector<8x384xf32> -> vector<8x384xf32>
    %350 = vector.extract_strided_slice %347 {offsets = [0, 0], sizes = [8, 60], strides = [1, 1]} : vector<8x384xf32> to vector<8x60xf32>
    %351 = vector.extract_strided_slice %349 {offsets = [0, 0], sizes = [8, 60], strides = [1, 1]} : vector<8x384xf32> to vector<8x60xf32>
    %352 = arith.addf %350, %351 : vector<8x60xf32>
    %353 = arith.negf %352 : vector<8x60xf32>
    %354 = math.exp %353 : vector<8x60xf32>
    %cst_94 = arith.constant 1.000000e+00 : f32
    %355 = vector.broadcast %cst_94 : f32 to vector<8x60xf32>
    %356 = arith.addf %355, %354 : vector<8x60xf32>
    %357 = arith.divf %355, %356 : vector<8x60xf32>
    %358 = vector.extract_strided_slice %347 {offsets = [0, 128], sizes = [8, 60], strides = [1, 1]} : vector<8x384xf32> to vector<8x60xf32>
    %359 = vector.extract_strided_slice %349 {offsets = [0, 128], sizes = [8, 60], strides = [1, 1]} : vector<8x384xf32> to vector<8x60xf32>
    %360 = arith.addf %358, %359 : vector<8x60xf32>
    %361 = arith.negf %360 : vector<8x60xf32>
    %362 = math.exp %361 : vector<8x60xf32>
    %cst_95 = arith.constant 1.000000e+00 : f32
    %363 = vector.broadcast %cst_95 : f32 to vector<8x60xf32>
    %364 = arith.addf %363, %362 : vector<8x60xf32>
    %365 = arith.divf %363, %364 : vector<8x60xf32>
    %366 = vector.extract_strided_slice %347 {offsets = [0, 256], sizes = [8, 60], strides = [1, 1]} : vector<8x384xf32> to vector<8x60xf32>
    %367 = vector.extract_strided_slice %349 {offsets = [0, 256], sizes = [8, 60], strides = [1, 1]} : vector<8x384xf32> to vector<8x60xf32>
    %368 = arith.addf %367, %11 : vector<8x60xf32>
    %369 = arith.mulf %357, %368 : vector<8x60xf32>
    %370 = arith.addf %366, %369 : vector<8x60xf32>
    %371 = math.tanh %370 : vector<8x60xf32>
    %cst_96 = arith.constant 1.000000e+00 : f32
    %372 = vector.broadcast %cst_96 : f32 to vector<8x60xf32>
    %373 = arith.subf %372, %365 : vector<8x60xf32>
    %374 = arith.mulf %373, %371 : vector<8x60xf32>
    %375 = arith.mulf %365, %310 : vector<8x60xf32>
    %376 = arith.addf %374, %375 : vector<8x60xf32>
    %c16_97 = arith.constant 16 : index
    %c384_98 = arith.constant 384 : index
    %377 = vector.load %arg9[%c16_97, %c384_98] : memref<64x768xf32, #tpu.memory_space<vmem>>, vector<8x384xf32>
    %378 = arith.truncf %340 : vector<8x60xf32> to vector<8x60xbf16>
    %cst_99 = arith.constant dense<0.000000e+00> : vector<8x384xf32>
    %379 = tpu.matmul %378, %8, %cst_99 {dimension_numbers = #tpu.dot_dimension_numbers<[1], [0], [0], [1], [0, 0, 1, 1], [], []>} : vector<8x60xbf16>, vector<60x384xbf16>, vector<8x384xf32> -> vector<8x384xf32>
    %380 = vector.extract_strided_slice %377 {offsets = [0, 0], sizes = [8, 60], strides = [1, 1]} : vector<8x384xf32> to vector<8x60xf32>
    %381 = vector.extract_strided_slice %379 {offsets = [0, 0], sizes = [8, 60], strides = [1, 1]} : vector<8x384xf32> to vector<8x60xf32>
    %382 = arith.addf %380, %381 : vector<8x60xf32>
    %383 = arith.negf %382 : vector<8x60xf32>
    %384 = math.exp %383 : vector<8x60xf32>
    %cst_100 = arith.constant 1.000000e+00 : f32
    %385 = vector.broadcast %cst_100 : f32 to vector<8x60xf32>
    %386 = arith.addf %385, %384 : vector<8x60xf32>
    %387 = arith.divf %385, %386 : vector<8x60xf32>
    %388 = vector.extract_strided_slice %377 {offsets = [0, 128], sizes = [8, 60], strides = [1, 1]} : vector<8x384xf32> to vector<8x60xf32>
    %389 = vector.extract_strided_slice %379 {offsets = [0, 128], sizes = [8, 60], strides = [1, 1]} : vector<8x384xf32> to vector<8x60xf32>
    %390 = arith.addf %388, %389 : vector<8x60xf32>
    %391 = arith.negf %390 : vector<8x60xf32>
    %392 = math.exp %391 : vector<8x60xf32>
    %cst_101 = arith.constant 1.000000e+00 : f32
    %393 = vector.broadcast %cst_101 : f32 to vector<8x60xf32>
    %394 = arith.addf %393, %392 : vector<8x60xf32>
    %395 = arith.divf %393, %394 : vector<8x60xf32>
    %396 = vector.extract_strided_slice %377 {offsets = [0, 256], sizes = [8, 60], strides = [1, 1]} : vector<8x384xf32> to vector<8x60xf32>
    %397 = vector.extract_strided_slice %379 {offsets = [0, 256], sizes = [8, 60], strides = [1, 1]} : vector<8x384xf32> to vector<8x60xf32>
    %398 = arith.addf %397, %14 : vector<8x60xf32>
    %399 = arith.mulf %387, %398 : vector<8x60xf32>
    %400 = arith.addf %396, %399 : vector<8x60xf32>
    %401 = math.tanh %400 : vector<8x60xf32>
    %cst_102 = arith.constant 1.000000e+00 : f32
    %402 = vector.broadcast %cst_102 : f32 to vector<8x60xf32>
    %403 = arith.subf %402, %395 : vector<8x60xf32>
    %404 = arith.mulf %403, %401 : vector<8x60xf32>
    %405 = arith.mulf %395, %340 : vector<8x60xf32>
    %406 = arith.addf %404, %405 : vector<8x60xf32>
    %c5_103 = arith.constant 5 : index
    %c0_104 = arith.constant 0 : index
    %c0_105 = arith.constant 0 : index
    %407 = vector.load %arg7[%c5_103, %c0_104, %c0_105] : memref<8x8x128xf32, #tpu.memory_space<vmem>>, vector<1x8x60xf32>
    %408 = vector.shape_cast %407 : vector<1x8x60xf32> to vector<8x60xf32>
    %409 = vector.shape_cast %376 : vector<8x60xf32> to vector<1x8x60xf32>
    tpu.vector_store %arg7[%c5_103, %c0_104, %c0_105], %409 {strides = array<i32>} : memref<8x8x128xf32, #tpu.memory_space<vmem>>, vector<1x8x60xf32>,
    %c2_106 = arith.constant 2 : index
    %c0_107 = arith.constant 0 : index
    %c60_108 = arith.constant 60 : index
    %410 = vector.load %arg7[%c2_106, %c0_107, %c60_108] : memref<8x8x128xf32, #tpu.memory_space<vmem>>, vector<1x8x60xf32>
    %411 = vector.shape_cast %410 : vector<1x8x60xf32> to vector<8x60xf32>
    %412 = vector.shape_cast %406 : vector<8x60xf32> to vector<1x8x60xf32>
    tpu.vector_store %arg7[%c2_106, %c0_107, %c60_108], %412 {strides = array<i32>} : memref<8x8x128xf32, #tpu.memory_space<vmem>>, vector<1x8x60xf32>,
    %c48_109 = arith.constant 48 : index
    %c0_110 = arith.constant 0 : index
    %413 = vector.load %arg9[%c48_109, %c0_110] : memref<64x768xf32, #tpu.memory_space<vmem>>, vector<8x384xf32>
    %414 = arith.truncf %376 : vector<8x60xf32> to vector<8x60xbf16>
    %cst_111 = arith.constant dense<0.000000e+00> : vector<8x384xf32>
    %415 = tpu.matmul %414, %7, %cst_111 {dimension_numbers = #tpu.dot_dimension_numbers<[1], [0], [0], [1], [0, 0, 1, 1], [], []>} : vector<8x60xbf16>, vector<60x384xbf16>, vector<8x384xf32> -> vector<8x384xf32>
    %416 = vector.extract_strided_slice %413 {offsets = [0, 0], sizes = [8, 60], strides = [1, 1]} : vector<8x384xf32> to vector<8x60xf32>
    %417 = vector.extract_strided_slice %415 {offsets = [0, 0], sizes = [8, 60], strides = [1, 1]} : vector<8x384xf32> to vector<8x60xf32>
    %418 = arith.addf %416, %417 : vector<8x60xf32>
    %419 = arith.negf %418 : vector<8x60xf32>
    %420 = math.exp %419 : vector<8x60xf32>
    %cst_112 = arith.constant 1.000000e+00 : f32
    %421 = vector.broadcast %cst_112 : f32 to vector<8x60xf32>
    %422 = arith.addf %421, %420 : vector<8x60xf32>
    %423 = arith.divf %421, %422 : vector<8x60xf32>
    %424 = vector.extract_strided_slice %413 {offsets = [0, 128], sizes = [8, 60], strides = [1, 1]} : vector<8x384xf32> to vector<8x60xf32>
    %425 = vector.extract_strided_slice %415 {offsets = [0, 128], sizes = [8, 60], strides = [1, 1]} : vector<8x384xf32> to vector<8x60xf32>
    %426 = arith.addf %424, %425 : vector<8x60xf32>
    %427 = arith.negf %426 : vector<8x60xf32>
    %428 = math.exp %427 : vector<8x60xf32>
    %cst_113 = arith.constant 1.000000e+00 : f32
    %429 = vector.broadcast %cst_113 : f32 to vector<8x60xf32>
    %430 = arith.addf %429, %428 : vector<8x60xf32>
    %431 = arith.divf %429, %430 : vector<8x60xf32>
    %432 = vector.extract_strided_slice %413 {offsets = [0, 256], sizes = [8, 60], strides = [1, 1]} : vector<8x384xf32> to vector<8x60xf32>
    %433 = vector.extract_strided_slice %415 {offsets = [0, 256], sizes = [8, 60], strides = [1, 1]} : vector<8x384xf32> to vector<8x60xf32>
    %434 = arith.addf %433, %11 : vector<8x60xf32>
    %435 = arith.mulf %423, %434 : vector<8x60xf32>
    %436 = arith.addf %432, %435 : vector<8x60xf32>
    %437 = math.tanh %436 : vector<8x60xf32>
    %cst_114 = arith.constant 1.000000e+00 : f32
    %438 = vector.broadcast %cst_114 : f32 to vector<8x60xf32>
    %439 = arith.subf %438, %431 : vector<8x60xf32>
    %440 = arith.mulf %439, %437 : vector<8x60xf32>
    %441 = arith.mulf %431, %376 : vector<8x60xf32>
    %442 = arith.addf %440, %441 : vector<8x60xf32>
    %c8_115 = arith.constant 8 : index
    %c384_116 = arith.constant 384 : index
    %443 = vector.load %arg9[%c8_115, %c384_116] : memref<64x768xf32, #tpu.memory_space<vmem>>, vector<8x384xf32>
    %444 = arith.truncf %406 : vector<8x60xf32> to vector<8x60xbf16>
    %cst_117 = arith.constant dense<0.000000e+00> : vector<8x384xf32>
    %445 = tpu.matmul %444, %8, %cst_117 {dimension_numbers = #tpu.dot_dimension_numbers<[1], [0], [0], [1], [0, 0, 1, 1], [], []>} : vector<8x60xbf16>, vector<60x384xbf16>, vector<8x384xf32> -> vector<8x384xf32>
    %446 = vector.extract_strided_slice %443 {offsets = [0, 0], sizes = [8, 60], strides = [1, 1]} : vector<8x384xf32> to vector<8x60xf32>
    %447 = vector.extract_strided_slice %445 {offsets = [0, 0], sizes = [8, 60], strides = [1, 1]} : vector<8x384xf32> to vector<8x60xf32>
    %448 = arith.addf %446, %447 : vector<8x60xf32>
    %449 = arith.negf %448 : vector<8x60xf32>
    %450 = math.exp %449 : vector<8x60xf32>
    %cst_118 = arith.constant 1.000000e+00 : f32
    %451 = vector.broadcast %cst_118 : f32 to vector<8x60xf32>
    %452 = arith.addf %451, %450 : vector<8x60xf32>
    %453 = arith.divf %451, %452 : vector<8x60xf32>
    %454 = vector.extract_strided_slice %443 {offsets = [0, 128], sizes = [8, 60], strides = [1, 1]} : vector<8x384xf32> to vector<8x60xf32>
    %455 = vector.extract_strided_slice %445 {offsets = [0, 128], sizes = [8, 60], strides = [1, 1]} : vector<8x384xf32> to vector<8x60xf32>
    %456 = arith.addf %454, %455 : vector<8x60xf32>
    %457 = arith.negf %456 : vector<8x60xf32>
    %458 = math.exp %457 : vector<8x60xf32>
    %cst_119 = arith.constant 1.000000e+00 : f32
    %459 = vector.broadcast %cst_119 : f32 to vector<8x60xf32>
    %460 = arith.addf %459, %458 : vector<8x60xf32>
    %461 = arith.divf %459, %460 : vector<8x60xf32>
    %462 = vector.extract_strided_slice %443 {offsets = [0, 256], sizes = [8, 60], strides = [1, 1]} : vector<8x384xf32> to vector<8x60xf32>
    %463 = vector.extract_strided_slice %445 {offsets = [0, 256], sizes = [8, 60], strides = [1, 1]} : vector<8x384xf32> to vector<8x60xf32>
    %464 = arith.addf %463, %14 : vector<8x60xf32>
    %465 = arith.mulf %453, %464 : vector<8x60xf32>
    %466 = arith.addf %462, %465 : vector<8x60xf32>
    %467 = math.tanh %466 : vector<8x60xf32>
    %cst_120 = arith.constant 1.000000e+00 : f32
    %468 = vector.broadcast %cst_120 : f32 to vector<8x60xf32>
    %469 = arith.subf %468, %461 : vector<8x60xf32>
    %470 = arith.mulf %469, %467 : vector<8x60xf32>
    %471 = arith.mulf %461, %406 : vector<8x60xf32>
    %472 = arith.addf %470, %471 : vector<8x60xf32>
    %c6_121 = arith.constant 6 : index
    %c0_122 = arith.constant 0 : index
    %c0_123 = arith.constant 0 : index
    %473 = vector.load %arg7[%c6_121, %c0_122, %c0_123] : memref<8x8x128xf32, #tpu.memory_space<vmem>>, vector<1x8x60xf32>
    %474 = vector.shape_cast %473 : vector<1x8x60xf32> to vector<8x60xf32>
    %475 = vector.shape_cast %442 : vector<8x60xf32> to vector<1x8x60xf32>
    tpu.vector_store %arg7[%c6_121, %c0_122, %c0_123], %475 {strides = array<i32>} : memref<8x8x128xf32, #tpu.memory_space<vmem>>, vector<1x8x60xf32>,
    %c1_124 = arith.constant 1 : index
    %c0_125 = arith.constant 0 : index
    %c60_126 = arith.constant 60 : index
    %476 = vector.load %arg7[%c1_124, %c0_125, %c60_126] : memref<8x8x128xf32, #tpu.memory_space<vmem>>, vector<1x8x60xf32>
    %477 = vector.shape_cast %476 : vector<1x8x60xf32> to vector<8x60xf32>
    %478 = vector.shape_cast %472 : vector<8x60xf32> to vector<1x8x60xf32>
    tpu.vector_store %arg7[%c1_124, %c0_125, %c60_126], %478 {strides = array<i32>} : memref<8x8x128xf32, #tpu.memory_space<vmem>>, vector<1x8x60xf32>,
    %c56_127 = arith.constant 56 : index
    %c0_128 = arith.constant 0 : index
    %479 = vector.load %arg9[%c56_127, %c0_128] : memref<64x768xf32, #tpu.memory_space<vmem>>, vector<8x384xf32>
    %480 = arith.truncf %442 : vector<8x60xf32> to vector<8x60xbf16>
    %cst_129 = arith.constant dense<0.000000e+00> : vector<8x384xf32>
    %481 = tpu.matmul %480, %7, %cst_129 {dimension_numbers = #tpu.dot_dimension_numbers<[1], [0], [0], [1], [0, 0, 1, 1], [], []>} : vector<8x60xbf16>, vector<60x384xbf16>, vector<8x384xf32> -> vector<8x384xf32>
    %482 = vector.extract_strided_slice %479 {offsets = [0, 0], sizes = [8, 60], strides = [1, 1]} : vector<8x384xf32> to vector<8x60xf32>
    %483 = vector.extract_strided_slice %481 {offsets = [0, 0], sizes = [8, 60], strides = [1, 1]} : vector<8x384xf32> to vector<8x60xf32>
    %484 = arith.addf %482, %483 : vector<8x60xf32>
    %485 = arith.negf %484 : vector<8x60xf32>
    %486 = math.exp %485 : vector<8x60xf32>
    %cst_130 = arith.constant 1.000000e+00 : f32
    %487 = vector.broadcast %cst_130 : f32 to vector<8x60xf32>
    %488 = arith.addf %487, %486 : vector<8x60xf32>
    %489 = arith.divf %487, %488 : vector<8x60xf32>
    %490 = vector.extract_strided_slice %479 {offsets = [0, 128], sizes = [8, 60], strides = [1, 1]} : vector<8x384xf32> to vector<8x60xf32>
    %491 = vector.extract_strided_slice %481 {offsets = [0, 128], sizes = [8, 60], strides = [1, 1]} : vector<8x384xf32> to vector<8x60xf32>
    %492 = arith.addf %490, %491 : vector<8x60xf32>
    %493 = arith.negf %492 : vector<8x60xf32>
    %494 = math.exp %493 : vector<8x60xf32>
    %cst_131 = arith.constant 1.000000e+00 : f32
    %495 = vector.broadcast %cst_131 : f32 to vector<8x60xf32>
    %496 = arith.addf %495, %494 : vector<8x60xf32>
    %497 = arith.divf %495, %496 : vector<8x60xf32>
    %498 = vector.extract_strided_slice %479 {offsets = [0, 256], sizes = [8, 60], strides = [1, 1]} : vector<8x384xf32> to vector<8x60xf32>
    %499 = vector.extract_strided_slice %481 {offsets = [0, 256], sizes = [8, 60], strides = [1, 1]} : vector<8x384xf32> to vector<8x60xf32>
    %500 = arith.addf %499, %11 : vector<8x60xf32>
    %501 = arith.mulf %489, %500 : vector<8x60xf32>
    %502 = arith.addf %498, %501 : vector<8x60xf32>
    %503 = math.tanh %502 : vector<8x60xf32>
    %cst_132 = arith.constant 1.000000e+00 : f32
    %504 = vector.broadcast %cst_132 : f32 to vector<8x60xf32>
    %505 = arith.subf %504, %497 : vector<8x60xf32>
    %506 = arith.mulf %505, %503 : vector<8x60xf32>
    %507 = arith.mulf %497, %442 : vector<8x60xf32>
    %508 = arith.addf %506, %507 : vector<8x60xf32>
    %c0_133 = arith.constant 0 : index
    %c384_134 = arith.constant 384 : index
    %509 = vector.load %arg9[%c0_133, %c384_134] : memref<64x768xf32, #tpu.memory_space<vmem>>, vector<8x384xf32>
    %510 = arith.truncf %472 : vector<8x60xf32> to vector<8x60xbf16>
    %cst_135 = arith.constant dense<0.000000e+00> : vector<8x384xf32>
    %511 = tpu.matmul %510, %8, %cst_135 {dimension_numbers = #tpu.dot_dimension_numbers<[1], [0], [0], [1], [0, 0, 1, 1], [], []>} : vector<8x60xbf16>, vector<60x384xbf16>, vector<8x384xf32> -> vector<8x384xf32>
    %512 = vector.extract_strided_slice %509 {offsets = [0, 0], sizes = [8, 60], strides = [1, 1]} : vector<8x384xf32> to vector<8x60xf32>
    %513 = vector.extract_strided_slice %511 {offsets = [0, 0], sizes = [8, 60], strides = [1, 1]} : vector<8x384xf32> to vector<8x60xf32>
    %514 = arith.addf %512, %513 : vector<8x60xf32>
    %515 = arith.negf %514 : vector<8x60xf32>
    %516 = math.exp %515 : vector<8x60xf32>
    %cst_136 = arith.constant 1.000000e+00 : f32
    %517 = vector.broadcast %cst_136 : f32 to vector<8x60xf32>
    %518 = arith.addf %517, %516 : vector<8x60xf32>
    %519 = arith.divf %517, %518 : vector<8x60xf32>
    %520 = vector.extract_strided_slice %509 {offsets = [0, 128], sizes = [8, 60], strides = [1, 1]} : vector<8x384xf32> to vector<8x60xf32>
    %521 = vector.extract_strided_slice %511 {offsets = [0, 128], sizes = [8, 60], strides = [1, 1]} : vector<8x384xf32> to vector<8x60xf32>
    %522 = arith.addf %520, %521 : vector<8x60xf32>
    %523 = arith.negf %522 : vector<8x60xf32>
    %524 = math.exp %523 : vector<8x60xf32>
    %cst_137 = arith.constant 1.000000e+00 : f32
    %525 = vector.broadcast %cst_137 : f32 to vector<8x60xf32>
    %526 = arith.addf %525, %524 : vector<8x60xf32>
    %527 = arith.divf %525, %526 : vector<8x60xf32>
    %528 = vector.extract_strided_slice %509 {offsets = [0, 256], sizes = [8, 60], strides = [1, 1]} : vector<8x384xf32> to vector<8x60xf32>
    %529 = vector.extract_strided_slice %511 {offsets = [0, 256], sizes = [8, 60], strides = [1, 1]} : vector<8x384xf32> to vector<8x60xf32>
    %530 = arith.addf %529, %14 : vector<8x60xf32>
    %531 = arith.mulf %519, %530 : vector<8x60xf32>
    %532 = arith.addf %528, %531 : vector<8x60xf32>
    %533 = math.tanh %532 : vector<8x60xf32>
    %cst_138 = arith.constant 1.000000e+00 : f32
    %534 = vector.broadcast %cst_138 : f32 to vector<8x60xf32>
    %535 = arith.subf %534, %527 : vector<8x60xf32>
    %536 = arith.mulf %535, %533 : vector<8x60xf32>
    %537 = arith.mulf %527, %472 : vector<8x60xf32>
    %538 = arith.addf %536, %537 : vector<8x60xf32>
    %c7_139 = arith.constant 7 : index
    %c0_140 = arith.constant 0 : index
    %c0_141 = arith.constant 0 : index
    %539 = vector.load %arg7[%c7_139, %c0_140, %c0_141] : memref<8x8x128xf32, #tpu.memory_space<vmem>>, vector<1x8x60xf32>
    %540 = vector.shape_cast %539 : vector<1x8x60xf32> to vector<8x60xf32>
    %541 = vector.shape_cast %508 : vector<8x60xf32> to vector<1x8x60xf32>
    tpu.vector_store %arg7[%c7_139, %c0_140, %c0_141], %541 {strides = array<i32>} : memref<8x8x128xf32, #tpu.memory_space<vmem>>, vector<1x8x60xf32>,
    %c0_142 = arith.constant 0 : index
    %c0_143 = arith.constant 0 : index
    %c60_144 = arith.constant 60 : index
    %542 = vector.load %arg7[%c0_142, %c0_143, %c60_144] : memref<8x8x128xf32, #tpu.memory_space<vmem>>, vector<1x8x60xf32>
    %543 = vector.shape_cast %542 : vector<1x8x60xf32> to vector<8x60xf32>
    %544 = vector.shape_cast %538 : vector<8x60xf32> to vector<1x8x60xf32>
    tpu.vector_store %arg7[%c0_142, %c0_143, %c60_144], %544 {strides = array<i32>} : memref<8x8x128xf32, #tpu.memory_space<vmem>>, vector<1x8x60xf32>,
    %c0_145 = arith.constant 0 : index
    %c0_146 = arith.constant 0 : index
    %c0_147 = arith.constant 0 : index
    %545 = vector.load %arg8[%c0_145, %c0_146, %c0_147] : memref<2x8x60xf32, #tpu.memory_space<vmem>>, vector<1x8x60xf32>
    %546 = vector.shape_cast %545 : vector<1x8x60xf32> to vector<8x60xf32>
    %547 = vector.shape_cast %508 : vector<8x60xf32> to vector<1x8x60xf32>
    tpu.vector_store %arg8[%c0_145, %c0_146, %c0_147], %547 {strides = array<i32>} : memref<2x8x60xf32, #tpu.memory_space<vmem>>, vector<1x8x60xf32>,
    %c1_148 = arith.constant 1 : index
    %c0_149 = arith.constant 0 : index
    %c0_150 = arith.constant 0 : index
    %548 = vector.load %arg8[%c1_148, %c0_149, %c0_150] : memref<2x8x60xf32, #tpu.memory_space<vmem>>, vector<1x8x60xf32>
    %549 = vector.shape_cast %548 : vector<1x8x60xf32> to vector<8x60xf32>
    %550 = vector.shape_cast %538 : vector<8x60xf32> to vector<1x8x60xf32>
    tpu.vector_store %arg8[%c1_148, %c0_149, %c0_150], %550 {strides = array<i32>} : memref<2x8x60xf32, #tpu.memory_space<vmem>>, vector<1x8x60xf32>,
    return
  }
}

</mosaic_0001>

<bundles_post_ra>
// kernel: gru_layer_forward.1
= control target key start
LH: loop header
LB: loop body
LE: loop exit
PB: predicated region body
PF: predicated region fallthrough
CT: control target
= control target key end

     0   :  { %vm810_vm0 = vcmask 1045504   ;;  %vm797_vm1 = vcmask 359424   ;;  %vm1503_vm10 = vcmask 490496   ;;  %s6092_s1 = inlined_call_operand.vmem [shape: bf16[300,768], index: 1, kind: input, shape index: {}]   ;;  %s6093_s0 = inlined_call_operand.vmem [shape: bf16[64,300], index: 0, kind: input, shape index: {}]   ;;  %s6094_s2 = inlined_call_operand.vmem [shape: f32[1,768], index: 2, kind: input, shape index: {}]   ;;  %s6095_s3 = inlined_call_operand.vmem [shape: bf16[60,384], index: 3, kind: input, shape index: {}]   ;;  %s6096_s4 = inlined_call_operand.vmem [shape: bf16[60,384], index: 4, kind: input, shape index: {}]   ;;  %s6097_s5 = inlined_call_operand.vmem [shape: f32[1,60], index: 5, kind: input, shape index: {}]   ;;  %s6098_s6 = inlined_call_operand.vmem [shape: f32[1,60], index: 6, kind: input, shape index: {}]   ;;  %s6099_s7 = inlined_call_operand.vmem [shape: f32[8,8,128], index: 7, kind: output, shape index: {0}]   ;;  %s6100_s8 = inlined_call_operand.vmem [shape: f32[2,8,60], index: 8, kind: output, shape index: {1}]  }
   0x1   :  { %v3364_v0 = vld [vmem:[%s6092_s1 + $0x150] sm:$0xf]  ;;  %v3916_v1 = vld [vmem:[%s6092_s1 + $0x164] sm:$0xf0]  ;;  %v3913_v5 = vld [vmem:[%s6092_s1 + $0x154] sm:$0xf] }
   0x2   :  { %v3556_v2 = vld [vmem:[%s6092_s1 + $0x2d0] sm:$0xf]  ;;  %v3365_v3 = vor.u32 %v3916_v1, %v3364_v0  ;;  %v3964_v4 = vld [vmem:[%s6092_s1 + $0x2e4] sm:$0xf0]  ;;  %v3366_v6 = vld [vmem:[%s6092_s1 + $0x168] sm:$0xf0] }
   0x3   :  { %v3557_v7 = vor.u32 %v3964_v4, %v3556_v2  ;;  %v3369_v8 = vor.u32 %v3913_v5, %v3366_v6  ;;  %v3628_v9 = vld [vmem:[%s6092_s1 + $0x360] sm:$0xf]  ;;  %v3982_v10 = vld [vmem:[%s6092_s1 + $0x374] sm:$0x30]  ;;  %v3907_v18 = vld [vmem:[%s6092_s1 + $0x124] sm:$0xf] }
   0x4   :  { %v3340_v11 = vld [vmem:[%s6092_s1 + $0x120] sm:$0xf]  ;;  %829 = vmatpush.bf16.msra.mxu0 %v3365_v3  ;;  %v3629_v12 = vor.u32 %v3982_v10, %v3628_v9  ;;  %v3910_v13 = vld [vmem:[%s6092_s1 + $0x134] sm:$0xf0]  ;;  %v3342_v19 = vld [vmem:[%s6092_s1 + $0x138] sm:$0xf0] }
   0x5   :  { %v3532_v14 = vld [vmem:[%s6092_s1 + $0x2a0] sm:$0xf]  ;;  %v3958_v15 = vld [vmem:[%s6092_s1 + $0x2b4] sm:$0xf0]  ;;  %858 = vmatpush.bf16.msra.mxu1 %v3557_v7  ;;  %916 = vmatpush.bf16.msra.mxu3 %v3369_v8  ;;  %v3341_v16 = vor.u32 %v3910_v13, %v3340_v11  ;;  %v3604_v20 = vld [vmem:[%s6092_s1 + $0x330] sm:$0xf]  ;;  %v3345_v22 = vor.u32 %v3907_v18, %v3342_v19 }
   0x6   :  { %v3533_v17 = vor.u32 %v3958_v15, %v3532_v14  ;;  %v812_v21 = vsel %vm810_vm0, %v3629_v12, 0  ;;  %v3976_v23 = vld [vmem:[%s6092_s1 + $0x344] sm:$0xf0]  ;;  %v3316_v24 = vld [vmem:[%s6092_s1 + $0xf0] sm:$0xf] }
   0x7   :  { %892 = vmatpush.bf16.msra.mxu2 %v812_v21  ;;  %v3605_v25 = vor.u32 %v3976_v23, %v3604_v20  ;;  %v3904_v26 = vld [vmem:[%s6092_s1 + $0x104] sm:$0xf0]  ;;  %v3508_v27 = vld [vmem:[%s6092_s1 + $0x270] sm:$0xf]  ;;  %v3901_v30 = vld [vmem:[%s6092_s1 + $0xf4] sm:$0xf] }
   0x8   :  { %v3952_v28 = vld [vmem:[%s6092_s1 + $0x284] sm:$0xf0]  ;;  %830 = vmatpush.bf16.msra.mxu0 %v3341_v16  ;;  %v3317_v29 = vor.u32 %v3904_v26, %v3316_v24  ;;  %v3318_v31 = vld [vmem:[%s6092_s1 + $0x108] sm:$0xf0]  ;;  %v3580_v32 = vld [vmem:[%s6092_s1 + $0x300] sm:$0xf] }
   0x9   :  { %859 = vmatpush.bf16.msra.mxu1 %v3533_v17  ;;  %917 = vmatpush.bf16.msra.mxu3 %v3345_v22  ;;  %v3509_v33 = vor.u32 %v3952_v28, %v3508_v27  ;;  %v3321_v34 = vor.u32 %v3901_v30, %v3318_v31  ;;  %v3970_v35 = vld [vmem:[%s6092_s1 + $0x314] sm:$0xf0]  ;;  %v3292_v36 = vld [vmem:[%s6092_s1 + $0xc0] sm:$0xf]  ;;  %v3156_v40 = vld [vmem:[%s6093_s0 + $0x8] sm:$0xf] }
   0xa   :  { %v3898_v37 = vld [vmem:[%s6092_s1 + $0xd4] sm:$0xf0]  ;;  %v3484_v38 = vld [vmem:[%s6092_s1 + $0x240] sm:$0xf]  ;;  %v3581_v41 = vor.u32 %v3970_v35, %v3580_v32  ;;  %v3861_v42 = vld [vmem:[%s6093_s0 + $0x10] sm:$0xf0] }
   0xb   :  { %v3946_v39 = vld [vmem:[%s6092_s1 + $0x254] sm:$0xf0]  ;;  %893 = vmatpush.bf16.msra.mxu2 %v3605_v25  ;;  %v3895_v43 = vld [vmem:[%s6092_s1 + $0xc4] sm:$0xf]  ;;  %v3294_v44 = vld [vmem:[%s6092_s1 + $0xd8] sm:$0xf0]  ;;  %v3293_v45 = vor.u32 %v3898_v37, %v3292_v36  ;;  %v4328_v51 = vor.u32 %v3861_v42, %v3156_v40 }
   0xc   :  { %831 = vmatpush.bf16.msra.mxu0 %v3317_v29  ;;  %v3485_v46 = vor.u32 %v3946_v39, %v3484_v38  ;;  %v3297_v47 = vor.u32 %v3895_v43, %v3294_v44  ;;  %v3268_v48 = vld [vmem:[%s6092_s1 + $0x90] sm:$0xf]  ;;  %v3892_v49 = vld [vmem:[%s6092_s1 + $0xa4] sm:$0xf0]  ;;  %v3889_v53 = vld [vmem:[%s6092_s1 + $0x94] sm:$0xf] }
   0xd   :  { %860 = vmatpush.bf16.msra.mxu1 %v3509_v33  ;;  %918 = vmatpush.bf16.msra.mxu3 %v3321_v34  ;;  %v3460_v50 = vld [vmem:[%s6092_s1 + $0x210] sm:$0xf]  ;;  %v3940_v52 = vld [vmem:[%s6092_s1 + $0x224] sm:$0xf0]  ;;  %v3270_v54 = vld [vmem:[%s6092_s1 + $0xa8] sm:$0xf0]  ;;  %v3269_v55 = vor.u32 %v3892_v49, %v3268_v48 }
   0xe   :  { %v3961_v56 = vld [vmem:[%s6092_s1 + $0x2d4] sm:$0xf]  ;;  %v3558_v57 = vld [vmem:[%s6092_s1 + $0x2e8] sm:$0xf0]  ;;  %v3461_v58 = vor.u32 %v3940_v52, %v3460_v50  ;;  %v3273_v59 = vor.u32 %v3889_v53, %v3270_v54  ;;  %v3244_v60 = vld [vmem:[%s6092_s1 + $0x60] sm:$0xf] }
   0xf   :  { %894 = vmatpush.bf16.msra.mxu2 %v3581_v41  ;;  %v3886_v61 = vld [vmem:[%s6092_s1 + $0x74] sm:$0xf0]  ;;  %v3436_v62 = vld [vmem:[%s6092_s1 + $0x1e0] sm:$0xf]  ;;  %v3561_v63 = vor.u32 %v3961_v56, %v3558_v57  ;;  %v3883_v1 = vld [vmem:[%s6092_s1 + $0x64] sm:$0xf] }
  0x10   :  { %832 = vmatpush.bf16.msra.mxu0 %v3293_v45  ;;  %v3934_v0 = vld [vmem:[%s6092_s1 + $0x1f4] sm:$0xf0]  ;;  %v3246_v2 = vld [vmem:[%s6092_s1 + $0x78] sm:$0xf0]  ;;  %v3245_v3 = vor.u32 %v3886_v61, %v3244_v60  ;;  %v3220_v4 = vld [vmem:[%s6092_s1 + $0x30] sm:$0xf] }
  0x11   :  { %861 = vmatpush.bf16.msra.mxu1 %v3485_v46  ;;  %919 = vmatpush.bf16.msra.mxu3 %v3297_v47  ;;  %v3437_v5 = vor.u32 %v3934_v0, %v3436_v62  ;;  %v3249_v6 = vor.u32 %v3883_v1, %v3246_v2  ;;  %v3880_v7 = vld [vmem:[%s6092_s1 + $0x44] sm:$0xf0]  ;;  %v3412_v8 = vld [vmem:[%s6092_s1 + $0x1b0] sm:$0xf]  ;;  %v3877_v10 = vld [vmem:[%s6092_s1 + $0x34] sm:$0xf] }
  0x12   :  { %3650 = vmatmul.msk.bf16.vlgmr.msra.gmra.mxu2 %vm797_vm1, %v4328_v51  ;;  %v3928_v9 = vld [vmem:[%s6092_s1 + $0x1c4] sm:$0xf0]  ;;  %v3222_v11 = vld [vmem:[%s6092_s1 + $0x48] sm:$0xf0]  ;;  %v3955_v12 = vld [vmem:[%s6092_s1 + $0x2a4] sm:$0xf]  ;;  %v3221_v15 = vor.u32 %v3880_v7, %v3220_v4 }
  0x13   :  { %945 = vmatpush.bf16.msrb.mxu2 %v3561_v63  ;;  %v3196_v13 = vld [vmem:[%s6092_s1] sm:$0xf]  ;;  %v3534_v14 = vld [vmem:[%s6092_s1 + $0x2b8] sm:$0xf0]  ;;  %v3874_v16 = vld [vmem:[%s6092_s1 + $0x14] sm:$0xf0]  ;;  %v3413_v20 = vor.u32 %v3928_v9, %v3412_v8  ;;  %v3225_v21 = vor.u32 %v3877_v10, %v3222_v11 }
  0x14   :  { %833 = vmatpush.bf16.msra.mxu0 %v3269_v55  ;;  %v3537_v17 = vor.u32 %v3955_v12, %v3534_v14  ;;  %v3979_v18 = vld [vmem:[%s6092_s1 + $0x364] sm:$0xf]  ;;  %v3630_v19 = vld [vmem:[%s6092_s1 + $0x378] sm:$0x30]  ;;  %v3388_v22 = vld [vmem:[%s6092_s1 + $0x180] sm:$0xf]  ;;  %v3197_v33 = vor.u32 %v3874_v16, %v3196_v13 }
  0x15   :  { %862 = vmatpush.bf16.msra.mxu1 %v3461_v58  ;;  %920 = vmatpush.bf16.msra.mxu3 %v3273_v59  ;;  %v3949_v23 = vld [vmem:[%s6092_s1 + $0x274] sm:$0xf]  ;;  %v3510_v24 = vld [vmem:[%s6092_s1 + $0x288] sm:$0xf0]  ;;  %v3922_v25 = vld [vmem:[%s6092_s1 + $0x194] sm:$0xf0]  ;;  %v3633_v32 = vor.u32 %v3979_v18, %v3630_v19 }
  0x16   :  { %v3871_v26 = vld [vmem:[%s6092_s1 + $0x4] sm:$0xf]  ;;  %v3198_v27 = vld [vmem:[%s6092_s1 + $0x18] sm:$0xf0]  ;;  %v3513_v28 = vor.u32 %v3949_v23, %v3510_v24  ;;  %v3168_v29 = vld [vmem:[%s6093_s0 + $0x20] sm:$0xf]  ;;  %v3389_v37 = vor.u32 %v3922_v25, %v3388_v22 }
  0x17   :  { %946 = vmatpush.bf16.msrb.mxu2 %v3537_v17  ;;  %v3864_v30 = vld [vmem:[%s6093_s0 + $0x28] sm:$0xf0]  ;;  %v3148_v31 = vld [vmem:[%s6093_s0] sm:$0xf]  ;;  %v3372_v35 = vld [vmem:[%s6092_s1 + $0x158] sm:$0xf]  ;;  %v3201_v38 = vor.u32 %v3871_v26, %v3198_v27 }
  0x18   :  { %834 = vmatpush.bf16.msra.mxu0 %v3245_v3  ;;  %v3860_v34 = vld [vmem:[%s6093_s0 + $0x8] sm:$0xf0]  ;;  %v3917_v36 = vld [vmem:[%s6092_s1 + $0x16c] sm:$0xf0]  ;;  %v3859_v39 = vld [vmem:[%s6093_s0 + $0x4] sm:$0xf]  ;;  %v4446_v42 = vor.u32 %v3864_v30, %v3168_v29 }
  0x19   :  { %863 = vmatpush.bf16.msra.mxu1 %v3437_v5  ;;  %921 = vmatpush.bf16.msra.mxu3 %v3249_v6  ;;  %v3150_v40 = vld [vmem:[%s6093_s0 + $0xc] sm:$0xf0]  ;;  %v3564_v41 = vld [vmem:[%s6092_s1 + $0x2d8] sm:$0xf]  ;;  %v3943_v44 = vld [vmem:[%s6092_s1 + $0x244] sm:$0xf]  ;;  %v4457_v46 = vor.u32 %v3860_v34, %v3148_v31  ;;  %v3373_v48 = vor.u32 %v3917_v36, %v3372_v35 }
  0x1a   :  { %v3965_v43 = vld [vmem:[%s6092_s1 + $0x2ec] sm:$0xf0]  ;;  %v3486_v45 = vld [vmem:[%s6092_s1 + $0x258] sm:$0xf0]  ;;  %v815_v47 = vsel %vm810_vm0, %v3633_v32, 0  ;;  %v4463_v50 = vor.u32 %v3859_v39, %v3150_v40 }
  0x1b   :  { %947 = vmatpush.bf16.msrb.mxu2 %v3513_v28  ;;  %v3973_v49 = vld [vmem:[%s6092_s1 + $0x334] sm:$0xf]  ;;  %v3348_v52 = vld [vmem:[%s6092_s1 + $0x128] sm:$0xf]  ;;  %v3911_v53 = vld [vmem:[%s6092_s1 + $0x13c] sm:$0xf0]  ;;  %v3565_v55 = vor.u32 %v3965_v43, %v3564_v41  ;;  %v3489_v57 = vor.u32 %v3943_v44, %v3486_v45 }
  0x1c   :  { %835 = vmatpush.bf16.msra.mxu0 %v3221_v15  ;;  %v3606_v54 = vld [vmem:[%s6092_s1 + $0x348] sm:$0xf0]  ;;  %v3540_v56 = vld [vmem:[%s6092_s1 + $0x2a8] sm:$0xf]  ;;  %v3959_v58 = vld [vmem:[%s6092_s1 + $0x2bc] sm:$0xf0]  ;;  %v3349_v62 = vor.u32 %v3911_v53, %v3348_v52 }
  0x1d   :  { %864 = vmatpush.bf16.msra.mxu1 %v3413_v20  ;;  %922 = vmatpush.bf16.msra.mxu3 %v3225_v21  ;;  %v3609_v59 = vor.u32 %v3973_v49, %v3606_v54  ;;  %v3937_v60 = vld [vmem:[%s6092_s1 + $0x214] sm:$0xf]  ;;  %v3462_v61 = vld [vmem:[%s6092_s1 + $0x228] sm:$0xf0]  ;;  %v3324_v63 = vld [vmem:[%s6092_s1 + $0xf8] sm:$0xf]  ;;  %v3541_v1 = vor.u32 %v3959_v58, %v3540_v56 }
  0x1e   :  { %v3905_v0 = vld [vmem:[%s6092_s1 + $0x10c] sm:$0xf0]  ;;  %v3516_v2 = vld [vmem:[%s6092_s1 + $0x278] sm:$0xf]  ;;  %v3465_v3 = vor.u32 %v3937_v60, %v3462_v61  ;;  %v3931_v5 = vld [vmem:[%s6092_s1 + $0x1e4] sm:$0xf] }
  0x1f   :  { %948 = vmatpush.bf16.msrb.mxu2 %v3489_v57  ;;  %v3953_v4 = vld [vmem:[%s6092_s1 + $0x28c] sm:$0xf0]  ;;  %v3438_v6 = vld [vmem:[%s6092_s1 + $0x1f8] sm:$0xf0]  ;;  %v3325_v7 = vor.u32 %v3905_v0, %v3324_v63  ;;  %v3967_v8 = vld [vmem:[%s6092_s1 + $0x304] sm:$0xf] }
  0x20   :  { %836 = vmatpush.bf16.msra.mxu0 %v3197_v33  ;;  %v3300_v9 = vld [vmem:[%s6092_s1 + $0xc8] sm:$0xf]  ;;  %v3899_v10 = vld [vmem:[%s6092_s1 + $0xdc] sm:$0xf0]  ;;  %v3582_v11 = vld [vmem:[%s6092_s1 + $0x318] sm:$0xf0]  ;;  %v3517_v12 = vor.u32 %v3953_v4, %v3516_v2  ;;  %v3441_v14 = vor.u32 %v3931_v5, %v3438_v6 }
  0x21   :  { %865 = vmatpush.bf16.msra.mxu1 %v3389_v37  ;;  %923 = vmatpush.bf16.msra.mxu3 %v3201_v38  ;;  %v3492_v13 = vld [vmem:[%s6092_s1 + $0x248] sm:$0xf]  ;;  %v3585_v15 = vor.u32 %v3967_v8, %v3582_v11  ;;  %v3947_v16 = vld [vmem:[%s6092_s1 + $0x25c] sm:$0xf0]  ;;  %v3925_v17 = vld [vmem:[%s6092_s1 + $0x1b4] sm:$0xf]  ;;  %v3301_v22 = vor.u32 %v3899_v10, %v3300_v9 }
  0x22   :  { %3651 = vmatmul.msk.bf16.gmra.mxu2 %vm797_vm1, %v4446_v42  ;;  %v3414_v18 = vld [vmem:[%s6092_s1 + $0x1c8] sm:$0xf0]  ;;  %v3180_v19 = vld [vmem:[%s6093_s0 + $0x38] sm:$0xf]  ;;  %v3867_v20 = vld [vmem:[%s6093_s0 + $0x40] sm:$0xf0]  ;;  %v3493_v28 = vor.u32 %v3947_v16, %v3492_v13 }
  0x23   :  { %837 = vmatmul.bf16.vlgmr.msra.gmra.mxu0 %v4457_v46  ;;  %949 = vmatpush.bf16.msrb.mxu2 %v3465_v3  ;;  %v3160_v21 = vld [vmem:[%s6093_s0 + $0x18] sm:$0xf]  ;;  %v3863_v23 = vld [vmem:[%s6093_s0 + $0x20] sm:$0xf0]  ;;  %v3893_v25 = vld [vmem:[%s6092_s1 + $0xac] sm:$0xf0]  ;;  %v3417_v30 = vor.u32 %v3925_v17, %v3414_v18  ;;  %v4560_v31 = vor.u32 %v3867_v20, %v3180_v19 }
  0x24   :  { %979 = vmatpush.bf16.msrb.mxu0 %v815_v47  ;;  %866 = vmatmul.bf16.vlgmr.msra.gmra.mxu1 %v4463_v50  ;;  %v3276_v24 = vld [vmem:[%s6092_s1 + $0x98] sm:$0xf]  ;;  %v3862_v26 = vld [vmem:[%s6093_s0 + $0x1c] sm:$0xf]  ;;  %v3162_v27 = vld [vmem:[%s6093_s0 + $0x24] sm:$0xf0]  ;;  %v4571_v35 = vor.u32 %v3863_v23, %v3160_v21 }
  0x25   :  { %1003 = vmatpush.bf16.msrb.mxu1 %v3373_v48  ;;  %924 = vmatmul.bf16.vlgmr.msra.gmra.mxu3 %v4457_v46  ;;  %v3468_v29 = vld [vmem:[%s6092_s1 + $0x218] sm:$0xf]  ;;  %v3941_v32 = vld [vmem:[%s6092_s1 + $0x22c] sm:$0xf0]  ;;  %v3919_v33 = vld [vmem:[%s6092_s1 + $0x184] sm:$0xf]  ;;  %v3277_v36 = vor.u32 %v3893_v25, %v3276_v24  ;;  %v4573_v37 = vor.u32 %v3862_v26, %v3162_v27 }
  0x26   :  { %1032 = vmatpush.bf16.msrb.mxu3 %v3565_v55  ;;  %v3390_v34 = vld [vmem:[%s6092_s1 + $0x198] sm:$0xf0]  ;;  %v3252_v38 = vld [vmem:[%s6092_s1 + $0x68] sm:$0xf]  ;;  %v3887_v39 = vld [vmem:[%s6092_s1 + $0x7c] sm:$0xf0]  ;;  %v3469_v40 = vor.u32 %v3941_v32, %v3468_v29 }
  0x27   :  { %950 = vmatpush.bf16.msrb.mxu2 %v3441_v14  ;;  %v3393_v41 = vor.u32 %v3919_v33, %v3390_v34  ;;  %v3444_v43 = vld [vmem:[%s6092_s1 + $0x1e8] sm:$0xf]  ;;  %v3935_v44 = vld [vmem:[%s6092_s1 + $0x1fc] sm:$0xf0]  ;;  %v3253_v45 = vor.u32 %v3887_v39, %v3252_v38  ;;  %v3228_v47 = vld [vmem:[%s6092_s1 + $0x38] sm:$0xf] }
  0x28   :  { %980 = vmatpush.bf16.msrb.mxu0 %v3609_v59  ;;  %v3881_v48 = vld [vmem:[%s6092_s1 + $0x4c] sm:$0xf0]  ;;  %v3445_v49 = vor.u32 %v3935_v44, %v3444_v43  ;;  %v3636_v52 = vld [vmem:[%s6092_s1 + $0x368] sm:$0xf]  ;;  %v3983_v53 = vld [vmem:[%s6092_s1 + $0x37c] sm:$0x30] }
  0x29   :  { %1004 = vmatpush.bf16.msrb.mxu1 %v3349_v62  ;;  %v3420_v54 = vld [vmem:[%s6092_s1 + $0x1b8] sm:$0xf]  ;;  %v3929_v55 = vld [vmem:[%s6092_s1 + $0x1cc] sm:$0xf0]  ;;  %v3637_v56 = vor.u32 %v3983_v53, %v3636_v52  ;;  %v3229_v57 = vor.u32 %v3881_v48, %v3228_v47  ;;  %v3204_v59 = vld [vmem:[%s6092_s1 + $0x8] sm:$0xf] }
  0x2a   :  { %1033 = vmatpush.bf16.msrb.mxu3 %v3541_v1  ;;  %v3875_v60 = vld [vmem:[%s6092_s1 + $0x1c] sm:$0xf0]  ;;  %v3421_v61 = vor.u32 %v3929_v55, %v3420_v54  ;;  %v3396_v62 = vld [vmem:[%s6092_s1 + $0x188] sm:$0xf]  ;;  %v3192_v0 = vld [vmem:[%s6093_s0 + $0x50] sm:$0xf] }
  0x2b   :  { %951 = vmatpush.bf16.msrb.mxu2 %v3417_v30  ;;  %v818_v58 = vsel %vm810_vm0, %v3637_v56, 0  ;;  %v3923_v63 = vld [vmem:[%s6092_s1 + $0x19c] sm:$0xf0]  ;;  %v3870_v1 = vld [vmem:[%s6093_s0 + $0x58] sm:$0xf0]  ;;  %v3205_v2 = vor.u32 %v3875_v60, %v3204_v59 }
  0x2c   :  { %981 = vmatpush.bf16.msrb.mxu0 %v3585_v15  ;;  %v3172_v3 = vld [vmem:[%s6093_s0 + $0x30] sm:$0xf]  ;;  %v3866_v4 = vld [vmem:[%s6093_s0 + $0x38] sm:$0xf0]  ;;  %v3865_v5 = vld [vmem:[%s6093_s0 + $0x34] sm:$0xf]  ;;  %v4641_v8 = vor.u32 %v3870_v1, %v3192_v0 }
  0x2d   :  { %1005 = vmatpush.bf16.msrb.mxu1 %v3325_v7  ;;  %v3174_v6 = vld [vmem:[%s6093_s0 + $0x3c] sm:$0xf0]  ;;  %v3397_v7 = vor.u32 %v3923_v63, %v3396_v62  ;;  %v4643_v9 = vor.u32 %v3866_v4, %v3172_v3  ;;  %v3914_v11 = vld [vmem:[%s6092_s1 + $0x15c] sm:$0xf]  ;;  %v3566_v15 = vld [vmem:[%s6092_s1 + $0x2f0] sm:$0xf0] }
  0x2e   :  { %1034 = vmatpush.bf16.msrb.mxu3 %v3517_v12  ;;  %v4645_v10 = vor.u32 %v3865_v5, %v3174_v6  ;;  %v3374_v12 = vld [vmem:[%s6092_s1 + $0x170] sm:$0xf0]  ;;  %v3962_v13 = vld [vmem:[%s6092_s1 + $0x2dc] sm:$0xf]  ;;  %v3980_v16 = vld [vmem:[%s6092_s1 + $0x36c] sm:$0xf] }
  0x2f   :  { %952 = vmatpush.bf16.msrb.mxu2 %v3393_v41  ;;  %v3377_v14 = vor.u32 %v3914_v11, %v3374_v12  ;;  %v3638_v17 = vld [vmem:[%s6092_s1 + $0x380] sm:$0x30]  ;;  %v3569_v18 = vor.u32 %v3962_v13, %v3566_v15  ;;  %v3908_v20 = vld [vmem:[%s6092_s1 + $0x12c] sm:$0xf]  ;;  %v3184_v27 = vld [vmem:[%s6093_s0 + $0x48] sm:$0xf] }
  0x30   :  { %v3641_v19 = vor.u32 %v3980_v16, %v3638_v17  ;;  %v3350_v21 = vld [vmem:[%s6092_s1 + $0x140] sm:$0xf0]  ;;  %v3868_v29 = vld [vmem:[%s6093_s0 + $0x4c] sm:$0xf]  ;;  %v3186_v30 = vld [vmem:[%s6093_s0 + $0x54] sm:$0xf0] }
  0x31   :  { %1006 = vmatpush.bf16.msrb.mxu1 %v3301_v22  ;;  %v3956_v22 = vld [vmem:[%s6092_s1 + $0x2ac] sm:$0xf]  ;;  %1090 = vmatpush.bf16.msra.mxu0 %v3377_v14  ;;  %v3353_v23 = vor.u32 %v3908_v20, %v3350_v21  ;;  %v3542_v24 = vld [vmem:[%s6092_s1 + $0x2c0] sm:$0xf0]  ;;  %v4697_v33 = vor.u32 %v3868_v29, %v3186_v30  ;;  %v3612_v34 = vld [vmem:[%s6092_s1 + $0x338] sm:$0xf] }
  0x32   :  { %1035 = vmatpush.bf16.msrb.mxu3 %v3493_v28  ;;  %3652 = vmatmul.msk.bf16.gmra.mxu2 %vm797_vm1, %v4560_v31  ;;  %v821_v25 = vsel %vm810_vm0, %v3641_v19, 0  ;;  %v3545_v26 = vor.u32 %v3956_v22, %v3542_v24  ;;  %v3869_v28 = vld [vmem:[%s6093_s0 + $0x50] sm:$0xf0]  ;;  %v3902_v39 = vld [vmem:[%s6092_s1 + $0xfc] sm:$0xf] }
  0x33   :  { %842 = vmatmul.bf16.gmra.mxu0 %v4571_v35  ;;  %1066 = vmatpush.bf16.msra.mxu2 %v818_v58  ;;  %v4695_v32 = vor.u32 %v3869_v28, %v3184_v27  ;;  %v3950_v41 = vld [vmem:[%s6092_s1 + $0x27c] sm:$0xf]  ;;  %v3518_v44 = vld [vmem:[%s6092_s1 + $0x290] sm:$0xf0]  ;;  %v3302_v47 = vld [vmem:[%s6092_s1 + $0xe0] sm:$0xf0] }
  0x34   :  { %871 = vmatmul.bf16.gmra.mxu1 %v4573_v37  ;;  %v3521_v48 = vor.u32 %v3950_v41, %v3518_v44  ;;  %v3614_v52 = vld [vmem:[%s6092_s1 + $0x350] sm:$0xf0]  ;;  %v3944_v53 = vld [vmem:[%s6092_s1 + $0x24c] sm:$0xf]  ;;  %v3494_v56 = vld [vmem:[%s6092_s1 + $0x260] sm:$0xf0] }
  0x35   :  { %1007 = vmatpush.bf16.msrb.mxu1 %v3277_v36  ;;  %929 = vmatmul.bf16.gmra.mxu3 %v4571_v35  ;;  %v3977_v36 = vld [vmem:[%s6092_s1 + $0x34c] sm:$0xf0]  ;;  %v3890_v58 = vld [vmem:[%s6092_s1 + $0x9c] sm:$0xf]  ;;  %v3278_v59 = vld [vmem:[%s6092_s1 + $0xb0] sm:$0xf0] }
  0x36   :  { %1036 = vmatpush.bf16.msrb.mxu3 %v3469_v40  ;;  %1091 = vmatpush.bf16.msra.mxu0 %v3353_v23  ;;  %v3613_v38 = vor.u32 %v3977_v36, %v3612_v34  ;;  %v3326_v40 = vld [vmem:[%s6092_s1 + $0x110] sm:$0xf0]  ;;  %v3588_v60 = vld [vmem:[%s6092_s1 + $0x308] sm:$0xf]  ;;  %v3971_v62 = vld [vmem:[%s6092_s1 + $0x31c] sm:$0xf0] }
  0x37   :  { %v3329_v43 = vor.u32 %v3902_v39, %v3326_v40  ;;  %v3938_v63 = vld [vmem:[%s6092_s1 + $0x21c] sm:$0xf]  ;;  %v3470_v0 = vld [vmem:[%s6092_s1 + $0x230] sm:$0xf0]  ;;  %v3589_v1 = vor.u32 %v3971_v62, %v3588_v60  ;;  %v3884_v3 = vld [vmem:[%s6092_s1 + $0x6c] sm:$0xf] }
  0x38   :  { %1067 = vmatpush.bf16.msra.mxu2 %v3613_v38  ;;  %v3254_v4 = vld [vmem:[%s6092_s1 + $0x80] sm:$0xf0]  ;;  %v3932_v5 = vld [vmem:[%s6092_s1 + $0x1ec] sm:$0xf]  ;;  %v3878_v15 = vld [vmem:[%s6092_s1 + $0x3c] sm:$0xf] }
  0x39   :  { %1008 = vmatpush.bf16.msrb.mxu1 %v3253_v45  ;;  %v3896_v45 = vld [vmem:[%s6092_s1 + $0xcc] sm:$0xf]  ;;  %v3257_v6 = vor.u32 %v3884_v3, %v3254_v4  ;;  %v3590_v13 = vld [vmem:[%s6092_s1 + $0x320] sm:$0xf0]  ;;  %v3230_v16 = vld [vmem:[%s6092_s1 + $0x50] sm:$0xf0] }
  0x3a   :  { %1037 = vmatpush.bf16.msrb.mxu3 %v3445_v49  ;;  %v3974_v49 = vld [vmem:[%s6092_s1 + $0x33c] sm:$0xf]  ;;  %1092 = vmatpush.bf16.msra.mxu0 %v3329_v43  ;;  %v3305_v54 = vor.u32 %v3896_v45, %v3302_v47  ;;  %v3968_v12 = vld [vmem:[%s6092_s1 + $0x30c] sm:$0xf]  ;;  %v3422_v19 = vld [vmem:[%s6092_s1 + $0x1d0] sm:$0xf0] }
  0x3b   :  { %v3617_v55 = vor.u32 %v3974_v49, %v3614_v52  ;;  %v3593_v14 = vor.u32 %v3968_v12, %v3590_v13  ;;  %v3926_v17 = vld [vmem:[%s6092_s1 + $0x1bc] sm:$0xf]  ;;  %v3872_v21 = vld [vmem:[%s6092_s1 + $0xc] sm:$0xf]  ;;  %v3206_v22 = vld [vmem:[%s6092_s1 + $0x20] sm:$0xf0] }
  0x3c   :  { %1068 = vmatpush.bf16.msra.mxu2 %v3589_v1  ;;  %v3425_v20 = vor.u32 %v3926_v17, %v3422_v19  ;;  %v3380_v23 = vld [vmem:[%s6092_s1 + $0x160] sm:$0xf]  ;;  %v3209_v24 = vor.u32 %v3872_v21, %v3206_v22  ;;  %v3398_v27 = vld [vmem:[%s6092_s1 + $0x1a0] sm:$0xf0]  ;;  %v3356_v30 = vld [vmem:[%s6092_s1 + $0x130] sm:$0xf] }
  0x3d   :  { %1009 = vmatpush.bf16.msrb.mxu1 %v3229_v57  ;;  %v3497_v57 = vor.u32 %v3944_v53, %v3494_v56  ;;  %v3912_v34 = vld [vmem:[%s6092_s1 + $0x144] sm:$0xf0]  ;;  %v3572_v36 = vld [vmem:[%s6092_s1 + $0x2e0] sm:$0xf]  ;;  %v3966_v39 = vld [vmem:[%s6092_s1 + $0x2f4] sm:$0xf0] }
  0x3e   :  { %1038 = vmatpush.bf16.msrb.mxu3 %v3421_v61  ;;  %1093 = vmatpush.bf16.msra.mxu0 %v3305_v54  ;;  %v3281_v61 = vor.u32 %v3890_v58, %v3278_v59  ;;  %v3357_v38 = vor.u32 %v3912_v34, %v3356_v30  ;;  %v3573_v40 = vor.u32 %v3966_v39, %v3572_v36  ;;  %v3644_v41 = vld [vmem:[%s6092_s1 + $0x370] sm:$0xf]  ;;  %v3984_v43 = vld [vmem:[%s6092_s1 + $0x384] sm:$0x30]  ;;  %v3915_v44 = vld [vmem:[%s6092_s1 + $0x164] sm:$0xf] }
  0x3f   :  { %v3645_v45 = vor.u32 %v3984_v43, %v3644_v41  ;;  %v3382_v47 = vld [vmem:[%s6092_s1 + $0x178] sm:$0xf0]  ;;  %v3332_v52 = vld [vmem:[%s6092_s1 + $0x100] sm:$0xf]  ;;  %v3906_v53 = vld [vmem:[%s6092_s1 + $0x114] sm:$0xf0] }
  0x40   :  { %v3548_v54 = vld [vmem:[%s6092_s1 + $0x2b0] sm:$0xf]  ;;  %v3960_v56 = vld [vmem:[%s6092_s1 + $0x2c4] sm:$0xf0]  ;;  %v3909_v58 = vld [vmem:[%s6092_s1 + $0x134] sm:$0xf] }
  0x41   :  { %1010 = vmatpush.bf16.msrb.mxu1 %v3205_v2  ;;  %v3473_v2 = vor.u32 %v3938_v63, %v3470_v0  ;;  %v824_v49 = vsel %vm810_vm0, %v3645_v45, 0  ;;  %v3358_v59 = vld [vmem:[%s6092_s1 + $0x148] sm:$0xf0]  ;;  %v3308_v62 = vld [vmem:[%s6092_s1 + $0xd0] sm:$0xf] }
  0x42   :  { %1039 = vmatpush.bf16.msrb.mxu3 %v3397_v7  ;;  %3653 = vmatmul.msk.bf16.gmra.mxu2 %vm797_vm1, %v4641_v8  ;;  %v3446_v7 = vld [vmem:[%s6092_s1 + $0x200] sm:$0xf0]  ;;  %v3361_v60 = vor.u32 %v3909_v58, %v3358_v59  ;;  %v3900_v63 = vld [vmem:[%s6092_s1 + $0xe4] sm:$0xf0]  ;;  %v3524_v0 = vld [vmem:[%s6092_s1 + $0x280] sm:$0xf] }
  0x43   :  { %847 = vmatmul.bf16.gmra.mxu0 %v4643_v9  ;;  %v3449_v11 = vor.u32 %v3932_v5, %v3446_v7  ;;  %v3309_v1 = vor.u32 %v3900_v63, %v3308_v62  ;;  %v3903_v4 = vld [vmem:[%s6092_s1 + $0x104] sm:$0xf]  ;;  %v3334_v5 = vld [vmem:[%s6092_s1 + $0x118] sm:$0xf0]  ;;  %v3284_v13 = vld [vmem:[%s6092_s1 + $0xa0] sm:$0xf] }
  0x44   :  { %876 = vmatmul.bf16.gmra.mxu1 %v4645_v10  ;;  %1094 = vmatpush.bf16.msra.mxu0 %v3281_v61  ;;  %v3337_v7 = vor.u32 %v3903_v4, %v3334_v5  ;;  %v3948_v17 = vld [vmem:[%s6092_s1 + $0x264] sm:$0xf0]  ;;  %v3978_v19 = vld [vmem:[%s6092_s1 + $0x354] sm:$0xf0]  ;;  %v3891_v45 = vld [vmem:[%s6092_s1 + $0xa4] sm:$0xf] }
  0x45   :  { %934 = vmatmul.bf16.gmra.mxu3 %v4643_v9  ;;  %1119 = vmatpush.bf16.msra.mxu1 %v3569_v18  ;;  %v3233_v18 = vor.u32 %v3878_v15, %v3230_v16  ;;  %v3500_v15 = vld [vmem:[%s6092_s1 + $0x250] sm:$0xf]  ;;  %v3888_v30 = vld [vmem:[%s6092_s1 + $0x84] sm:$0xf0]  ;;  %v3942_v39 = vld [vmem:[%s6092_s1 + $0x234] sm:$0xf0] }
  0x46   :  { %1153 = vmatpush.bf16.msra.mxu3 %v821_v25  ;;  %v3918_v25 = vld [vmem:[%s6092_s1 + $0x174] sm:$0xf0]  ;;  %v3876_v58 = vld [vmem:[%s6092_s1 + $0x24] sm:$0xf0]  ;;  %v3885_v5 = vld [vmem:[%s6092_s1 + $0x74] sm:$0xf] }
  0x47   :  { %v3381_v28 = vor.u32 %v3918_v25, %v3380_v23  ;;  %v3897_v23 = vld [vmem:[%s6092_s1 + $0xd4] sm:$0xf] }
  0x48   :  { %1095 = vmatpush.bf16.msra.mxu0 %v3257_v6  ;;  %v4890_v6 = vld [vmem:[%s6094_s2] sm:$0x3f] }
  0x49   :  { %1120 = vmatpush.bf16.msra.mxu1 %v3545_v26  ;;  %v3920_v26 = vld [vmem:[%s6092_s1 + $0x18c] sm:$0xf] }
  0x4a   :  { %1154 = vmatpush.bf16.msra.mxu3 %v3617_v55  ;;  %v3401_v29 = vor.u32 %v3920_v26, %v3398_v27  ;;  %v3333_v55 = vor.u32 %v3906_v53, %v3332_v52 }
  0x4c   :  { %1096 = vmatpush.bf16.msra.mxu0 %v3233_v18  ;;  %v3620_v18 = vld [vmem:[%s6092_s1 + $0x340] sm:$0xf] }
  0x4d   :  { %1121 = vmatpush.bf16.msra.mxu1 %v3521_v48  ;;  %v3385_v48 = vor.u32 %v3915_v44, %v3382_v47  ;;  %v3621_v21 = vor.u32 %v3978_v19, %v3620_v18  ;;  %v3286_v47 = vld [vmem:[%s6092_s1 + $0xb8] sm:$0xf0] }
  0x4e   :  { %1155 = vmatpush.bf16.msra.mxu3 %v3593_v14  ;;  %v3894_v14 = vld [vmem:[%s6092_s1 + $0xb4] sm:$0xf0]  ;;  %v3289_v53 = vor.u32 %v3891_v45, %v3286_v47  ;;  %v3963_v45 = vld [vmem:[%s6092_s1 + $0x2e4] sm:$0xf] }
  0x4f   :  { %v3285_v16 = vor.u32 %v3894_v14, %v3284_v13 }
  0x50   :  { %1097 = vmatpush.bf16.msra.mxu0 %v3209_v24  ;;  %v3310_v24 = vld [vmem:[%s6092_s1 + $0xe8] sm:$0xf0] }
  0x51   :  { %1122 = vmatpush.bf16.msra.mxu1 %v3497_v57  ;;  %v3549_v57 = vor.u32 %v3960_v56, %v3548_v54  ;;  %v3313_v27 = vor.u32 %v3897_v23, %v3310_v24  ;;  %v3882_v54 = vld [vmem:[%s6092_s1 + $0x54] sm:$0xf0] }
  0x52   :  { %953 = vmatmul.bf16.vlgmr.msrb.gmra.mxu2 %v4463_v50 }
  0x53   :  { %852 = vmatmul.bf16.gmra.mxu0 %v4695_v32  ;;  %1177 = vmatpush.bf16.msrb.mxu2 %v3381_v28 }
  0x54   :  { %881 = vmatmul.bf16.gmra.mxu1 %v4697_v33 }
  0x55   :  { %939 = vmatmul.bf16.gmra.mxu3 %v4695_v32  ;;  %1123 = vmatpush.bf16.msra.mxu1 %v3473_v2  ;;  %v3954_v2 = vld [vmem:[%s6092_s1 + $0x294] sm:$0xf0] }
  0x56   :  { %v3525_v3 = vor.u32 %v3954_v2, %v3524_v0  ;;  %v4970_v0 = vperm.slane %v4890_v6, 1 }
  0x57   :  { %1178 = vmatpush.bf16.msrb.mxu2 %v3357_v38  ;;  %v3476_v38 = vld [vmem:[%s6092_s1 + $0x220] sm:$0xf] }
  0x58   :  { %v3477_v41 = vor.u32 %v3942_v39, %v3476_v38 }
  0x59   :  { %1124 = vmatpush.bf16.msra.mxu1 %v3449_v11  ;;  %v4893_v11 = vperm.slane %v4890_v6, 0 }
  0x5b   :  { %1179 = vmatpush.bf16.msrb.mxu2 %v3333_v55 }
  0x5d   :  { %1125 = vmatpush.bf16.msra.mxu1 %v3425_v20  ;;  %v3501_v20 = vor.u32 %v3948_v17, %v3500_v15  ;;  %v3972_v17 = vld [vmem:[%s6092_s1 + $0x324] sm:$0xf0] }
  0x5f   :  { %1180 = vmatpush.bf16.msrb.mxu2 %v3309_v1 }
  0x61   :  { %1126 = vmatpush.bf16.msra.mxu1 %v3401_v29  ;;  %v3260_v29 = vld [vmem:[%s6092_s1 + $0x70] sm:$0xf] }
  0x62   :  { %958 = vmatmul.bf16.gmra.mxu2 %v4573_v37  ;;  %v3261_v36 = vor.u32 %v3888_v30, %v3260_v29 }
  0x63   :  { %3654 = vmatmul.msk.bf16.vlgmr.msrb.gmra.mxu0 %vm797_vm1, %v4328_v51  ;;  %1181 = vmatpush.bf16.msrb.mxu2 %v3285_v16  ;;  %v3596_v16 = vld [vmem:[%s6092_s1 + $0x310] sm:$0xf] }
  0x64   :  { %1011 = vmatmul.bf16.vlgmr.msrb.gmra.mxu1 %v4457_v46  ;;  %1206 = vmatpush.bf16.msrb.mxu0 %v3573_v40  ;;  %v3597_v18 = vor.u32 %v3972_v17, %v3596_v16  ;;  %v3712_v16 = vld [vmem:[%s6095_s3 + $0x48] sm:$0xf]  ;;  %v3995_v17 = vld [vmem:[%s6095_s3 + $0x50] sm:$0x30] }
  0x65   :  { %1040 = vmatmul.bf16.vlgmr.msrb.gmra.mxu3 %v4463_v50  ;;  %1240 = vmatpush.bf16.msrb.mxu1 %v824_v49 }
  0x66   :  { %1264 = vmatpush.bf16.msrb.mxu3 %v3385_v48  ;;  %v3236_v48 = vld [vmem:[%s6092_s1 + $0x40] sm:$0xf] }
  0x67   :  { %1182 = vmatpush.bf16.msrb.mxu2 %v3261_v36  ;;  %v3237_v55 = vor.u32 %v3882_v54, %v3236_v48 }
  0x68   :  { %1207 = vmatpush.bf16.msrb.mxu0 %v3549_v57  ;;  %v3212_v57 = vld [vmem:[%s6092_s1 + $0x10] sm:$0xf] }
  0x69   :  { %1241 = vmatpush.bf16.msrb.mxu1 %v3621_v21  ;;  %v3213_v62 = vor.u32 %v3876_v58, %v3212_v57  ;;  %v3428_v21 = vld [vmem:[%s6092_s1 + $0x1c0] sm:$0xf] }
  0x6a   :  { %1265 = vmatpush.bf16.msrb.mxu3 %v3361_v60  ;;  %v3452_v60 = vld [vmem:[%s6092_s1 + $0x1f0] sm:$0xf] }
  0x6b   :  { %1183 = vmatpush.bf16.msrb.mxu2 %v3237_v55 }
  0x6c   :  { %1208 = vmatpush.bf16.msrb.mxu0 %v3525_v3 }
  0x6d   :  { %1242 = vmatpush.bf16.msrb.mxu1 %v3597_v18  ;;  %v3994_v18 = vld [vmem:[%s6095_s3 + $0x4c] sm:$0xf] }
  0x6e   :  { %1266 = vmatpush.bf16.msrb.mxu3 %v3337_v7  ;;  %v3262_v7 = vld [vmem:[%s6092_s1 + $0x88] sm:$0xf0] }
  0x6f   :  { %1184 = vmatpush.bf16.msrb.mxu2 %v3213_v62  ;;  %v3265_v14 = vor.u32 %v3885_v5, %v3262_v7 }
  0x70   :  { %1209 = vmatpush.bf16.msrb.mxu0 %v3501_v20 }
  0x72   :  { %963 = vmatmul.bf16.gmra.mxu2 %v4645_v10  ;;  %1267 = vmatpush.bf16.msrb.mxu3 %v3313_v27  ;;  %v3879_v27 = vld [vmem:[%s6092_s1 + $0x44] sm:$0xf] }
  0x73   :  { %3655 = vmatmul.msk.bf16.gmra.mxu0 %vm797_vm1, %v4446_v42 }
  0x74   :  { %1016 = vmatmul.bf16.gmra.mxu1 %v4571_v35  ;;  %1210 = vmatpush.bf16.msrb.mxu0 %v3477_v41  ;;  %v3404_v41 = vld [vmem:[%s6092_s1 + $0x190] sm:$0xf] }
  0x75   :  { %1045 = vmatmul.bf16.gmra.mxu3 %v4573_v37 }
  0x76   :  { %1268 = vmatpush.bf16.msrb.mxu3 %v3289_v53  ;;  %v3214_v53 = vld [vmem:[%s6092_s1 + $0x28] sm:$0xf0] }
  0x7a   :  { %1269 = vmatpush.bf16.msrb.mxu3 %v3265_v14 }
  0x82   :  { %968 = vmatmul.bf16.gmra.mxu2 %v4697_v33 }
  0x83   :  { %3656 = vmatmul.msk.bf16.gmra.mxu0 %vm797_vm1, %v4560_v31 }
  0x84   :  { %1021 = vmatmul.bf16.gmra.mxu1 %v4643_v9 }
  0x85   :  { %1050 = vmatmul.bf16.gmra.mxu3 %v4645_v10 }
  0x92   :  { %3658 = vmatmul.msk.bf16.vlgmr.msra.gmra.mxu2 %vm797_vm1, %v4328_v51 }
  0x93   :  { %3657 = vmatmul.msk.bf16.gmra.mxu0 %vm797_vm1, %v4641_v8 }
  0x94   :  { %1026 = vmatmul.bf16.gmra.mxu1 %v4695_v32 }
  0x95   :  { %1055 = vmatmul.bf16.gmra.mxu3 %v4697_v33  ;;  %v896_v61 = vpop.f32.mrf.mxu2 }
  0x9d   :  { %v898_v12 = vpop.f32.mrf.mxu2 }
  0xa0   :  { %v838_v22 = vpop.f32.mrf.mxu0 }
  0xa1   :  { %v839_v25 = vadd.f32 %v838_v22, %v4893_v11  ;;  %v867_v26 = vpop.f32.mrf.mxu1  ;;  %v3930_v22 = vld [vmem:[%s6092_s1 + $0x1d4] sm:$0xf0] }
  0xa2   :  { %3659 = vmatmul.msk.bf16.gmra.mxu2 %vm797_vm1, %v4446_v42  ;;  %v3429_v24 = vor.u32 %v3930_v22, %v3428_v21  ;;  %v3713_v22 = vor.u32 %v3995_v17, %v3712_v16  ;;  %v3975_v17 = vld [vmem:[%s6092_s1 + $0x344] sm:$0xf] }
  0xa3   :  { %v868_v28 = vadd.f32 %v867_v26, %v839_v25  ;;  %1098 = vmatmul.bf16.vlgmr.msra.gmra.mxu0 %v4457_v46 }
  0xa4   :  { %1127 = vmatmul.bf16.vlgmr.msra.gmra.mxu1 %v4463_v50 }
  0xa5   :  { %3662 = vmatmul.msk.bf16.vlgmr.msra.gmra.mxu3 %vm797_vm1, %v4328_v51  ;;  %v901_v34 = vpop.f32.mrf.mxu2  ;;  %v4938_v40 = vadd.f32 %v896_v61, %v868_v28  ;;  %v3936_v61 = vld [vmem:[%s6092_s1 + $0x204] sm:$0xf0]  ;;  %v3238_v28 = vld [vmem:[%s6092_s1 + $0x58] sm:$0xf0] }
  0xa6   :  { %v3453_v1 = vor.u32 %v3936_v61, %v3452_v60 }
  0xa8   :  { %v4940_v43 = vpop.f32.mrf.mxu3  ;;  %v840_v44 = vpop.f32.mrf.mxu0  ;;  %1211 = vmatpush.bf16.msrb.mxu0 %v3453_v1  ;;  %v3957_v1 = vld [vmem:[%s6092_s1 + $0x2b4] sm:$0xf] }
  0xa9   :  { %v841_v49 = vadd.f32 %v840_v44, %v4893_v11  ;;  %v869_v52 = vpop.f32.mrf.mxu1  ;;  %v3924_v44 = vld [vmem:[%s6092_s1 + $0x1a4] sm:$0xf0] }
  0xaa   :  { %v3405_v48 = vor.u32 %v3924_v44, %v3404_v41  ;;  %v3526_v41 = vld [vmem:[%s6092_s1 + $0x298] sm:$0xf0] }
  0xab   :  { %v870_v56 = vadd.f32 %v869_v52, %v841_v49  ;;  %v3574_v49 = vld [vmem:[%s6092_s1 + $0x2f8] sm:$0xf0]  ;;  %v3873_v52 = vld [vmem:[%s6092_s1 + $0x14] sm:$0xf] }
  0xac   :  { %1212 = vmatpush.bf16.msrb.mxu0 %v3429_v24  ;;  %v3217_v57 = vor.u32 %v3873_v52, %v3214_v53  ;;  %v926_v53 = vadd.f32 %v4940_v43, %v4970_v0 }
  0xad   :  { %v903_v59 = vpop.f32.mrf.mxu2  ;;  %v4967_v63 = vadd.f32 %v898_v12, %v870_v56  ;;  %v3577_v56 = vor.u32 %v3963_v45, %v3574_v49 }
  0xaf   :  { %1293 = vmatpush.bf16.msra.mxu2 %v3577_v56 }
  0xb0   :  { %v927_v2 = vpop.f32.mrf.mxu3  ;;  %v843_v4 = vpop.f32.mrf.mxu0  ;;  %1213 = vmatpush.bf16.msrb.mxu0 %v3405_v48 }
  0xb1   :  { %v4973_v3 = vadd.f32 %v927_v2, %v4970_v0  ;;  %v844_v12 = vadd.f32 %v843_v4, %v4893_v11  ;;  %v872_v13 = vpop.f32.mrf.mxu1  ;;  %v3550_v2 = vld [vmem:[%s6092_s1 + $0x2c8] sm:$0xf0]  ;;  %v3981_v4 = vld [vmem:[%s6092_s1 + $0x374] sm:$0xf] }
  0xb2   :  { %3660 = vmatmul.msk.bf16.gmra.mxu2 %vm797_vm1, %v4560_v31  ;;  %v3553_v7 = vor.u32 %v3957_v1, %v3550_v2 }
  0xb3   :  { %v873_v15 = vadd.f32 %v872_v13, %v844_v12  ;;  %1103 = vmatmul.bf16.gmra.mxu0 %v4571_v35  ;;  %v3646_v12 = vld [vmem:[%s6092_s1 + $0x388] sm:$0x30] }
  0xb4   :  { %1132 = vmatmul.bf16.gmra.mxu1 %v4573_v37  ;;  %1294 = vmatpush.bf16.msra.mxu2 %v3553_v7 }
  0xb5   :  { %3663 = vmatmul.msk.bf16.gmra.mxu3 %vm797_vm1, %v4446_v42  ;;  %v906_v19 = vpop.f32.mrf.mxu2  ;;  %v4994_v20 = vadd.f32 %v901_v34, %v873_v15  ;;  %v3241_v34 = vor.u32 %v3879_v27, %v3238_v28  ;;  %v3649_v15 = vor.u32 %v3981_v4, %v3646_v12  ;;  %v5074_v28 = vsel %vm810_vm0, %v3713_v22, 0  ;;  %v3992_v4 = vld [vmem:[%s6095_s3 + $0x38] sm:$0xf0] }
  0xb6   :  { %1520 = vmatpush.bf16.msra.mxu1 %v5074_v28 }
  0xb7   :  { %1270 = vmatpush.bf16.msrb.mxu3 %v3241_v34  ;;  %v827_v24 = vsel %vm810_vm0, %v3649_v15, 0  ;;  %v3702_v15 = vld [vmem:[%s6095_s3 + $0x3c] sm:$0xf0] }
  0xb8   :  { %v930_v23 = vpop.f32.mrf.mxu3  ;;  %v845_v26 = vpop.f32.mrf.mxu0  ;;  %1327 = vmatpush.bf16.msra.mxu0 %v827_v24  ;;  %v3939_v24 = vld [vmem:[%s6092_s1 + $0x224] sm:$0xf] }
  0xb9   :  { %v5003_v25 = vadd.f32 %v930_v23, %v4970_v0  ;;  %v846_v29 = vadd.f32 %v845_v26, %v4893_v11  ;;  %v874_v30 = vpop.f32.mrf.mxu1  ;;  %v3714_v23 = vld [vmem:[%s6095_s3 + $0x54] sm:$0x30] }
  0xba   :  { %v3717_v26 = vor.u32 %v3994_v18, %v3714_v23  ;;  %v3622_v18 = vld [vmem:[%s6092_s1 + $0x358] sm:$0xf0] }
  0xbb   :  { %v875_v36 = vadd.f32 %v874_v30, %v846_v29  ;;  %1271 = vmatpush.bf16.msrb.mxu3 %v3217_v57 }
  0xbc   :  { %v5078_v29 = vsel %vm810_vm0, %v3717_v26, 0  ;;  %v3478_v26 = vld [vmem:[%s6092_s1 + $0x238] sm:$0xf0] }
  0xbd   :  { %v908_v38 = vpop.f32.mrf.mxu2  ;;  %v5012_v39 = vadd.f32 %v903_v59, %v875_v36  ;;  %v3951_v36 = vld [vmem:[%s6092_s1 + $0x284] sm:$0xf] }
  0xbe   :  { %v3529_v45 = vor.u32 %v3951_v36, %v3526_v41  ;;  %v3481_v36 = vor.u32 %v3939_v24, %v3478_v26 }
  0xbf   :  { %6106 = vst [vmem:[#allocation3_spill] sm:$0xff] %v5012_v39  ;;  %1533 = vmatpush.bf16.msra.mxu3 %v5078_v29 }
  0xc0   :  { %v932_v47 = vpop.f32.mrf.mxu3  ;;  %v848_v55 = vpop.f32.mrf.mxu0  ;;  %1295 = vmatpush.bf16.msra.mxu2 %v3529_v45  ;;  %v5149_v45 = vperm.slane %v4890_v6, 2 }
  0xc1   :  { %v5033_v54 = vadd.f32 %v932_v47, %v4970_v0  ;;  %v849_v58 = vadd.f32 %v848_v55, %v4893_v11  ;;  %v877_v59 = vpop.f32.mrf.mxu1 }
  0xc2   :  { %3661 = vmatmul.msk.bf16.gmra.mxu2 %vm797_vm1, %v4641_v8  ;;  %6111 = vst [vmem:[#allocation8_spill] sm:$0xff] %v5149_v45 }
  0xc3   :  { %v878_v60 = vadd.f32 %v877_v59, %v849_v58  ;;  %1108 = vmatmul.bf16.gmra.mxu0 %v4643_v9  ;;  %v3945_v58 = vld [vmem:[%s6092_s1 + $0x254] sm:$0xf]  ;;  %v3502_v59 = vld [vmem:[%s6092_s1 + $0x268] sm:$0xf0] }
  0xc4   :  { %1137 = vmatmul.bf16.gmra.mxu1 %v4645_v10  ;;  %v3505_v1 = vor.u32 %v3945_v58, %v3502_v59  ;;  %v3989_v59 = vld [vmem:[%s6095_s3 + $0x20] sm:$0xf0] }
  0xc5   :  { %3664 = vmatmul.msk.bf16.gmra.mxu3 %vm797_vm1, %v4560_v31  ;;  %v911_v61 = vpop.f32.mrf.mxu2  ;;  %v5042_v62 = vadd.f32 %v906_v19, %v878_v60 }
  0xc6   :  { %1296 = vmatpush.bf16.msra.mxu2 %v3505_v1 }
  0xc7   :  { %6107 = vst [vmem:[#allocation4_spill] sm:$0xff] %v5042_v62 }
  0xc8   :  { %v935_v5 = vpop.f32.mrf.mxu3  ;;  %v850_v14 = vpop.f32.mrf.mxu0 }
  0xc9   :  { %v5057_v13 = vadd.f32 %v935_v5, %v4970_v0  ;;  %v851_v19 = vadd.f32 %v850_v14, %v4893_v11  ;;  %v879_v21 = vpop.f32.mrf.mxu1  ;;  %v3991_v5 = vld [vmem:[%s6095_s3 + $0x34] sm:$0xf] }
  0xca   :  { %v5126_v16 = vor.u32 %v3991_v5, %v3702_v15  ;;  %1297 = vmatpush.bf16.msra.mxu2 %v3481_v36  ;;  %v3430_v5 = vld [vmem:[%s6092_s1 + $0x1d8] sm:$0xf0]  ;;  %v3598_v36 = vld [vmem:[%s6092_s1 + $0x328] sm:$0xf0] }
  0xcb   :  { %v880_v27 = vadd.f32 %v879_v21, %v851_v19 }
  0xcc   :  { %1534 = vmatpush.bf16.msra.mxu3 %v5126_v16 }
  0xcd   :  { %v913_v30 = vpop.f32.mrf.mxu2  ;;  %v5081_v34 = vadd.f32 %v908_v38, %v880_v27 }
  0xcf   :  { %6108 = vst [vmem:[#allocation5_spill] sm:$0xff] %v5081_v34 }
  0xd0   :  { %v937_v44 = vpop.f32.mrf.mxu3  ;;  %v853_v48 = vpop.f32.mrf.mxu0 }
  0xd1   :  { %v5090_v47 = vadd.f32 %v937_v44, %v4970_v0  ;;  %v854_v49 = vadd.f32 %v853_v48, %v4893_v11  ;;  %v882_v52 = vpop.f32.mrf.mxu1 }
  0xd2   :  { %1185 = vmatmul.bf16.vlgmr.msrb.gmra.mxu2 %v4457_v46 }
  0xd3   :  { %v883_v38 = vadd.f32 %v882_v52, %v854_v49  ;;  %1113 = vmatmul.bf16.gmra.mxu0 %v4695_v32  ;;  %v3454_v49 = vld [vmem:[%s6092_s1 + $0x208] sm:$0xf0] }
  0xd4   :  { %1142 = vmatmul.bf16.gmra.mxu1 %v4697_v33 }
  0xd5   :  { %3665 = vmatmul.msk.bf16.gmra.mxu3 %vm797_vm1, %v4641_v8  ;;  %v954_v55 = vpop.f32.mrf.mxu2  ;;  %v5100_v56 = vadd.f32 %v911_v61, %v883_v38  ;;  %v3700_v61 = vld [vmem:[%s6095_s3 + $0x30] sm:$0xf] }
  0xd6   :  { %v955_v57 = vadd.f32 %v954_v55, %v926_v53  ;;  %v5121_v14 = vor.u32 %v3992_v4, %v3700_v61  ;;  %v3690_v61 = vld [vmem:[%s6095_s3 + $0x24] sm:$0xf0]  ;;  %v3927_v4 = vld [vmem:[%s6092_s1 + $0x1c4] sm:$0xf] }
  0xd7   :  { %6109 = vst [vmem:[#allocation6_spill] sm:$0xff] %v5100_v56  ;;  %v3433_v15 = vor.u32 %v3927_v4, %v3430_v5 }
  0xd8   :  { %v940_v60 = vpop.f32.mrf.mxu3  ;;  %v855_v2 = vpop.f32.mrf.mxu0  ;;  %1521 = vmatpush.bf16.msra.mxu1 %v5121_v14 }
  0xd9   :  { %v5109_v43 = vadd.f32 %v940_v60, %v4970_v0  ;;  %v856_v7 = vadd.f32 %v855_v2, %v4893_v11  ;;  %v884_v12 = vpop.f32.mrf.mxu1  ;;  %v3625_v11 = vor.u32 %v3975_v17, %v3622_v18  ;;  %v3988_v60 = vld [vmem:[%s6095_s3 + $0x1c] sm:$0xf]  ;;  %v3921_v17 = vld [vmem:[%s6092_s1 + $0x194] sm:$0xf]  ;;  %v3406_v18 = vld [vmem:[%s6092_s1 + $0x1a8] sm:$0xf0] }
  0xdb   :  { %v885_v19 = vadd.f32 %v884_v12, %v856_v7  ;;  %1328 = vmatpush.bf16.msra.mxu0 %v3625_v11  ;;  %v5191_v12 = vor.u32 %v3988_v60, %v3690_v61  ;;  %v3409_v11 = vor.u32 %v3921_v17, %v3406_v18  ;;  %v3678_v60 = vld [vmem:[%s6095_s3 + $0xc] sm:$0xf0] }
  0xdd   :  { %v956_v21 = vpop.f32.mrf.mxu2  ;;  %v5136_v22 = vadd.f32 %v913_v30, %v885_v19  ;;  %1535 = vmatpush.bf16.msra.mxu3 %v5191_v12 }
  0xde   :  { %v957_v23 = vadd.f32 %v956_v21, %v4973_v3 }
  0xdf   :  { %6110 = vst [vmem:[#allocation7_spill] sm:$0xff] %v5136_v22 }
  0xe0   :  { %v942_v27 = vpop.f32.mrf.mxu3  ;;  %v983_v44 = vpop.f32.mrf.mxu0 }
  0xe1   :  { %v5146_v41 = vadd.f32 %v942_v27, %v4970_v0  ;;  %v5151_v30 = vadd.f32 %v983_v44, %v955_v57  ;;  %v1012_v3 = vpop.f32.mrf.mxu1  ;;  %v3933_v0 = vld [vmem:[%s6092_s1 + $0x1f4] sm:$0xf] }
  0xe2   :  { %1190 = vmatmul.bf16.gmra.mxu2 %v4571_v35  ;;  %v1013_v48 = vadd.f32 %v1012_v3, %v5149_v45  ;;  %v3457_v38 = vor.u32 %v3933_v0, %v3454_v49  ;;  %v3969_v27 = vld [vmem:[%s6092_s1 + $0x314] sm:$0xf]  ;;  %s4176_s1 = smov 60  }
  0xe3   :  { %1214 = vmatmul.bf16.vlgmr.msrb.gmra.mxu0 %v4463_v50 }
  0xe4   :  { %3666 = vmatmul.msk.bf16.vlgmr.msrb.gmra.mxu1 %vm797_vm1, %v4328_v51  ;;  %1298 = vmatpush.bf16.msra.mxu2 %v3457_v38 }
  0xe5   :  { %1272 = vmatmul.bf16.vlgmr.msrb.gmra.mxu3 %v4457_v46  ;;  %v959_v52 = vpop.f32.mrf.mxu2  ;;  %v3688_v46 = vld [vmem:[%s6095_s3 + $0x18] sm:$0xf] }
  0xe6   :  { %v960_v53 = vadd.f32 %v959_v52, %v5003_v25  ;;  %v5179_v2 = vor.u32 %v3989_v59, %v3688_v46 }
  0xe8   :  { %v1041_v55 = vpop.f32.mrf.mxu3  ;;  %v985_v58 = vpop.f32.mrf.mxu0  ;;  %1522 = vmatpush.bf16.msra.mxu1 %v5179_v2  ;;  %1299 = vmatpush.bf16.msra.mxu2 %v3433_v15 }
  0xe9   :  { %v5166_v57 = vadd.f32 %v1041_v55, %v1013_v48  ;;  %v5177_v1 = vadd.f32 %v985_v58, %v957_v23  ;;  %v1014_v25 = vpop.f32.mrf.mxu1  ;;  %v3601_v48 = vor.u32 %v3969_v27, %v3598_v36  ;;  %v3676_v55 = vld [vmem:[%s6095_s3] sm:$0xf]  ;;  %v3986_v58 = vld [vmem:[%s6095_s3 + $0x8] sm:$0xf0]  ;;  %v4007_v27 = vld [vmem:[%s6096_s4 + $0x50] sm:$0x30] }
  0xea   :  { %v1015_v7 = vadd.f32 %v1014_v25, %v5149_v45 }
  0xeb   :  { %1329 = vmatpush.bf16.msra.mxu0 %v3601_v48 }
  0xec   :  { %1300 = vmatpush.bf16.msra.mxu2 %v3409_v11 }
  0xed   :  { %v961_v19 = vpop.f32.mrf.mxu2 }
  0xee   :  { %v962_v21 = vadd.f32 %v961_v19, %v5033_v54 }
  0xf0   :  { %v1043_v23 = vpop.f32.mrf.mxu3  ;;  %v988_v26 = vpop.f32.mrf.mxu0  ;;  %1782 = vmatpush.bf16.msrb.mxu2 %v5074_v28 }
  0xf1   :  { %v5202_v24 = vadd.f32 %v1043_v23, %v1015_v7  ;;  %v5210_v44 = vadd.f32 %v988_v26, %v960_v53  ;;  %v1017_v3 = vpop.f32.mrf.mxu1  ;;  %v3996_v23 = vld [vmem:[%s6095_s3 + $0x58] sm:$0x30] }
  0xf2   :  { %v1018_v54 = vadd.f32 %v1017_v3, %v5149_v45  ;;  %1195 = vmatmul.bf16.gmra.mxu2 %v4643_v9 }
  0xf3   :  { %6112 = vst [vmem:[#allocation9_spill] sm:$0xff] %v5210_v44  ;;  %1219 = vmatmul.bf16.gmra.mxu0 %v4573_v37 }
  0xf4   :  { %3667 = vmatmul.msk.bf16.gmra.mxu1 %vm797_vm1, %v4446_v42  ;;  %1783 = vmatpush.bf16.msrb.mxu2 %v5121_v14 }
  0xf5   :  { %1277 = vmatmul.bf16.gmra.mxu3 %v4571_v35  ;;  %v964_v0 = vpop.f32.mrf.mxu2  ;;  %v3985_v35 = vld [vmem:[%s6095_s3 + $0x4] sm:$0xf] }
  0xf6   :  { %v965_v49 = vadd.f32 %v964_v0, %v5057_v13  ;;  %v5234_v13 = vor.u32 %v3986_v58, %v3676_v55  ;;  %v5241_v61 = vor.u32 %v3985_v35, %v3678_v60  ;;  %v4004_v35 = vld [vmem:[%s6096_s4 + $0x38] sm:$0xf0] }
  0xf8   :  { %v1046_v52 = vpop.f32.mrf.mxu3  ;;  %v990_v53 = vpop.f32.mrf.mxu0  ;;  %1784 = vmatpush.bf16.msrb.mxu2 %v5179_v2  ;;  %1523 = vmatpush.bf16.msra.mxu1 %v5234_v13 }
  0xf9   :  { %v5221_v38 = vadd.f32 %v1046_v52, %v1018_v54  ;;  %v5232_v46 = vadd.f32 %v990_v53, %v962_v21  ;;  %v1019_v59 = vpop.f32.mrf.mxu1  ;;  %1536 = vmatpush.bf16.msra.mxu3 %v5241_v61  ;;  %v3720_v21 = vld [vmem:[%s6095_s3 + $0x50] sm:$0xf]  ;;  %v3708_v52 = vld [vmem:[%s6095_s3 + $0x38] sm:$0xf] }
  0xfa   :  { %v1020_v25 = vadd.f32 %v1019_v59, %v5149_v45  ;;  %v3721_v26 = vor.u32 %v3996_v23, %v3720_v21 }
  0xfb   :  { %6113 = vst [vmem:[#allocation10_spill] sm:$0xff] %v5232_v46 }
  0xfc   :  { %1785 = vmatpush.bf16.msrb.mxu2 %v5234_v13  ;;  %v5270_v48 = vsel %vm810_vm0, %v3721_v26, 0 }
  0xfd   :  { %v966_v4 = vpop.f32.mrf.mxu2  ;;  %1546 = vmatpush.bf16.msrb.mxu1 %v5270_v48 }
  0xfe   :  { %v967_v5 = vadd.f32 %v966_v4, %v5090_v47  ;;  %v3762_v47 = vld [vmem:[%s6096_s4 + $0x48] sm:$0xf] }
  0xff   :  { %v3763_v36 = vor.u32 %v4007_v27, %v3762_v47  ;;  %v3684_v27 = vld [vmem:[%s6095_s3 + $0x8] sm:$0xf] }
 0x100   :  { %v1048_v7 = vpop.f32.mrf.mxu3  ;;  %v993_v17 = vpop.f32.mrf.mxu0 }
 0x101   :  { %v5247_v15 = vadd.f32 %v1048_v7, %v1020_v25  ;;  %v5249_v18 = vadd.f32 %v993_v17, %v965_v49  ;;  %v1022_v19 = vpop.f32.mrf.mxu1  ;;  %v5275_v0 = vsel %vm810_vm0, %v3763_v36, 0  ;;  %v3696_v7 = vld [vmem:[%s6095_s3 + $0x20] sm:$0xf]  ;;  %v3990_v17 = vld [vmem:[%s6095_s3 + $0x28] sm:$0xf0] }
 0x102   :  { %v1023_v11 = vadd.f32 %v1022_v19, %v5149_v45  ;;  %1200 = vmatmul.bf16.gmra.mxu2 %v4695_v32  ;;  %1680 = vmatpush.bf16.msrb.mxu3 %v5275_v0  ;;  %v5310_v19 = vor.u32 %v3990_v17, %v3696_v7  ;;  %v3987_v36 = vld [vmem:[%s6095_s3 + $0x10] sm:$0xf0]  ;;  %v3764_v7 = vld [vmem:[%s6096_s4 + $0x54] sm:$0x30] }
 0x103   :  { %6114 = vst [vmem:[#allocation11_spill] sm:$0xff] %v5247_v15  ;;  %1224 = vmatmul.bf16.gmra.mxu0 %v4645_v10 }
 0x104   :  { %6115 = vst [vmem:[#allocation12_spill] sm:$0xff] %v5249_v18  ;;  %3668 = vmatmul.msk.bf16.gmra.mxu1 %vm797_vm1, %v4560_v31 }
 0x105   :  { %1282 = vmatmul.bf16.gmra.mxu3 %v4643_v9  ;;  %v969_v3 = vpop.f32.mrf.mxu2  ;;  %v3993_v9 = vld [vmem:[%s6095_s3 + $0x40] sm:$0xf0] }
 0x106   :  { %v970_v54 = vadd.f32 %v969_v3, %v5109_v43  ;;  %v3750_v43 = vld [vmem:[%s6096_s4 + $0x30] sm:$0xf]  ;;  %v5289_v58 = vor.u32 %v3993_v9, %v3708_v52  ;;  %v3726_v3 = vld [vmem:[%s6096_s4] sm:$0xf]  ;;  %v5331_v52 = vor.u32 %v3987_v36, %v3684_v27  ;;  %v3998_v9 = vld [vmem:[%s6096_s4 + $0x8] sm:$0xf0] }
 0x107   :  { %v5296_v25 = vor.u32 %v4004_v35, %v3750_v43  ;;  %v5338_v35 = vor.u32 %v3998_v9, %v3726_v3  ;;  %v4000_v9 = vld [vmem:[%s6096_s4 + $0x1c] sm:$0xf] }
 0x108   :  { %v1051_v49 = vpop.f32.mrf.mxu3  ;;  %v995_v55 = vpop.f32.mrf.mxu0  ;;  %1547 = vmatpush.bf16.msrb.mxu1 %v5289_v58 }
 0x109   :  { %v5287_v53 = vadd.f32 %v1051_v49, %v1023_v11  ;;  %v5294_v59 = vadd.f32 %v995_v55, %v967_v5  ;;  %v1024_v60 = vpop.f32.mrf.mxu1  ;;  %1681 = vmatpush.bf16.msrb.mxu3 %v5296_v25  ;;  %v3738_v5 = vld [vmem:[%s6096_s4 + $0x18] sm:$0xf]  ;;  %v4001_v11 = vld [vmem:[%s6096_s4 + $0x20] sm:$0xf0] }
 0x10a   :  { %v1025_v4 = vadd.f32 %v1024_v60, %v5149_v45  ;;  %v5315_v23 = vor.u32 %v4001_v11, %v3738_v5 }
 0x10b   :  { %6116 = vst [vmem:[#allocation13_spill] sm:$0xff] %v5294_v59 }
 0x10c   :  { %1548 = vmatpush.bf16.msrb.mxu1 %v5310_v19 }
 0x10d   :  { %v971_v21 = vpop.f32.mrf.mxu2  ;;  %1682 = vmatpush.bf16.msrb.mxu3 %v5315_v23 }
 0x10e   :  { %v972_v47 = vadd.f32 %v971_v21, %v5146_v41  ;;  %v4003_v21 = vld [vmem:[%s6096_s4 + $0x34] sm:$0xf] }
 0x110   :  { %v1053_v26 = vpop.f32.mrf.mxu3  ;;  %v998_v41 = vpop.f32.mrf.mxu0  ;;  %1549 = vmatpush.bf16.msrb.mxu1 %v5331_v52 }
 0x111   :  { %v5329_v49 = vadd.f32 %v1053_v26, %v1025_v4  ;;  %v5336_v43 = vadd.f32 %v998_v41, %v970_v54  ;;  %v1027_v55 = vpop.f32.mrf.mxu1  ;;  %v4006_v4 = vld [vmem:[%s6096_s4 + $0x4c] sm:$0xf]  ;;  %1683 = vmatpush.bf16.msrb.mxu3 %v5338_v35  ;;  %v3770_v41 = vld [vmem:[%s6096_s4 + $0x50] sm:$0xf] }
 0x112   :  { %v1028_v60 = vadd.f32 %v1027_v55, %v5149_v45  ;;  %1301 = vmatmul.bf16.vlgmr.msra.gmra.mxu2 %v4463_v50  ;;  %v3767_v54 = vor.u32 %v4006_v4, %v3764_v7  ;;  %v3740_v55 = vld [vmem:[%s6096_s4 + $0x24] sm:$0xf0]  ;;  %v5395_v7 = vperm.slane %v4890_v6, 3 }
 0x113   :  { %6117 = vst [vmem:[#allocation14_spill] sm:$0xff] %v5329_v49  ;;  %1229 = vmatmul.bf16.gmra.mxu0 %v4697_v33  ;;  %1876 = vmatpush.bf16.msra.mxu2 %v5275_v0 }
 0x114   :  { %6118 = vst [vmem:[#allocation15_spill] sm:$0xff] %v5336_v43  ;;  %3669 = vmatmul.msk.bf16.gmra.mxu1 %vm797_vm1, %v4641_v8  ;;  %v5355_v17 = vsel %vm810_vm0, %v3767_v54, 0 }
 0x115   :  { %1287 = vmatmul.bf16.gmra.mxu3 %v4695_v32  ;;  %v1070_v50 = vpop.f32.mrf.mxu2  ;;  %1889 = vmatpush.bf16.msrb.mxu0 %v5355_v17  ;;  %v3752_v32 = vld [vmem:[%s6096_s4 + $0x3c] sm:$0xf0]  ;;  %6121 = vst [vmem:[#allocation18_spill] sm:$0xff] %v5395_v7 }
 0x116   :  { %v5359_v5 = vadd.f32 %v1070_v50, %v5166_v57  ;;  %v5370_v36 = vor.u32 %v4003_v21, %v3752_v32  ;;  %v3728_v21 = vld [vmem:[%s6096_s4 + $0xc] sm:$0xf0] }
 0x117   :  { %1877 = vmatpush.bf16.msra.mxu2 %v5296_v25 }
 0x118   :  { %v1056_v11 = vpop.f32.mrf.mxu3  ;;  %v1000_v27 = vpop.f32.mrf.mxu0 }
 0x119   :  { %v5368_v26 = vadd.f32 %v1056_v11, %v1028_v60  ;;  %v5372_v3 = vadd.f32 %v1000_v27, %v972_v47  ;;  %v5374_v57 = vpop.f32.mrf.mxu1  ;;  %1890 = vmatpush.bf16.msrb.mxu0 %v5370_v36  ;;  %v4008_v47 = vld [vmem:[%s6096_s4 + $0x58] sm:$0x30]  ;;  %v5390_v60 = vor.u32 %v4000_v9, %v3740_v55  ;;  %v3997_v11 = vld [vmem:[%s6096_s4 + $0x4] sm:$0xf] }
 0x11a   :  { %6120 = vst [vmem:[#allocation17_spill] sm:$0xff] %v5374_v57  ;;  %v3771_v54 = vor.u32 %v4008_v47, %v3770_v41  ;;  %v5407_v27 = vor.u32 %v3997_v11, %v3728_v21  ;;  %v3758_v47 = vld [vmem:[%s6096_s4 + $0x38] sm:$0xf]  ;;  %v4175_v21 = vmov 0  }
 0x11b   :  { %6119 = vst [vmem:[#allocation16_spill] sm:$0xff] %v5372_v3  ;;  %1878 = vmatpush.bf16.msra.mxu2 %v5315_v23 }
 0x11c   :  { %v5413_v41 = vsel %vm810_vm0, %v3771_v54, 0 }
 0x11d   :  { %v5392_v4 = vpop.f32.mrf.mxu2  ;;  %1891 = vmatpush.bf16.msrb.mxu0 %v5390_v60 }
 0x11f   :  { %1879 = vmatpush.bf16.msra.mxu2 %v5338_v35 }
 0x120   :  { %v5399_v50 = vpop.f32.mrf.mxu3  ;;  %v1099_v32 = vpop.f32.mrf.mxu0 }
 0x121   :  { %6122 = vst [vmem:[#allocation19_spill] sm:$0xff] %v5399_v50  ;;  %v1100_v9 = vadd.f32 %v1099_v32, %v5395_v7  ;;  %v1128_v55 = vpop.f32.mrf.mxu1  ;;  %v4005_v50 = vld [vmem:[%s6096_s4 + $0x40] sm:$0xf0]  ;;  %1892 = vmatpush.bf16.msrb.mxu0 %v5407_v27 }
 0x122   :  { %1306 = vmatmul.bf16.gmra.mxu2 %v4573_v37  ;;  %v5426_v54 = vor.u32 %v4005_v50, %v3758_v47  ;;  %v3734_v47 = vld [vmem:[%s6096_s4 + $0x8] sm:$0xf] }
 0x123   :  { %v1129_v11 = vadd.f32 %v1128_v55, %v1100_v9  ;;  %3670 = vmatmul.msk.bf16.vlgmr.msra.gmra.mxu0 %vm797_vm1, %v4328_v51  ;;  %v3746_v9 = vld [vmem:[%s6096_s4 + $0x20] sm:$0xf]  ;;  %v4002_v51 = vld [vmem:[%s6096_s4 + $0x28] sm:$0xf0] }
 0x124   :  { %1524 = vmatmul.bf16.vlgmr.msra.gmra.mxu1 %v4175_v21 }
 0x125   :  { %1537 = vmatmul.bf16.vlgmr.msra.gmra.mxu3 %v4175_v21  ;;  %v1075_v37 = vpop.f32.mrf.mxu2  ;;  %1693 = vmatpush.bf16.msra.mxu1 %v5355_v17 }
 0x126   :  { %1706 = vmatpush.bf16.msra.mxu3 %v5413_v41  ;;  %v5429_v32 = vadd.f32 %v1075_v37, %v5221_v38  ;;  %2004 = vmatpush.bf16.msra.mxu0 %v5270_v48  ;;  %v5446_v38 = vor.u32 %v4002_v51, %v3746_v9  ;;  %v3999_v37 = vld [vmem:[%s6096_s4 + $0x10] sm:$0xf0] }
 0x128   :  { %6123 = vst [vmem:[#allocation20_spill] sm:$0xff] %v5429_v32  ;;  %v1157_v55 = vpop.f32.mrf.mxu3  ;;  %v5440_v45 = vpop.f32.mrf.mxu0 }
 0x129   :  { %v5438_v57 = vadd.f32 %v1157_v55, %v1129_v11  ;;  %6125 = vst [vmem:[#allocation22_spill] sm:$0xff] %v5440_v45  ;;  %v5442_v50 = vpop.f32.mrf.mxu1  ;;  %1694 = vmatpush.bf16.msra.mxu1 %v5370_v36  ;;  %v5459_v55 = vor.u32 %v3999_v37, %v3734_v47 }
 0x12a   :  { %6126 = vst [vmem:[#allocation23_spill] sm:$0xff] %v5442_v50  ;;  %1707 = vmatpush.bf16.msra.mxu3 %v5426_v54  ;;  %2005 = vmatpush.bf16.msra.mxu0 %v5289_v58 }
 0x12b   :  { %6124 = vst [vmem:[#allocation21_spill] sm:$0xff] %v5438_v57 }
 0x12d   :  { %v5455_v11 = vpop.f32.mrf.mxu2  ;;  %1695 = vmatpush.bf16.msra.mxu1 %v5390_v60 }
 0x12e   :  { %6127 = vst [vmem:[#allocation24_spill] sm:$0xff] %v5455_v11  ;;  %1708 = vmatpush.bf16.msra.mxu3 %v5446_v38  ;;  %2006 = vmatpush.bf16.msra.mxu0 %v5310_v19 }
 0x130   :  { %v5462_v9 = vpop.f32.mrf.mxu3  ;;  %v1104_v51 = vpop.f32.mrf.mxu0 }
 0x131   :  { %6128 = vst [vmem:[#allocation25_spill] sm:$0xff] %v5462_v9  ;;  %v1105_v57 = vadd.f32 %v1104_v51, %v5395_v7  ;;  %v1133_v3 = vpop.f32.mrf.mxu1  ;;  %1696 = vmatpush.bf16.msra.mxu1 %v5407_v27 }
 0x132   :  { %1709 = vmatpush.bf16.msra.mxu3 %v5459_v55  ;;  %1311 = vmatmul.bf16.gmra.mxu2 %v4645_v10 }
 0x133   :  { %2007 = vmatpush.bf16.msra.mxu0 %v5331_v52  ;;  %v1134_v22 = vadd.f32 %v1133_v3, %v1105_v57 }
 0x134   :  { %3671 = vmatmul.msk.bf16.gmra.mxu0 %vm797_vm1, %v4446_v42  ;;  %1550 = vmatmul.bf16.vlgmr.msrb.gmra.mxu1 %v4175_v21 }
 0x135   :  { %1684 = vmatmul.bf16.vlgmr.msrb.gmra.mxu3 %v4175_v21  ;;  %v1080_v47 = vpop.f32.mrf.mxu2  ;;  %1795 = vmatpush.bf16.msrb.mxu1 %v5078_v29 }
 0x136   :  { %1808 = vmatpush.bf16.msrb.mxu3 %v5270_v48  ;;  %v5474_v37 = vadd.f32 %v1080_v47, %v5287_v53 }
 0x138   :  { %6129 = vst [vmem:[#allocation26_spill] sm:$0xff] %v5474_v37  ;;  %v1162_v51 = vpop.f32.mrf.mxu3  ;;  %v5478_v10 = vpop.f32.mrf.mxu0 }
 0x139   :  { %v5476_v9 = vadd.f32 %v1162_v51, %v1134_v22  ;;  %6131 = vst [vmem:[#allocation28_spill] sm:$0xff] %v5478_v10  ;;  %v5480_v50 = vpop.f32.mrf.mxu1  ;;  %1796 = vmatpush.bf16.msrb.mxu1 %v5126_v16 }
 0x13a   :  { %6132 = vst [vmem:[#allocation29_spill] sm:$0xff] %v5480_v50  ;;  %1809 = vmatpush.bf16.msrb.mxu3 %v5289_v58 }
 0x13b   :  { %6130 = vst [vmem:[#allocation27_spill] sm:$0xff] %v5476_v9 }
 0x13d   :  { %v5484_v42 = vpop.f32.mrf.mxu2  ;;  %1797 = vmatpush.bf16.msrb.mxu1 %v5191_v12 }
 0x13e   :  { %6133 = vst [vmem:[#allocation30_spill] sm:$0xff] %v5484_v42  ;;  %1810 = vmatpush.bf16.msrb.mxu3 %v5310_v19 }
 0x140   :  { %v5488_v3 = vpop.f32.mrf.mxu3  ;;  %v1109_v53 = vpop.f32.mrf.mxu0 }
 0x141   :  { %6134 = vst [vmem:[#allocation31_spill] sm:$0xff] %v5488_v3  ;;  %v1110_v22 = vadd.f32 %v1109_v53, %v5395_v7  ;;  %v1138_v57 = vpop.f32.mrf.mxu1  ;;  %1798 = vmatpush.bf16.msrb.mxu1 %v5241_v61 }
 0x142   :  { %1811 = vmatpush.bf16.msrb.mxu3 %v5331_v52  ;;  %1316 = vmatmul.bf16.gmra.mxu2 %v4697_v33 }
 0x143   :  { %v1139_v47 = vadd.f32 %v1138_v57, %v1110_v22  ;;  %v5519_v57 = vperm.slane %v4890_v6, 4 }
 0x144   :  { %3672 = vmatmul.msk.bf16.gmra.mxu0 %vm797_vm1, %v4560_v31  ;;  %1697 = vmatmul.bf16.vlgmr.msra.gmra.mxu1 %v4175_v21 }
 0x145   :  { %1710 = vmatmul.bf16.vlgmr.msra.gmra.mxu3 %v4175_v21  ;;  %v1085_v51 = vpop.f32.mrf.mxu2  ;;  %1902 = vmatpush.bf16.msra.mxu1 %v5413_v41  ;;  %6141 = vst [vmem:[#allocation38_spill] sm:$0xff] %v5519_v57 }
 0x146   :  { %1978 = vmatpush.bf16.msra.mxu3 %v5074_v28  ;;  %v5499_v53 = vadd.f32 %v1085_v51, %v5368_v26 }
 0x148   :  { %6135 = vst [vmem:[#allocation32_spill] sm:$0xff] %v5499_v53  ;;  %v1167_v45 = vpop.f32.mrf.mxu3  ;;  %v5503_v56 = vpop.f32.mrf.mxu0 }
 0x149   :  { %v5501_v43 = vadd.f32 %v1167_v45, %v1139_v47  ;;  %6137 = vst [vmem:[#allocation34_spill] sm:$0xff] %v5503_v56  ;;  %v5505_v33 = vpop.f32.mrf.mxu1  ;;  %1903 = vmatpush.bf16.msra.mxu1 %v5426_v54 }
 0x14a   :  { %6138 = vst [vmem:[#allocation35_spill] sm:$0xff] %v5505_v33  ;;  %1979 = vmatpush.bf16.msra.mxu3 %v5121_v14 }
 0x14b   :  { %6136 = vst [vmem:[#allocation33_spill] sm:$0xff] %v5501_v43 }
 0x14d   :  { %v5509_v31 = vpop.f32.mrf.mxu2  ;;  %1904 = vmatpush.bf16.msra.mxu1 %v5446_v38 }
 0x14e   :  { %6139 = vst [vmem:[#allocation36_spill] sm:$0xff] %v5509_v31  ;;  %1980 = vmatpush.bf16.msra.mxu3 %v5179_v2 }
 0x150   :  { %v5513_v21 = vpop.f32.mrf.mxu3  ;;  %v1114_v26 = vpop.f32.mrf.mxu0 }
 0x151   :  { %6140 = vst [vmem:[#allocation37_spill] sm:$0xff] %v5513_v21  ;;  %v1115_v45 = vadd.f32 %v1114_v26, %v5395_v7  ;;  %v1143_v22 = vpop.f32.mrf.mxu1  ;;  %1905 = vmatpush.bf16.msra.mxu1 %v5459_v55 }
 0x152   :  { %1981 = vmatpush.bf16.msra.mxu3 %v5234_v13 }
 0x153   :  { %v1144_v47 = vadd.f32 %v1143_v22, %v1115_v45 }
 0x154   :  { %3673 = vmatmul.msk.bf16.gmra.mxu0 %vm797_vm1, %v4641_v8  ;;  %v5537_v8 = vperm.slane %v4890_v6, 5 }
 0x155   :  { %v1186_v51 = vpop.f32.mrf.mxu2 }
 0x156   :  { %v1187_v31 = vadd.f32 %v1186_v51, %v5519_v57 }
 0x158   :  { %v1172_v53 = vpop.f32.mrf.mxu3  ;;  %v5526_v49 = vpop.f32.mrf.mxu0 }
 0x159   :  { %v5524_v42 = vadd.f32 %v1172_v53, %v1144_v47  ;;  %v5528_v26 = vpop.f32.mrf.mxu1 }
 0x15d   :  { %v5530_v9 = vpop.f32.mrf.mxu2 }
 0x15e   :  { %6142 = vst [vmem:[#allocation39_spill] sm:$0xff] %v5530_v9 }
 0x160   :  { %v5532_v59 = vpop.f32.mrf.mxu3  ;;  %v1215_v34 = vpop.f32.mrf.mxu0 }
 0x161   :  { %v1216_v37 = vadd.f32 %v1215_v34, %v1187_v31  ;;  %v1244_v45 = vpop.f32.mrf.mxu1 }
 0x163   :  { %v5534_v22 = vadd.f32 %v1244_v45, %v1216_v37 }
 0x165   :  { %6143 = vst [vmem:[#allocation40_spill] sm:$0xff] %v5534_v22  ;;  %v1191_v51 = vpop.f32.mrf.mxu2 }
 0x166   :  { %v1192_v53 = vadd.f32 %v1191_v51, %v5519_v57 }
 0x168   :  { %v1273_v47 = vpop.f32.mrf.mxu3  ;;  %v5541_v50 = vpop.f32.mrf.mxu0 }
 0x169   :  { %v1274_v3 = vadd.f32 %v1273_v47, %v5537_v8  ;;  %6144 = vst [vmem:[#allocation41_spill] sm:$0xff] %v5541_v50  ;;  %v5543_v10 = vpop.f32.mrf.mxu1 }
 0x16a   :  { %6145 = vst [vmem:[#allocation42_spill] sm:$0xff] %v5543_v10 }
 0x16d   :  { %v5545_v9 = vpop.f32.mrf.mxu2 }
 0x16e   :  { %6146 = vst [vmem:[#allocation43_spill] sm:$0xff] %v5545_v9 }
 0x170   :  { %v5547_v18 = vpop.f32.mrf.mxu3  ;;  %v1220_v34 = vpop.f32.mrf.mxu0 }
 0x171   :  { %6147 = vst [vmem:[#allocation44_spill] sm:$0xff] %v5547_v18  ;;  %v1221_v37 = vadd.f32 %v1220_v34, %v1192_v53  ;;  %v1249_v31 = vpop.f32.mrf.mxu1 }
 0x173   :  { %v5549_v45 = vadd.f32 %v1249_v31, %v1221_v37 }
 0x175   :  { %6148 = vst [vmem:[#allocation45_spill] sm:$0xff] %v5549_v45  ;;  %v1196_v6 = vpop.f32.mrf.mxu2 }
 0x176   :  { %v1197_v22 = vadd.f32 %v1196_v6, %v5519_v57 }
 0x178   :  { %v1278_v51 = vpop.f32.mrf.mxu3  ;;  %v5553_v47 = vpop.f32.mrf.mxu0 }
 0x179   :  { %v1279_v62 = vadd.f32 %v1278_v51, %v5537_v8  ;;  %6149 = vst [vmem:[#allocation46_spill] sm:$0xff] %v5553_v47  ;;  %v5555_v50 = vpop.f32.mrf.mxu1 }
 0x17a   :  { %6150 = vst [vmem:[#allocation47_spill] sm:$0xff] %v5555_v50 }
 0x17d   :  { %v5557_v10 = vpop.f32.mrf.mxu2 }
 0x17e   :  { %6151 = vst [vmem:[#allocation48_spill] sm:$0xff] %v5557_v10 }
 0x180   :  { %v5559_v9 = vpop.f32.mrf.mxu3  ;;  %v1225_v18 = vpop.f32.mrf.mxu0 }
 0x181   :  { %6152 = vst [vmem:[#allocation49_spill] sm:$0xff] %v5559_v9  ;;  %v1226_v11 = vadd.f32 %v1225_v18, %v1197_v22  ;;  %v1254_v53 = vpop.f32.mrf.mxu1 }
 0x183   :  { %v5561_v34 = vadd.f32 %v1254_v53, %v1226_v11 }
 0x185   :  { %6153 = vst [vmem:[#allocation50_spill] sm:$0xff] %v5561_v34  ;;  %v1201_v37 = vpop.f32.mrf.mxu2 }
 0x186   :  { %v1202_v31 = vadd.f32 %v1201_v37, %v5519_v57 }
 0x188   :  { %v1283_v6 = vpop.f32.mrf.mxu3  ;;  %v5565_v51 = vpop.f32.mrf.mxu0 }
 0x189   :  { %v1284_v45 = vadd.f32 %v1283_v6, %v5537_v8  ;;  %6154 = vst [vmem:[#allocation51_spill] sm:$0xff] %v5565_v51  ;;  %v5567_v47 = vpop.f32.mrf.mxu1 }
 0x18a   :  { %6155 = vst [vmem:[#allocation52_spill] sm:$0xff] %v5567_v47 }
 0x18d   :  { %v1203_v50 = vpop.f32.mrf.mxu2 }
 0x190   :  { %v5569_v15 = vpop.f32.mrf.mxu3  ;;  %v1230_v43 = vpop.f32.mrf.mxu0 }
 0x191   :  { %v1231_v9 = vadd.f32 %v1230_v43, %v1202_v31  ;;  %v1259_v46 = vpop.f32.mrf.mxu1 }
 0x193   :  { %v5571_v18 = vadd.f32 %v1259_v46, %v1231_v9 }
 0x195   :  { %v1302_v11 = vpop.f32.mrf.mxu2 }
 0x196   :  { %v1303_v22 = vadd.f32 %v1302_v11, %v1274_v3 }
 0x198   :  { %v1288_v53 = vpop.f32.mrf.mxu3  ;;  %v1232_v34 = vpop.f32.mrf.mxu0 }
 0x199   :  { %v5574_v37 = vadd.f32 %v1288_v53, %v5537_v8  ;;  %v1261_v6 = vpop.f32.mrf.mxu1 }
 0x19d   :  { %v5576_v39 = vpop.f32.mrf.mxu2 }
 0x19e   :  { %6156 = vst [vmem:[#allocation53_spill] sm:$0xff] %v5576_v39 }
 0x1a0   :  { %v5578_v32 = vpop.f32.mrf.mxu3  ;;  %v1331_v47 = vpop.f32.mrf.mxu0 }
 0x1a1   :  { %v5580_v51 = vadd.f32 %v1331_v47, %v1303_v22  ;;  %v1525_v10 = vpop.f32.mrf.mxu1 }
 0x1a2   :  { %v1555_v43 = vadd.f32 %v1525_v10, %v4938_v40  ;;  %v1117_v40 = vadd.f32 %v5526_v49, %v5395_v7  ;;  %v1204_v49 = vadd.f32 %v1203_v50, %v5519_v57 }
 0x1a3   :  { %6157 = vst [vmem:[#allocation54_spill] sm:$0xff] %v5580_v51 }
 0x1a4   :  { %v3722_v46 = vmul.f32 -1.442695, %v1555_v43 }
 0x1a5   :  { %v1307_v9 = vpop.f32.mrf.mxu2 }
 0x1a6   :  { %4013 = vpow2.f32 %v3722_v46  ;;  %v1308_v3 = vadd.f32 %v1307_v9, %v1279_v62  ;;  %v1146_v46 = vadd.f32 %v5528_v26, %v1117_v40  ;;  %v5600_v26 = vld [vmem:[%s6097_s5] ss:$0 sm:$0xff] }
 0x1a8   :  { %v1538_v31 = vpop.f32.mrf.mxu3  ;;  %v5584_v53 = vpop.f32.mrf.mxu0 }
 0x1a9   :  { %v1575_v11 = vadd.f32 %v1538_v31, %v5151_v30  ;;  %6158 = vst [vmem:[#allocation55_spill] sm:$0xff] %v5584_v53  ;;  %v1527_v21 = vpop.f32.mrf.mxu1 }
 0x1ab   :  { %v3723_v33 = vmul.f32 -1.442695, %v1575_v11 }
 0x1ac   :  { %v4014_v39 = vpop.eup %4013 }
 0x1ad   :  { %4015 = vpow2.f32 %v3723_v33  ;;  %v1559_v56 = vadd.f32 1.0, %v4014_v39  ;;  %v5586_v44 = vpop.f32.mrf.mxu2  ;;  %v1175_v39 = vadd.f32 %v5532_v59, %v1146_v46 }
 0x1ae   :  { %6159 = vst [vmem:[#allocation56_spill] sm:$0xff] %v5586_v44 }
 0x1af   :  { %4017 = vrcp.f32 %v1559_v56  ;;  %vm1565_vm3 = vweird.f32 %v1559_v56 }
 0x1b0   :  { %v1540_v47 = vpop.f32.mrf.mxu3 }
 0x1b1   :  { %v1336_v10 = vpop.f32.mrf.mxu0  ;;  %v1551_v62 = vpop.f32.mrf.mxu1 }
 0x1b2   :  { %v5590_v22 = vadd.f32 %v1336_v10, %v1308_v3  ;;  %v1571_v3 = vand.u32 2147483648, %v1559_v56 }
 0x1b3   :  { %v4016_v43 = vpop.eup %4015 }
 0x1b4   :  { %6160 = vst [vmem:[#allocation57_spill] sm:$0xff] %v5590_v22  ;;  %v1579_v30 = vadd.f32 1.0, %v4016_v43  ;;  %v1569_v43 = vand.u32 2147483647, %v1559_v56  ;;  %v1595_v22 = vadd.f32 %v5600_v26, %v1551_v62 }
 0x1b5   :  { %v4018_v21 = vpop.eup %4017  ;;  %v1312_v9 = vpop.f32.mrf.mxu2 }
 0x1b6   :  { %4019 = vrcp.f32 %v1579_v30  ;;  %v1561_v33 = vmul.f32 %v4018_v21, %v1559_v56  ;;  %v1313_v31 = vadd.f32 %v1312_v9, %v1284_v45  ;;  %vm1566_vm2 = vweird.f32 %v4018_v21 }
 0x1b7   :  { %v1233_v45 = vadd.f32 %v1232_v34, %v1204_v49  ;;  %vm1567_vm4 = vmor %vm1565_vm3, %vm1566_vm2  ;;  %vm1570_vm5 = vcmp.eq.f32.partialorder %v1569_v43, 8.507059e+37  ;;  %v1589_v49 = vand.u32 2147483647, %v1579_v30  ;;  %vm1585_vm7 = vweird.f32 %v1579_v30 }
 0x1b8   :  { %v1685_v11 = vpop.f32.mrf.mxu3  ;;  %v1562_v47 = vsub.f32 1.0, %v1561_v33  ;;  %vm1769_vm3 = vcmask 982496  }
 0x1b9   :  { %v1715_v51 = vadd.f32 %v1685_v11, %v1175_v39  ;;  %v5594_v53 = vpop.f32.mrf.mxu0  ;;  %v1553_v10 = vpop.f32.mrf.mxu1  ;;  %v1572_v39 = vor.u32 1.1754944e-38, %v1571_v3  ;;  %vm1590_vm9 = vcmp.eq.f32.partialorder %v1589_v49, 8.507059e+37 }
 0x1ba   :  { %6161 = vst [vmem:[#allocation58_spill] sm:$0xff] %v5594_v53  ;;  %v1563_v40 = vmul.f32 %v4018_v21, %v1562_v47  ;;  %v1262_v53 = vadd.f32 %v1261_v6, %v1233_v45 }
 0x1bb   :  { %v3772_v59 = vmul.f32 -1.442695, %v1715_v51  ;;  %v1591_v51 = vand.u32 2147483648, %v1579_v30 }
 0x1bc   :  { %v4020_v46 = vpop.eup %4019  ;;  %v1564_v33 = vadd.f32 %v4018_v21, %v1563_v40 }
 0x1bd   :  { %v1581_v9 = vmul.f32 %v4020_v46, %v1579_v30  ;;  %4021 = vpow2.f32 %v3772_v59  ;;  %v1314_v50 = vpop.f32.mrf.mxu2  ;;  %vm1586_vm6 = vweird.f32 %v4020_v46  ;;  %v1592_v6 = vor.u32 1.1754944e-38, %v1591_v51 }
 0x1be   :  { %v1568_v10 = vsel %vm1567_vm4, %v4018_v21, %v1564_v33  ;;  %vm1587_vm8 = vmor %vm1585_vm7, %vm1586_vm6 }
 0x1bf   :  { %v1582_v11 = vsub.f32 1.0, %v1581_v9  ;;  %v1573_v44 = vsel %vm1570_vm5, %v1572_v39, %v1568_v10 }
 0x1c0   :  { %v1687_v47 = vpop.f32.mrf.mxu3  ;;  %v1596_v7 = vmul.f32 %v1595_v22, %v1573_v44  ;;  %v1286_v44 = vadd.f32 %v5569_v15, %v5537_v8 }
 0x1c1   :  { %v1583_v57 = vmul.f32 %v4020_v46, %v1582_v11  ;;  %v1341_v34 = vpop.f32.mrf.mxu0  ;;  %v1698_v56 = vpop.f32.mrf.mxu1 }
 0x1c2   :  { %v5603_v40 = vadd.f32 %v1341_v34, %v1313_v31  ;;  %v1597_v21 = vadd.f32 %v1596_v7, %v5359_v5  ;;  %v1735_v43 = vadd.f32 %v1698_v56, %v1262_v53  ;;  %v1315_v30 = vadd.f32 %v1314_v50, %v1286_v44 }
 0x1c3   :  { %v4022_v59 = vpop.eup %4021  ;;  %v1584_v3 = vadd.f32 %v4020_v46, %v1583_v57 }
 0x1c4   :  { %v1719_v62 = vadd.f32 1.0, %v4022_v59  ;;  %4023 = vtanh.f32 %v1597_v21  ;;  %v3773_v9 = vmul.f32 -1.442695, %v1735_v43  ;;  %v5623_v43 = vld [vmem:[%s6098_s6] ss:$0 sm:$0xff] }
 0x1c5   :  { %v1588_v45 = vsel %vm1587_vm8, %v4020_v46, %v1584_v3  ;;  %v1317_v22 = vpop.f32.mrf.mxu2 }
 0x1c6   :  { %4025 = vrcp.f32 %v1719_v62  ;;  %v1593_v31 = vsel %vm1590_vm9, %v1592_v6, %v1588_v45  ;;  %v1318_v57 = vadd.f32 %v1317_v22, %v5574_v37  ;;  %v1731_v3 = vand.u32 2147483648, %v1719_v62 }
 0x1c7   :  { %4027 = vpow2.f32 %v3773_v9  ;;  %v1599_v7 = vsub.f32 1.0, %v1593_v31  ;;  %v1601_v47 = vmul.f32 0.0, %v1593_v31  ;;  %v1729_v6 = vand.u32 2147483647, %v1719_v62 }
 0x1c8   :  { %v1711_v33 = vpop.f32.mrf.mxu3  ;;  %vm1725_vm12 = vweird.f32 %v1719_v62  ;;  %v1732_v31 = vor.u32 1.1754944e-38, %v1731_v3 }
 0x1c9   :  { %v1343_v5 = vpop.f32.mrf.mxu0  ;;  %v1700_v39 = vpop.f32.mrf.mxu1  ;;  %vm1730_vm14 = vcmp.eq.f32.partialorder %v1729_v6, 8.507059e+37 }
 0x1ca   :  { %v5609_v53 = vadd.f32 %v1343_v5, %v1315_v30  ;;  %v4024_v46 = vpop.eup %4023  ;;  %v1291_v30 = vadd.f32 %v5578_v32, %v5537_v8  ;;  %v1755_v5 = vadd.f32 %v5623_v43, %v1711_v33 }
 0x1cb   :  { %v1600_v10 = vmul.f32 %v4024_v46, %v1599_v7 }
 0x1cc   :  { %v4026_v11 = vpop.eup %4025 }
 0x1cd   :  { %v4028_v51 = vpop.eup %4027  ;;  %v1721_v15 = vmul.f32 %v4026_v11, %v1719_v62  ;;  %v5611_v34 = vadd.f32 %v1601_v47, %v1600_v10  ;;  %vm1726_vm11 = vweird.f32 %v4026_v11  ;;  %v1319_v44 = vpop.f32.mrf.mxu2 }
 0x1ce   :  { %v1739_v49 = vadd.f32 1.0, %v4028_v51  ;;  %vm1727_vm13 = vmor %vm1725_vm12, %vm1726_vm11  ;;  %v1320_v39 = vadd.f32 %v1319_v44, %v1291_v30 }
 0x1cf   :  { %v1722_v56 = vsub.f32 1.0, %v1721_v15  ;;  %v1774_v37 = vpack.c.bf16 %v5611_v34, %v5611_v34  ;;  %1763 = vst.msk [vmem:[%s6099_s7] sm:$0xff] %vm1503_vm10, %v5611_v34 }
 0x1d0   :  { %4029 = vrcp.f32 %v1739_v49  ;;  %v1713_v50 = vpop.f32.mrf.mxu3  ;;  %v1751_v51 = vand.u32 2147483648, %v1739_v49  ;;  %v1749_v32 = vand.u32 2147483647, %v1739_v49  ;;  %vm1745_vm0 = vweird.f32 %v1739_v49 }
 0x1d1   :  { %v1723_v59 = vmul.f32 %v4026_v11, %v1722_v56  ;;  %v1346_v21 = vpop.f32.mrf.mxu0  ;;  %3775 = vmatmul.msk.bf16.vlgmr.msrb.gmra.mxu2 %vm1503_vm10, %v1774_v37  ;;  %3776 = vmatmul.msk.bf16.vlgmr.msrb.gmra.mxu1 %vm1503_vm10, %v1774_v37 }
 0x1d2   :  { %v5625_v45 = vadd.f32 %v1346_v21, %v1318_v57  ;;  %3777 = vmatmul.msk.bf16.vlgmr.msrb.gmra.mxu3 %vm1503_vm10, %v1774_v37  ;;  %1991 = vmatpush.bf16.msrb.mxu2 %v5078_v29  ;;  %v1752_v37 = vor.u32 1.1754944e-38, %v1751_v51  ;;  %vm1750_vm2 = vcmp.eq.f32.partialorder %v1749_v32, 8.507059e+37 }
 0x1d3   :  { %v1724_v9 = vadd.f32 %v4026_v11, %v1723_v59  ;;  %2072 = vmatpush.bf16.msrb.mxu1 %v5275_v0  ;;  %2085 = vmatpush.bf16.msrb.mxu3 %v5355_v17 }
 0x1d5   :  { %v1728_v22 = vsel %vm1727_vm13, %v4026_v11, %v1724_v9 }
 0x1d6   :  { %v4030_v57 = vpop.eup %4029  ;;  %v1733_v7 = vsel %vm1730_vm14, %v1732_v31, %v1728_v22  ;;  %1992 = vmatpush.bf16.msrb.mxu2 %v5126_v16 }
 0x1d7   :  { %v1741_v62 = vmul.f32 %v4030_v57, %v1739_v49  ;;  %2073 = vmatpush.bf16.msrb.mxu1 %v5296_v25  ;;  %2086 = vmatpush.bf16.msrb.mxu3 %v5370_v36  ;;  %v1756_v11 = vmul.f32 %v1755_v5, %v1733_v7  ;;  %vm1746_vm15 = vweird.f32 %v4030_v57 }
 0x1d8   :  { %vm1747_vm1 = vmor %vm1745_vm0, %vm1746_vm15 }
 0x1d9   :  { %v1742_v46 = vsub.f32 1.0, %v1741_v62  ;;  %v1348_v10 = vpop.f32.mrf.mxu0 }
 0x1da   :  { %v1349_v47 = vadd.f32 %v1348_v10, %v1320_v39  ;;  %1993 = vmatpush.bf16.msrb.mxu2 %v5191_v12 }
 0x1db   :  { %v1743_v15 = vmul.f32 %v4030_v57, %v1742_v46  ;;  %2074 = vmatpush.bf16.msrb.mxu1 %v5315_v23  ;;  %2087 = vmatpush.bf16.msrb.mxu3 %v5390_v60 }
 0x1dc   :  { %v1757_v33 = vadd.f32 %v1756_v11, %v1349_v47 }
 0x1dd   :  { %v1744_v56 = vadd.f32 %v4030_v57, %v1743_v15 }
 0x1de   :  { %4031 = vtanh.f32 %v1757_v33  ;;  %1994 = vmatpush.bf16.msrb.mxu2 %v5241_v61 }
 0x1df   :  { %v1748_v50 = vsel %vm1747_vm1, %v4030_v57, %v1744_v56  ;;  %2075 = vmatpush.bf16.msrb.mxu1 %v5338_v35  ;;  %2088 = vmatpush.bf16.msrb.mxu3 %v5407_v27 }
 0x1e0   :  { %v1753_v59 = vsel %vm1750_vm2, %v1752_v37, %v1748_v50 }
 0x1e1   :  { %v1759_v3 = vsub.f32 1.0, %v1753_v59  ;;  %v1761_v9 = vmul.f32 0.0, %v1753_v59 }
 0x1e4   :  { %v4032_v21 = vpop.eup %4031 }
 0x1e5   :  { %v1760_v6 = vmul.f32 %v4032_v21, %v1759_v3 }
 0x1e7   :  { %v5645_v44 = vadd.f32 %v1761_v9, %v1760_v6 }
 0x1e9   :  { %1765 = vrot.lane.b32.xlu0 %v5645_v44, %s4176_s1  ;;  %v1868_v49 = vpack.c.bf16 %v5645_v44, %v5645_v44 }
 0x1eb   :  { %3780 = vmatmul.msk.bf16.vlgmr.msra.gmra.mxu2 %vm1503_vm10, %v1868_v49  ;;  %3781 = vmatmul.msk.bf16.vlgmr.msrb.gmra.mxu0 %vm1503_vm10, %v1868_v49 }
 0x1ec   :  { %3782 = vmatmul.msk.bf16.vlgmr.msra.gmra.mxu1 %vm1503_vm10, %v1868_v49  ;;  %2098 = vmatpush.bf16.msra.mxu2 %v5413_v41 }
 0x1ed   :  { %2174 = vmatpush.bf16.msrb.mxu0 %v5074_v28  ;;  %2187 = vmatpush.bf16.msra.mxu1 %v5078_v29 }
 0x1f0   :  { %2099 = vmatpush.bf16.msra.mxu2 %v5426_v54 }
 0x1f1   :  { %2175 = vmatpush.bf16.msrb.mxu0 %v5121_v14  ;;  %2188 = vmatpush.bf16.msra.mxu1 %v5126_v16 }
 0x1f4   :  { %2100 = vmatpush.bf16.msra.mxu2 %v5446_v38 }
 0x1f5   :  { %2176 = vmatpush.bf16.msrb.mxu0 %v5179_v2  ;;  %2189 = vmatpush.bf16.msra.mxu1 %v5191_v12 }
 0x1f8   :  { %2101 = vmatpush.bf16.msra.mxu2 %v5459_v55 }
 0x1f9   :  { %2177 = vmatpush.bf16.msrb.mxu0 %v5234_v13  ;;  %2190 = vmatpush.bf16.msra.mxu1 %v5241_v61 }
 0x24e   :  { %v1800_v22 = vpop.f32.mrf.mxu1 }
 0x24f   :  { %v1837_v31 = vadd.f32 %v1800_v22, %v5177_v1 }
 0x251   :  { %v3779_v57 = vmul.f32 -1.442695, %v1837_v31 }
 0x253   :  { %4033 = vpow2.f32 %v3779_v57 }
 0x254   :  { %v1787_v30 = vpop.f32.mrf.mxu2 }
 0x255   :  { %v1817_v5 = vadd.f32 %v1787_v30, %v4967_v63  ;;  %v1813_v62 = vpop.f32.mrf.mxu3 }
 0x256   :  { %v1802_v7 = vpop.f32.mrf.mxu1 }
 0x257   :  { %v3778_v39 = vmul.f32 -1.442695, %v1817_v5 }
 0x259   :  { %v4034_v46 = vpop.eup %4033  ;;  %4035 = vpow2.f32 %v3778_v39 }
 0x25a   :  { %v1841_v10 = vadd.f32 1.0, %v4034_v46 }
 0x25b   :  { %v1766_v11 = vpop.permute.xlu0 %1765 }
 0x25c   :  { %3774 = vst.msk [vmem:[%s6099_s7 + $0x38] sm:$0xff] %vm1769_vm3, %v1766_v11  ;;  %v1789_v47 = vpop.f32.mrf.mxu2  ;;  %4037 = vrcp.f32 %v1841_v10  ;;  %vm1847_vm9 = vweird.f32 %v1841_v10 }
 0x25d   :  { %v1815_v1 = vpop.f32.mrf.mxu3  ;;  %v1857_v47 = vadd.f32 %v5600_v26, %v1813_v62 }
 0x25f   :  { %v4036_v51 = vpop.eup %4035 }
 0x260   :  { %v1821_v15 = vadd.f32 1.0, %v4036_v51 }
 0x262   :  { %4039 = vrcp.f32 %v1821_v15  ;;  %v4038_v63 = vpop.eup %4037  ;;  %v1833_v9 = vand.u32 2147483648, %v1821_v15  ;;  %v1831_v22 = vand.u32 2147483647, %v1821_v15  ;;  %vm1827_vm5 = vweird.f32 %v1821_v15 }
 0x263   :  { %v1843_v32 = vmul.f32 %v4038_v63, %v1841_v10  ;;  %vm1848_vm8 = vweird.f32 %v4038_v63 }
 0x264   :  { %vm1832_vm7 = vcmp.eq.f32.partialorder %v1831_v22, 8.507059e+37  ;;  %vm1849_vm11 = vmor %vm1847_vm9, %vm1848_vm8 }
 0x265   :  { %v1844_v3 = vsub.f32 1.0, %v1843_v32 }
 0x267   :  { %v1845_v57 = vmul.f32 %v4038_v63, %v1844_v3 }
 0x268   :  { %v1894_v33 = vpop.f32.mrf.mxu0  ;;  %v4040_v56 = vpop.eup %4039 }
 0x269   :  { %v1931_v37 = vadd.f32 %v1894_v33, %v5571_v18  ;;  %v5673_v50 = vpop.f32.mrf.mxu1  ;;  %v1823_v59 = vmul.f32 %v4040_v56, %v1821_v15  ;;  %vm1828_vm4 = vweird.f32 %v4040_v56  ;;  %v1834_v18 = vor.u32 1.1754944e-38, %v1833_v9 }
 0x26a   :  { %vm1829_vm6 = vmor %vm1827_vm5, %vm1828_vm4  ;;  %v1846_v51 = vadd.f32 %v4038_v63, %v1845_v57  ;;  %v1073_v33 = vadd.f32 %v5392_v4, %v5202_v24 }
 0x26b   :  { %v3784_v21 = vmul.f32 -1.442695, %v1931_v37  ;;  %v1824_v6 = vsub.f32 1.0, %v1823_v59  ;;  %v1851_v59 = vand.u32 2147483647, %v1841_v10 }
 0x26d   :  { %4041 = vpow2.f32 %v3784_v21  ;;  %v1825_v49 = vmul.f32 %v4040_v56, %v1824_v6  ;;  %v1850_v21 = vsel %vm1849_vm11, %v4038_v63, %v1846_v51  ;;  %vm1852_vm12 = vcmp.eq.f32.partialorder %v1851_v59, 8.507059e+37 }
 0x26e   :  { %v1881_v31 = vpop.f32.mrf.mxu2 }
 0x26f   :  { %v1911_v30 = vadd.f32 %v1881_v31, %v5524_v42  ;;  %v1826_v5 = vadd.f32 %v4040_v56, %v1825_v49  ;;  %v1853_v42 = vand.u32 2147483648, %v1841_v10 }
 0x270   :  { %v1896_v7 = vpop.f32.mrf.mxu0 }
 0x271   :  { %v3783_v39 = vmul.f32 -1.442695, %v1911_v30  ;;  %v1909_v46 = vpop.f32.mrf.mxu1  ;;  %v1830_v11 = vsel %vm1829_vm6, %v4040_v56, %v1826_v5  ;;  %v1854_v62 = vor.u32 1.1754944e-38, %v1853_v42 }
 0x272   :  { %v1835_v32 = vsel %vm1832_vm7, %v1834_v18, %v1830_v11 }
 0x273   :  { %v4042_v1 = vpop.eup %4041  ;;  %4043 = vpow2.f32 %v3783_v39  ;;  %v1858_v37 = vmul.f32 %v1857_v47, %v1835_v32  ;;  %v1855_v9 = vsel %vm1852_vm12, %v1854_v62, %v1850_v21  ;;  %v1951_v32 = vadd.f32 %v5623_v43, %v5673_v50 }
 0x274   :  { %v5679_v15 = vadd.f32 1.0, %v4042_v1  ;;  %v1861_v4 = vsub.f32 1.0, %v1855_v9  ;;  %v1863_v57 = vmul.f32 %v1855_v9, %v5611_v34 }
 0x275   :  { %v1859_v3 = vadd.f32 %v1858_v37, %v1073_v33 }
 0x276   :  { %v1883_v56 = vpop.f32.mrf.mxu2  ;;  %4045 = vrcp.f32 %v5679_v15  ;;  %v1947_v59 = vand.u32 2147483648, %v5679_v15  ;;  %vm1941_vm2 = vweird.f32 %v5679_v15 }
 0x277   :  { %4047 = vtanh.f32 %v1859_v3  ;;  %v1945_v56 = vand.u32 2147483647, %v5679_v15 }
 0x278   :  { %v1948_v62 = vor.u32 1.1754944e-38, %v1947_v59  ;;  %v6166_v59 = vld [vmem:[#allocation37_spill] sm:$0xff] }
 0x279   :  { %v4044_v6 = vpop.eup %4043  ;;  %vm1946_vm5 = vcmp.eq.f32.partialorder %v1945_v56, 8.507059e+37  ;;  %v6167_v56 = vld [vmem:[#allocation38_spill] sm:$0xff] }
 0x27a   :  { %v1915_v49 = vadd.f32 1.0, %v4044_v6 }
 0x27c   :  { %4049 = vrcp.f32 %v1915_v49  ;;  %v4046_v24 = vpop.eup %4045  ;;  %v1927_v34 = vand.u32 2147483648, %v1915_v49  ;;  %v1925_v11 = vand.u32 2147483647, %v1915_v49  ;;  %vm1921_vm14 = vweird.f32 %v1915_v49 }
 0x27d   :  { %v4048_v22 = vpop.eup %4047  ;;  %v1937_v10 = vmul.f32 %v4046_v24, %v5679_v15  ;;  %vm1942_vm1 = vweird.f32 %v4046_v24 }
 0x27e   :  { %v1862_v31 = vmul.f32 %v4048_v22, %v1861_v4  ;;  %v1928_v51 = vor.u32 1.1754944e-38, %v1927_v34  ;;  %vm1926_vm0 = vcmp.eq.f32.partialorder %v1925_v11, 8.507059e+37  ;;  %vm1943_vm4 = vmor %vm1941_vm2, %vm1942_vm1 }
 0x27f   :  { %v1938_v18 = vsub.f32 1.0, %v1937_v10  ;;  %v6162_v10 = vld [vmem:[#allocation9_spill] sm:$0xff] }
 0x280   :  { %v5684_v30 = vadd.f32 %v1863_v57, %v1862_v31 }
 0x281   :  { %v1939_v47 = vmul.f32 %v4046_v24, %v1938_v18 }
 0x282   :  { %v4050_v63 = vpop.eup %4049  ;;  %3785 = vst.msk [vmem:[%s6099_s7 + $0x8] sm:$0xff] %vm1503_vm10, %v5684_v30  ;;  %v1970_v7 = vpack.c.bf16 %v5684_v30, %v5684_v30 }
 0x283   :  { %v1917_v5 = vmul.f32 %v4050_v63, %v1915_v49  ;;  %vm1922_vm13 = vweird.f32 %v4050_v63  ;;  %v1940_v37 = vadd.f32 %v4046_v24, %v1939_v47 }
 0x284   :  { %3787 = vmatmul.msk.bf16.vlgmr.msra.gmra.mxu3 %vm1503_vm10, %v1970_v7  ;;  %3788 = vmatmul.msk.bf16.vlgmr.msrb.gmra.mxu2 %vm1503_vm10, %v1970_v7  ;;  %vm1923_vm15 = vmor %vm1921_vm14, %vm1922_vm13 }
 0x285   :  { %v1918_v39 = vsub.f32 1.0, %v1917_v5  ;;  %3789 = vmatmul.msk.bf16.vlgmr.msra.gmra.mxu0 %vm1503_vm10, %v1970_v7  ;;  %2200 = vmatpush.bf16.msra.mxu3 %v5270_v48  ;;  %v1944_v21 = vsel %vm1943_vm4, %v4046_v24, %v1940_v37 }
 0x286   :  { %2268 = vmatpush.bf16.msrb.mxu2 %v5275_v0  ;;  %2281 = vmatpush.bf16.msra.mxu0 %v5355_v17  ;;  %v1949_v6 = vsel %vm1946_vm5, %v1948_v62, %v1944_v21 }
 0x287   :  { %v1919_v46 = vmul.f32 %v4050_v63, %v1918_v39  ;;  %v1955_v15 = vsub.f32 1.0, %v1949_v6 }
 0x289   :  { %v1920_v1 = vadd.f32 %v4050_v63, %v1919_v46  ;;  %2201 = vmatpush.bf16.msra.mxu3 %v5289_v58 }
 0x28a   :  { %2269 = vmatpush.bf16.msrb.mxu2 %v5296_v25  ;;  %2282 = vmatpush.bf16.msra.mxu0 %v5370_v36 }
 0x28b   :  { %v1924_v33 = vsel %vm1923_vm15, %v4050_v63, %v1920_v1  ;;  %v6163_v1 = vld [vmem:[#allocation18_spill] sm:$0xff] }
 0x28c   :  { %v1929_v42 = vsel %vm1926_vm0, %v1928_v51, %v1924_v33  ;;  %v6164_v51 = vld [vmem:[#allocation34_spill] sm:$0xff] }
 0x28d   :  { %v1952_v3 = vmul.f32 %v1951_v32, %v1929_v42  ;;  %2202 = vmatpush.bf16.msra.mxu3 %v5310_v19  ;;  %v6165_v42 = vld [vmem:[#allocation35_spill] sm:$0xff] }
 0x28e   :  { %2270 = vmatpush.bf16.msrb.mxu2 %v5315_v23  ;;  %2283 = vmatpush.bf16.msra.mxu0 %v5390_v60 }
 0x28f   :  { %v1953_v50 = vadd.f32 %v1952_v3, %v5625_v45  ;;  %v1957_v45 = vmul.f32 %v1949_v6, %v5645_v44 }
 0x291   :  { %4051 = vtanh.f32 %v1953_v50  ;;  %2203 = vmatpush.bf16.msra.mxu3 %v5331_v52  ;;  %v6168_v50 = vld [vmem:[#allocation48_spill] sm:$0xff] }
 0x292   :  { %2271 = vmatpush.bf16.msrb.mxu2 %v5338_v35  ;;  %2284 = vmatpush.bf16.msra.mxu0 %v5407_v27  ;;  %v1199_v21 = vadd.f32 %v6168_v50, %v6167_v56 }
 0x297   :  { %v4052_v9 = vpop.eup %4051 }
 0x298   :  { %v1956_v49 = vmul.f32 %v4052_v9, %v1955_v15  ;;  %v6169_v15 = vld [vmem:[#allocation51_spill] sm:$0xff] }
 0x299   :  { %v1228_v9 = vadd.f32 %v6169_v15, %v1199_v21 }
 0x29a   :  { %v5715_v4 = vadd.f32 %v1957_v45, %v1956_v49 }
 0x29c   :  { %1962 = vrot.lane.b32.xlu0 %v5715_v4, %s4176_s1  ;;  %v2064_v24 = vpack.c.bf16 %v5715_v4, %v5715_v4 }
 0x29e   :  { %3792 = vmatmul.msk.bf16.vlgmr.msrb.gmra.mxu1 %vm1503_vm10, %v2064_v24  ;;  %3793 = vmatmul.msk.bf16.vlgmr.msrb.gmra.mxu3 %vm1503_vm10, %v2064_v24 }
 0x29f   :  { %3794 = vmatmul.msk.bf16.vlgmr.msra.gmra.mxu2 %vm1503_vm10, %v2064_v24  ;;  %2294 = vmatpush.bf16.msrb.mxu1 %v5413_v41 }
 0x2a0   :  { %2370 = vmatpush.bf16.msrb.mxu3 %v5074_v28  ;;  %2383 = vmatpush.bf16.msra.mxu2 %v5078_v29 }
 0x2a3   :  { %2295 = vmatpush.bf16.msrb.mxu1 %v5426_v54 }
 0x2a4   :  { %2371 = vmatpush.bf16.msrb.mxu3 %v5121_v14  ;;  %2384 = vmatpush.bf16.msra.mxu2 %v5126_v16 }
 0x2a7   :  { %2296 = vmatpush.bf16.msrb.mxu1 %v5446_v38 }
 0x2a8   :  { %2372 = vmatpush.bf16.msrb.mxu3 %v5179_v2  ;;  %2385 = vmatpush.bf16.msra.mxu2 %v5191_v12 }
 0x2ab   :  { %2297 = vmatpush.bf16.msrb.mxu1 %v5459_v55 }
 0x2ac   :  { %2373 = vmatpush.bf16.msrb.mxu3 %v5234_v13  ;;  %2386 = vmatpush.bf16.msra.mxu2 %v5241_v61 }
 0x302   :  { %v2009_v44 = vpop.f32.mrf.mxu0 }
 0x307   :  { %v1983_v22 = vpop.f32.mrf.mxu3  ;;  %v1996_v31 = vpop.f32.mrf.mxu2 }
 0x308   :  { %v2013_v57 = vadd.f32 %v1983_v22, %v4994_v20  ;;  %v2033_v63 = vadd.f32 %v1996_v31, %v6162_v10  ;;  %v1112_v20 = vadd.f32 %v6164_v51, %v6163_v1  ;;  %v6170_v10 = vld [vmem:[#allocation52_spill] sm:$0xff] }
 0x30a   :  { %v3790_v5 = vmul.f32 -1.442695, %v2013_v57  ;;  %v3791_v7 = vmul.f32 -1.442695, %v2033_v63  ;;  %v2011_v18 = vpop.f32.mrf.mxu0  ;;  %v1141_v37 = vadd.f32 %v6165_v42, %v1112_v20  ;;  %v1257_v63 = vadd.f32 %v6170_v10, %v1228_v9 }
 0x30c   :  { %4053 = vpow2.f32 %v3790_v5  ;;  %v1170_v3 = vadd.f32 %v6166_v59, %v1141_v37  ;;  %v2053_v59 = vadd.f32 %v5600_v26, %v2009_v44 }
 0x30d   :  { %4055 = vpow2.f32 %v3791_v7 }
 0x30e   :  { %v1963_v39 = vpop.permute.xlu0 %1962 }
 0x30f   :  { %3786 = vst.msk [vmem:[%s6099_s7 + $0x30] sm:$0xff] %vm1769_vm3, %v1963_v39  ;;  %v1985_v34 = vpop.f32.mrf.mxu3  ;;  %v1998_v46 = vpop.f32.mrf.mxu2 }
 0x312   :  { %v4054_v11 = vpop.eup %4053 }
 0x313   :  { %v4056_v47 = vpop.eup %4055  ;;  %v2017_v32 = vadd.f32 1.0, %v4054_v11 }
 0x314   :  { %v2037_v33 = vadd.f32 1.0, %v4056_v47 }
 0x315   :  { %4057 = vrcp.f32 %v2017_v32  ;;  %v2029_v5 = vand.u32 2147483648, %v2017_v32  ;;  %v2027_v39 = vand.u32 2147483647, %v2017_v32  ;;  %vm2023_vm7 = vweird.f32 %v2017_v32 }
 0x316   :  { %4059 = vrcp.f32 %v2037_v33  ;;  %v2049_v9 = vand.u32 2147483648, %v2037_v33  ;;  %vm2043_vm12 = vweird.f32 %v2037_v33 }
 0x317   :  { %v2030_v42 = vor.u32 1.1754944e-38, %v2029_v5  ;;  %vm2028_vm9 = vcmp.eq.f32.partialorder %v2027_v39, 8.507059e+37 }
 0x318   :  { %v2050_v44 = vor.u32 1.1754944e-38, %v2049_v9 }
 0x31b   :  { %v2077_v62 = vpop.f32.mrf.mxu1  ;;  %v4058_v6 = vpop.eup %4057 }
 0x31c   :  { %v2107_v49 = vadd.f32 %v2077_v62, %v1170_v3  ;;  %v4060_v45 = vpop.eup %4059  ;;  %v2019_v24 = vmul.f32 %v4058_v6, %v2017_v32  ;;  %vm2024_vm6 = vweird.f32 %v4058_v6 }
 0x31d   :  { %v2039_v22 = vmul.f32 %v4060_v45, %v2037_v33  ;;  %vm2025_vm8 = vmor %vm2023_vm7, %vm2024_vm6  ;;  %vm2044_vm11 = vweird.f32 %v4060_v45 }
 0x31e   :  { %v3795_v31 = vmul.f32 -1.442695, %v2107_v49  ;;  %v2020_v57 = vsub.f32 1.0, %v2019_v24  ;;  %v2047_v24 = vand.u32 2147483647, %v2037_v33  ;;  %vm2045_vm13 = vmor %vm2043_vm12, %vm2044_vm11 }
 0x31f   :  { %v2040_v7 = vsub.f32 1.0, %v2039_v22  ;;  %v6171_v22 = vld [vmem:[#allocation20_spill] sm:$0xff] }
 0x320   :  { %4061 = vpow2.f32 %v3795_v31  ;;  %v2021_v18 = vmul.f32 %v4058_v6, %v2020_v57  ;;  %vm2048_vm14 = vcmp.eq.f32.partialorder %v2047_v24, 8.507059e+37 }
 0x321   :  { %v2090_v34 = vpop.f32.mrf.mxu3  ;;  %v2041_v46 = vmul.f32 %v4060_v45, %v2040_v7 }
 0x322   :  { %v2127_v11 = vadd.f32 %v2090_v34, %v1257_v63  ;;  %v2103_v47 = vpop.f32.mrf.mxu2  ;;  %v2022_v51 = vadd.f32 %v4058_v6, %v2021_v18 }
 0x323   :  { %v2079_v20 = vpop.f32.mrf.mxu1  ;;  %v2042_v62 = vadd.f32 %v4060_v45, %v2041_v46 }
 0x324   :  { %v3796_v37 = vmul.f32 -1.442695, %v2127_v11  ;;  %v2026_v3 = vsel %vm2025_vm8, %v4058_v6, %v2022_v51 }
 0x325   :  { %v2031_v21 = vsel %vm2028_vm9, %v2030_v42, %v2026_v3  ;;  %v2046_v57 = vsel %vm2045_vm13, %v4060_v45, %v2042_v62 }
 0x326   :  { %v4062_v50 = vpop.eup %4061  ;;  %4063 = vpow2.f32 %v3796_v37  ;;  %v2054_v15 = vmul.f32 %v2053_v59, %v2031_v21  ;;  %v2051_v63 = vsel %vm2048_vm14, %v2050_v44, %v2046_v57 }
 0x327   :  { %v2111_v49 = vadd.f32 1.0, %v4062_v50  ;;  %v2057_v18 = vsub.f32 1.0, %v2051_v63  ;;  %v2059_v33 = vmul.f32 %v2051_v63, %v5684_v30 }
 0x328   :  { %v2055_v32 = vadd.f32 %v2054_v15, %v6171_v22  ;;  %v2147_v15 = vadd.f32 %v5623_v43, %v2103_v47 }
 0x329   :  { %4065 = vrcp.f32 %v2111_v49  ;;  %v2092_v31 = vpop.f32.mrf.mxu3  ;;  %v2123_v51 = vand.u32 2147483648, %v2111_v49  ;;  %v2121_v42 = vand.u32 2147483647, %v2111_v49  ;;  %vm2117_vm0 = vweird.f32 %v2111_v49 }
 0x32a   :  { %v2105_v10 = vpop.f32.mrf.mxu2  ;;  %4067 = vtanh.f32 %v2055_v32 }
 0x32b   :  { %v2124_v50 = vor.u32 1.1754944e-38, %v2123_v51  ;;  %vm2122_vm2 = vcmp.eq.f32.partialorder %v2121_v42, 8.507059e+37 }
 0x32c   :  { %v4064_v6 = vpop.eup %4063 }
 0x32d   :  { %v2131_v5 = vadd.f32 1.0, %v4064_v6 }
 0x32f   :  { %v4066_v7 = vpop.eup %4065  ;;  %4069 = vrcp.f32 %v2131_v5  ;;  %v2143_v22 = vand.u32 2147483648, %v2131_v5  ;;  %v2141_v32 = vand.u32 2147483647, %v2131_v5  ;;  %vm2137_vm5 = vweird.f32 %v2131_v5 }
 0x330   :  { %v2113_v39 = vmul.f32 %v4066_v7, %v2111_v49  ;;  %v4068_v34 = vpop.eup %4067  ;;  %vm2118_vm15 = vweird.f32 %v4066_v7 }
 0x331   :  { %v2058_v46 = vmul.f32 %v4068_v34, %v2057_v18  ;;  %vm2119_vm1 = vmor %vm2117_vm0, %vm2118_vm15  ;;  %v2144_v10 = vor.u32 1.1754944e-38, %v2143_v22  ;;  %vm2142_vm7 = vcmp.eq.f32.partialorder %v2141_v32, 8.507059e+37  ;;  %v6172_v34 = vld [vmem:[#allocation3_spill] sm:$0xff] }
 0x332   :  { %v2114_v11 = vsub.f32 1.0, %v2113_v39 }
 0x333   :  { %v5753_v20 = vadd.f32 %v2059_v33, %v2058_v46  ;;  %v6173_v33 = vld [vmem:[#allocation10_spill] sm:$0xff] }
 0x334   :  { %v2115_v45 = vmul.f32 %v4066_v7, %v2114_v11 }
 0x335   :  { %v4070_v37 = vpop.eup %4069  ;;  %3797 = vst.msk [vmem:[%s6099_s7 + $0x10] sm:$0xff] %vm1503_vm10, %v5753_v20  ;;  %v2166_v30 = vpack.c.bf16 %v5753_v20, %v5753_v20 }
 0x336   :  { %v2133_v59 = vmul.f32 %v4070_v37, %v2131_v5  ;;  %v2116_v3 = vadd.f32 %v4066_v7, %v2115_v45  ;;  %vm2138_vm4 = vweird.f32 %v4070_v37 }
 0x337   :  { %3799 = vmatmul.msk.bf16.vlgmr.msrb.gmra.mxu0 %vm1503_vm10, %v2166_v30  ;;  %3800 = vmatmul.msk.bf16.vlgmr.msra.gmra.mxu1 %vm1503_vm10, %v2166_v30  ;;  %vm2139_vm6 = vmor %vm2137_vm5, %vm2138_vm4 }
 0x338   :  { %v2134_v21 = vsub.f32 1.0, %v2133_v59  ;;  %v2120_v62 = vsel %vm2119_vm1, %v4066_v7, %v2116_v3  ;;  %3801 = vmatmul.msk.bf16.vlgmr.msra.gmra.mxu3 %vm1503_vm10, %v2166_v30  ;;  %2396 = vmatpush.bf16.msrb.mxu0 %v5270_v48 }
 0x339   :  { %v2125_v9 = vsel %vm2122_vm2, %v2124_v50, %v2120_v62  ;;  %2464 = vmatpush.bf16.msra.mxu1 %v5275_v0  ;;  %2477 = vmatpush.bf16.msra.mxu3 %v5355_v17 }
 0x33a   :  { %v2148_v49 = vmul.f32 %v2147_v15, %v2125_v9  ;;  %v2135_v24 = vmul.f32 %v4070_v37, %v2134_v21 }
 0x33c   :  { %v2149_v47 = vadd.f32 %v2148_v49, %v5609_v53  ;;  %v2136_v31 = vadd.f32 %v4070_v37, %v2135_v24  ;;  %2397 = vmatpush.bf16.msrb.mxu0 %v5289_v58  ;;  %v6174_v24 = vld [vmem:[#allocation50_spill] sm:$0xff] }
 0x33d   :  { %2465 = vmatpush.bf16.msra.mxu1 %v5296_v25  ;;  %2478 = vmatpush.bf16.msra.mxu3 %v5370_v36 }
 0x33e   :  { %4071 = vtanh.f32 %v2149_v47  ;;  %v2140_v57 = vsel %vm2139_vm6, %v4070_v37, %v2136_v31 }
 0x33f   :  { %v2145_v44 = vsel %vm2142_vm7, %v2144_v10, %v2140_v57 }
 0x340   :  { %2398 = vmatpush.bf16.msrb.mxu0 %v5310_v19  ;;  %v2151_v53 = vsub.f32 1.0, %v2145_v44  ;;  %v2153_v5 = vmul.f32 %v2145_v44, %v5715_v4 }
 0x341   :  { %2466 = vmatpush.bf16.msra.mxu1 %v5315_v23  ;;  %2479 = vmatpush.bf16.msra.mxu3 %v5390_v60 }
 0x344   :  { %v4072_v6 = vpop.eup %4071  ;;  %2399 = vmatpush.bf16.msrb.mxu0 %v5331_v52 }
 0x345   :  { %v2152_v63 = vmul.f32 %v4072_v6, %v2151_v53  ;;  %2467 = vmatpush.bf16.msra.mxu1 %v5338_v35  ;;  %2480 = vmatpush.bf16.msra.mxu3 %v5407_v27 }
 0x347   :  { %v5780_v7 = vadd.f32 %v2153_v5, %v2152_v63 }
 0x349   :  { %2158 = vrot.lane.b32.xlu1 %v5780_v7, %s4176_s1  ;;  %v2260_v18 = vpack.c.bf16 %v5780_v7, %v5780_v7 }
 0x34b   :  { %3804 = vmatmul.msk.bf16.vlgmr.msrb.gmra.mxu2 %vm1503_vm10, %v2260_v18  ;;  %3805 = vmatmul.msk.bf16.vlgmr.msra.gmra.mxu0 %vm1503_vm10, %v2260_v18 }
 0x34c   :  { %3806 = vmatmul.msk.bf16.vlgmr.msrb.gmra.mxu1 %vm1503_vm10, %v2260_v18  ;;  %2490 = vmatpush.bf16.msrb.mxu2 %v5413_v41 }
 0x34d   :  { %2564 = vmatpush.bf16.msra.mxu0 %v5074_v28  ;;  %2577 = vmatpush.bf16.msrb.mxu1 %v5078_v29 }
 0x350   :  { %2491 = vmatpush.bf16.msrb.mxu2 %v5426_v54 }
 0x351   :  { %2565 = vmatpush.bf16.msra.mxu0 %v5121_v14  ;;  %2578 = vmatpush.bf16.msrb.mxu1 %v5126_v16 }
 0x354   :  { %2492 = vmatpush.bf16.msrb.mxu2 %v5446_v38 }
 0x355   :  { %2566 = vmatpush.bf16.msra.mxu0 %v5179_v2  ;;  %2579 = vmatpush.bf16.msrb.mxu1 %v5191_v12 }
 0x358   :  { %2493 = vmatpush.bf16.msrb.mxu2 %v5459_v55 }
 0x359   :  { %2567 = vmatpush.bf16.msra.mxu0 %v5234_v13  ;;  %2580 = vmatpush.bf16.msrb.mxu1 %v5241_v61 }
 0x3b4   :  { %v2179_v4 = vpop.f32.mrf.mxu0  ;;  %v2192_v39 = vpop.f32.mrf.mxu1 }
 0x3b5   :  { %v2209_v46 = vadd.f32 %v2179_v4, %v6172_v34  ;;  %v2229_v11 = vadd.f32 %v2192_v39, %v6173_v33  ;;  %v6175_v39 = vld [vmem:[#allocation33_spill] sm:$0xff] }
 0x3b7   :  { %v3802_v51 = vmul.f32 -1.442695, %v2209_v46  ;;  %v3803_v45 = vmul.f32 -1.442695, %v2229_v11 }
 0x3b9   :  { %4073 = vpow2.f32 %v3802_v51 }
 0x3ba   :  { %4075 = vpow2.f32 %v3803_v45 }
 0x3bb   :  { %v2159_v42 = vpop.permute.xlu1 %2158  ;;  %v2205_v37 = vpop.f32.mrf.mxu3 }
 0x3bc   :  { %3798 = vst.msk [vmem:[%s6099_s7 + $0x28] sm:$0xff] %vm1769_vm3, %v2159_v42  ;;  %v2181_v59 = vpop.f32.mrf.mxu0  ;;  %v2194_v3 = vpop.f32.mrf.mxu1 }
 0x3bd   :  { %v2249_v59 = vadd.f32 %v5600_v26, %v2205_v37 }
 0x3bf   :  { %v4074_v30 = vpop.eup %4073 }
 0x3c0   :  { %v4076_v50 = vpop.eup %4075  ;;  %v2213_v21 = vadd.f32 1.0, %v4074_v30 }
 0x3c1   :  { %v2233_v62 = vadd.f32 1.0, %v4076_v50 }
 0x3c2   :  { %4077 = vrcp.f32 %v2213_v21  ;;  %v2225_v6 = vand.u32 2147483648, %v2213_v21  ;;  %v2223_v5 = vand.u32 2147483647, %v2213_v21  ;;  %vm2219_vm9 = vweird.f32 %v2213_v21 }
 0x3c3   :  { %4079 = vrcp.f32 %v2233_v62  ;;  %v2207_v15 = vpop.f32.mrf.mxu3  ;;  %vm2239_vm14 = vweird.f32 %v2233_v62 }
 0x3c4   :  { %v2226_v11 = vor.u32 1.1754944e-38, %v2225_v6  ;;  %vm2224_vm12 = vcmp.eq.f32.partialorder %v2223_v5, 8.507059e+37  ;;  %v6176_v15 = vld [vmem:[#allocation11_spill] sm:$0xff] }
 0x3c8   :  { %v2286_v9 = vpop.f32.mrf.mxu0  ;;  %v4078_v49 = vpop.eup %4077 }
 0x3c9   :  { %v2323_v22 = vadd.f32 %v2286_v9, %v6174_v24  ;;  %v5808_v32 = vpop.f32.mrf.mxu1  ;;  %v4080_v47 = vpop.eup %4079  ;;  %v2215_v31 = vmul.f32 %v4078_v49, %v2213_v21  ;;  %vm2220_vm8 = vweird.f32 %v4078_v49  ;;  %v6177_v9 = vld [vmem:[#allocation24_spill] sm:$0xff] }
 0x3ca   :  { %v2235_v57 = vmul.f32 %v4080_v47, %v2233_v62  ;;  %vm2221_vm11 = vmor %vm2219_vm9, %vm2220_vm8  ;;  %vm2240_vm13 = vweird.f32 %v4080_v47  ;;  %v1078_v24 = vadd.f32 %v6177_v9, %v6176_v15 }
 0x3cb   :  { %v3808_v10 = vmul.f32 -1.442695, %v2323_v22  ;;  %v2216_v44 = vsub.f32 1.0, %v2215_v31  ;;  %v2245_v22 = vand.u32 2147483648, %v2233_v62  ;;  %vm2241_vm15 = vmor %vm2239_vm14, %vm2240_vm13 }
 0x3cc   :  { %v2236_v53 = vsub.f32 1.0, %v2235_v57  ;;  %v2243_v57 = vand.u32 2147483647, %v2233_v62 }
 0x3cd   :  { %4081 = vpow2.f32 %v3808_v10  ;;  %v2217_v63 = vmul.f32 %v4078_v49, %v2216_v44  ;;  %v2246_v26 = vor.u32 1.1754944e-38, %v2245_v22 }
 0x3ce   :  { %v2273_v18 = vpop.f32.mrf.mxu2  ;;  %v2237_v4 = vmul.f32 %v4080_v47, %v2236_v53  ;;  %vm2244_vm0 = vcmp.eq.f32.partialorder %v2243_v57, 8.507059e+37 }
 0x3cf   :  { %v2303_v34 = vadd.f32 %v2273_v18, %v6175_v39  ;;  %v2218_v46 = vadd.f32 %v4078_v49, %v2217_v63 }
 0x3d0   :  { %v2288_v33 = vpop.f32.mrf.mxu0  ;;  %v2238_v30 = vadd.f32 %v4080_v47, %v2237_v4 }
 0x3d1   :  { %v3807_v51 = vmul.f32 -1.442695, %v2303_v34  ;;  %v2301_v45 = vpop.f32.mrf.mxu1  ;;  %v2222_v42 = vsel %vm2221_vm11, %v4078_v49, %v2218_v46 }
 0x3d2   :  { %v2227_v50 = vsel %vm2224_vm12, %v2226_v11, %v2222_v42  ;;  %v2242_v44 = vsel %vm2241_vm15, %v4080_v47, %v2238_v30 }
 0x3d3   :  { %v4082_v3 = vpop.eup %4081  ;;  %4083 = vpow2.f32 %v3807_v51  ;;  %v2250_v31 = vmul.f32 %v2249_v59, %v2227_v50  ;;  %v2247_v53 = vsel %vm2244_vm0, %v2246_v26, %v2242_v44  ;;  %v2343_v50 = vadd.f32 %v5623_v43, %v5808_v32 }
 0x3d4   :  { %v5814_v21 = vadd.f32 1.0, %v4082_v3  ;;  %v2253_v5 = vsub.f32 1.0, %v2247_v53  ;;  %v2255_v39 = vmul.f32 %v2247_v53, %v5753_v20 }
 0x3d5   :  { %v2251_v10 = vadd.f32 %v2250_v31, %v1078_v24 }
 0x3d6   :  { %v2275_v49 = vpop.f32.mrf.mxu2  ;;  %4085 = vrcp.f32 %v5814_v21  ;;  %v2339_v22 = vand.u32 2147483648, %v5814_v21  ;;  %vm2333_vm7 = vweird.f32 %v5814_v21  ;;  %v2337_v57 = vand.u32 2147483647, %v5814_v21 }
 0x3d7   :  { %4087 = vtanh.f32 %v2251_v10 }
 0x3d8   :  { %v2340_v10 = vor.u32 1.1754944e-38, %v2339_v22  ;;  %vm2338_vm9 = vcmp.eq.f32.partialorder %v2337_v57, 8.507059e+37  ;;  %v6183_v22 = vld [vmem:[#allocation43_spill] sm:$0xff] }
 0x3d9   :  { %v4084_v37 = vpop.eup %4083 }
 0x3da   :  { %v2307_v6 = vadd.f32 1.0, %v4084_v37 }
 0x3dc   :  { %4089 = vrcp.f32 %v2307_v6  ;;  %v4086_v63 = vpop.eup %4085  ;;  %v2319_v20 = vand.u32 2147483648, %v2307_v6  ;;  %v2317_v42 = vand.u32 2147483647, %v2307_v6  ;;  %vm2313_vm2 = vweird.f32 %v2307_v6 }
 0x3dd   :  { %v4088_v18 = vpop.eup %4087  ;;  %v2329_v62 = vmul.f32 %v4086_v63, %v5814_v21  ;;  %vm2334_vm6 = vweird.f32 %v4086_v63 }
 0x3de   :  { %v2254_v4 = vmul.f32 %v4088_v18, %v2253_v5  ;;  %v2320_v30 = vor.u32 1.1754944e-38, %v2319_v20  ;;  %vm2318_vm5 = vcmp.eq.f32.partialorder %v2317_v42, 8.507059e+37  ;;  %vm2335_vm8 = vmor %vm2333_vm7, %vm2334_vm6  ;;  %v6178_v5 = vld [vmem:[#allocation4_spill] sm:$0xff] }
 0x3df   :  { %v2330_v11 = vsub.f32 1.0, %v2329_v62  ;;  %v6180_v42 = vld [vmem:[#allocation28_spill] sm:$0xff] }
 0x3e0   :  { %v5819_v34 = vadd.f32 %v2255_v39, %v2254_v4  ;;  %v6179_v4 = vld [vmem:[#allocation12_spill] sm:$0xff] }
 0x3e1   :  { %v2331_v59 = vmul.f32 %v4086_v63, %v2330_v11 }
 0x3e2   :  { %v4090_v47 = vpop.eup %4089  ;;  %3809 = vst.msk [vmem:[%s6099_s7 + $0x18] sm:$0xff] %vm1503_vm10, %v5819_v34  ;;  %v2362_v33 = vpack.c.bf16 %v5819_v34, %v5819_v34 }
 0x3e3   :  { %v2309_v46 = vmul.f32 %v4090_v47, %v2307_v6  ;;  %vm2314_vm1 = vweird.f32 %v4090_v47  ;;  %v2332_v24 = vadd.f32 %v4086_v63, %v2331_v59  ;;  %v1107_v59 = vadd.f32 %v6180_v42, %v6163_v1  ;;  %v5888_v42 = vld [vmem:[%s6097_s5] ss:$0 sm:$0xff] }
 0x3e4   :  { %3811 = vmatmul.msk.bf16.vlgmr.msrb.gmra.mxu3 %vm1503_vm10, %v2362_v33  ;;  %3812 = vmatmul.msk.bf16.vlgmr.msra.gmra.mxu2 %vm1503_vm10, %v2362_v33  ;;  %vm2315_vm4 = vmor %vm2313_vm2, %vm2314_vm1 }
 0x3e5   :  { %v2310_v51 = vsub.f32 1.0, %v2309_v46  ;;  %3813 = vmatmul.msk.bf16.vlgmr.msrb.gmra.mxu0 %vm1503_vm10, %v2362_v33  ;;  %2590 = vmatpush.bf16.msrb.mxu3 %v5270_v48  ;;  %v2336_v32 = vsel %vm2335_vm8, %v4086_v63, %v2332_v24 }
 0x3e6   :  { %2658 = vmatpush.bf16.msra.mxu2 %v5275_v0  ;;  %2671 = vmatpush.bf16.msrb.mxu0 %v5355_v17  ;;  %v2341_v49 = vsel %vm2338_vm9, %v2340_v10, %v2336_v32  ;;  %v6184_v32 = vld [vmem:[#allocation46_spill] sm:$0xff] }
 0x3e7   :  { %v2311_v45 = vmul.f32 %v4090_v47, %v2310_v51  ;;  %v2347_v21 = vsub.f32 1.0, %v2341_v49 }
 0x3e9   :  { %v2312_v3 = vadd.f32 %v4090_v47, %v2311_v45  ;;  %2591 = vmatpush.bf16.msrb.mxu3 %v5289_v58 }
 0x3ea   :  { %2659 = vmatpush.bf16.msra.mxu2 %v5296_v25  ;;  %2672 = vmatpush.bf16.msrb.mxu0 %v5370_v36 }
 0x3eb   :  { %v2316_v15 = vsel %vm2315_vm4, %v4090_v47, %v2312_v3 }
 0x3ec   :  { %v2321_v9 = vsel %vm2318_vm5, %v2320_v30, %v2316_v15 }
 0x3ed   :  { %v2344_v31 = vmul.f32 %v2343_v50, %v2321_v9  ;;  %2592 = vmatpush.bf16.msrb.mxu3 %v5310_v19  ;;  %v6181_v50 = vld [vmem:[#allocation29_spill] sm:$0xff]  ;;  %v6182_v9 = vld [vmem:[#allocation31_spill] sm:$0xff] }
 0x3ee   :  { %2660 = vmatpush.bf16.msra.mxu2 %v5315_v23  ;;  %2673 = vmatpush.bf16.msrb.mxu0 %v5390_v60  ;;  %v1136_v15 = vadd.f32 %v6181_v50, %v1107_v59 }
 0x3ef   :  { %v2345_v43 = vadd.f32 %v2344_v31, %v5603_v40  ;;  %v2349_v40 = vmul.f32 %v2341_v49, %v5780_v7  ;;  %v1194_v31 = vadd.f32 %v6183_v22, %v6167_v56 }
 0x3f0   :  { %v1165_v24 = vadd.f32 %v6182_v9, %v1136_v15 }
 0x3f1   :  { %4091 = vtanh.f32 %v2345_v43  ;;  %2593 = vmatpush.bf16.msrb.mxu3 %v5331_v52  ;;  %v1223_v10 = vadd.f32 %v6184_v32, %v1194_v31  ;;  %v6186_v32 = vld [vmem:[#allocation26_spill] sm:$0xff] }
 0x3f2   :  { %2661 = vmatpush.bf16.msra.mxu2 %v5338_v35  ;;  %2674 = vmatpush.bf16.msrb.mxu0 %v5407_v27 }
 0x3f7   :  { %v4092_v44 = vpop.eup %4091 }
 0x3f8   :  { %v2348_v26 = vmul.f32 %v4092_v44, %v2347_v21 }
 0x3fa   :  { %v5850_v37 = vadd.f32 %v2349_v40, %v2348_v26 }
 0x3fc   :  { %2354 = vrot.lane.b32.xlu1 %v5850_v37, %s4176_s1  ;;  %v2456_v53 = vpack.c.bf16 %v5850_v37, %v5850_v37 }
 0x3fe   :  { %3816 = vmatmul.msk.bf16.vlgmr.msra.gmra.mxu1 %vm1503_vm10, %v2456_v53  ;;  %3817 = vmatmul.msk.bf16.vlgmr.msra.gmra.mxu3 %vm1503_vm10, %v2456_v53 }
 0x3ff   :  { %3818 = vmatmul.msk.bf16.vlgmr.msrb.gmra.mxu2 %vm1503_vm10, %v2456_v53  ;;  %2684 = vmatpush.bf16.msra.mxu1 %v5413_v41 }
 0x400   :  { %2758 = vmatpush.bf16.msra.mxu3 %v5074_v28  ;;  %2771 = vmatpush.bf16.msrb.mxu2 %v5078_v29 }
 0x403   :  { %2685 = vmatpush.bf16.msra.mxu1 %v5426_v54 }
 0x404   :  { %2759 = vmatpush.bf16.msra.mxu3 %v5121_v14  ;;  %2772 = vmatpush.bf16.msrb.mxu2 %v5126_v16 }
 0x407   :  { %2686 = vmatpush.bf16.msra.mxu1 %v5446_v38 }
 0x408   :  { %2760 = vmatpush.bf16.msra.mxu3 %v5179_v2  ;;  %2773 = vmatpush.bf16.msrb.mxu2 %v5191_v12 }
 0x40b   :  { %2687 = vmatpush.bf16.msra.mxu1 %v5459_v55 }
 0x40c   :  { %2761 = vmatpush.bf16.msra.mxu3 %v5234_v13  ;;  %2774 = vmatpush.bf16.msrb.mxu2 %v5241_v61 }
 0x462   :  { %v2401_v7 = vpop.f32.mrf.mxu0 }
 0x463   :  { %v2445_v59 = vadd.f32 %v5888_v42, %v2401_v7 }
 0x467   :  { %v2375_v6 = vpop.f32.mrf.mxu3  ;;  %v2388_v63 = vpop.f32.mrf.mxu2 }
 0x468   :  { %v2405_v18 = vadd.f32 %v2375_v6, %v6178_v5  ;;  %v2425_v39 = vadd.f32 %v2388_v63, %v6179_v4  ;;  %v6185_v6 = vld [vmem:[#allocation47_spill] sm:$0xff] }
 0x469   :  { %v1252_v63 = vadd.f32 %v6185_v6, %v1223_v10 }
 0x46a   :  { %v3814_v62 = vmul.f32 -1.442695, %v2405_v18  ;;  %v3815_v47 = vmul.f32 -1.442695, %v2425_v39  ;;  %v2403_v46 = vpop.f32.mrf.mxu0 }
 0x46c   :  { %4093 = vpow2.f32 %v3814_v62 }
 0x46d   :  { %4095 = vpow2.f32 %v3815_v47 }
 0x46e   :  { %v2355_v33 = vpop.permute.xlu1 %2354 }
 0x46f   :  { %3810 = vst.msk [vmem:[%s6099_s7 + $0x20] sm:$0xff] %vm1769_vm3, %v2355_v33  ;;  %v2377_v11 = vpop.f32.mrf.mxu3  ;;  %v2390_v51 = vpop.f32.mrf.mxu2 }
 0x472   :  { %v4094_v20 = vpop.eup %4093 }
 0x473   :  { %v4096_v45 = vpop.eup %4095  ;;  %v2409_v3 = vadd.f32 1.0, %v4094_v20 }
 0x474   :  { %v2429_v30 = vadd.f32 1.0, %v4096_v45 }
 0x475   :  { %4097 = vrcp.f32 %v2409_v3  ;;  %v2421_v5 = vand.u32 2147483648, %v2409_v3  ;;  %v2419_v39 = vand.u32 2147483647, %v2409_v3  ;;  %vm2415_vm12 = vweird.f32 %v2409_v3 }
 0x476   :  { %4099 = vrcp.f32 %v2429_v30  ;;  %vm2435_vm0 = vweird.f32 %v2429_v30 }
 0x477   :  { %v2422_v20 = vor.u32 1.1754944e-38, %v2421_v5  ;;  %vm2420_vm14 = vcmp.eq.f32.partialorder %v2419_v39, 8.507059e+37 }
 0x47b   :  { %v2469_v57 = vpop.f32.mrf.mxu1  ;;  %v4098_v43 = vpop.eup %4097 }
 0x47c   :  { %v2499_v49 = vadd.f32 %v2469_v57, %v1165_v24  ;;  %v4100_v21 = vpop.eup %4099  ;;  %v2411_v44 = vmul.f32 %v4098_v43, %v2409_v3  ;;  %vm2416_vm11 = vweird.f32 %v4098_v43  ;;  %v2441_v3 = vand.u32 2147483648, %v2429_v30 }
 0x47d   :  { %v2431_v26 = vmul.f32 %v4100_v21, %v2429_v30  ;;  %vm2417_vm13 = vmor %vm2415_vm12, %vm2416_vm11  ;;  %vm2436_vm15 = vweird.f32 %v4100_v21  ;;  %v2439_v57 = vand.u32 2147483647, %v2429_v30 }
 0x47e   :  { %v3819_v40 = vmul.f32 -1.442695, %v2499_v49  ;;  %v2412_v53 = vsub.f32 1.0, %v2411_v44  ;;  %vm2437_vm1 = vmor %vm2435_vm0, %vm2436_vm15  ;;  %v2442_v7 = vor.u32 1.1754944e-38, %v2441_v3  ;;  %v5908_v3 = vld [vmem:[%s6098_s6] ss:$0 sm:$0xff] }
 0x47f   :  { %v2432_v18 = vsub.f32 1.0, %v2431_v26  ;;  %vm2440_vm2 = vcmp.eq.f32.partialorder %v2439_v57, 8.507059e+37 }
 0x480   :  { %4101 = vpow2.f32 %v3819_v40  ;;  %v2413_v4 = vmul.f32 %v4098_v43, %v2412_v53 }
 0x481   :  { %v2482_v62 = vpop.f32.mrf.mxu3  ;;  %v2433_v47 = vmul.f32 %v4100_v21, %v2432_v18 }
 0x482   :  { %v2519_v46 = vadd.f32 %v2482_v62, %v1252_v63  ;;  %v2495_v33 = vpop.f32.mrf.mxu2  ;;  %v2414_v11 = vadd.f32 %v4098_v43, %v2413_v4 }
 0x483   :  { %v2471_v51 = vpop.f32.mrf.mxu1  ;;  %v2434_v24 = vadd.f32 %v4100_v21, %v2433_v47  ;;  %v2539_v57 = vadd.f32 %v5908_v3, %v2495_v33 }
 0x484   :  { %v3820_v45 = vmul.f32 -1.442695, %v2519_v46  ;;  %v2418_v50 = vsel %vm2417_vm13, %v4098_v43, %v2414_v11  ;;  %v6187_v51 = vld [vmem:[#allocation49_spill] sm:$0xff] }
 0x485   :  { %v2423_v9 = vsel %vm2420_vm14, %v2422_v20, %v2418_v50  ;;  %v2438_v44 = vsel %vm2437_vm1, %v4100_v21, %v2434_v24  ;;  %v1281_v20 = vadd.f32 %v6187_v51, %v5537_v8  ;;  %v6188_v50 = vld [vmem:[#allocation56_spill] sm:$0xff] }
 0x486   :  { %v4102_v15 = vpop.eup %4101  ;;  %4103 = vpow2.f32 %v3820_v45  ;;  %v2446_v22 = vmul.f32 %v2445_v59, %v2423_v9  ;;  %v2443_v40 = vsel %vm2440_vm2, %v2442_v7, %v2438_v44 }
 0x487   :  { %v2503_v31 = vadd.f32 1.0, %v4102_v15  ;;  %v2449_v63 = vsub.f32 1.0, %v2443_v40  ;;  %v2451_v30 = vmul.f32 %v2443_v40, %v5819_v34  ;;  %v1310_v15 = vadd.f32 %v6188_v50, %v1281_v20 }
 0x488   :  { %v2447_v10 = vadd.f32 %v2446_v22, %v6186_v32 }
 0x489   :  { %4105 = vrcp.f32 %v2503_v31  ;;  %v2484_v49 = vpop.f32.mrf.mxu3  ;;  %v2515_v62 = vand.u32 2147483648, %v2503_v31  ;;  %v2513_v46 = vand.u32 2147483647, %v2503_v31  ;;  %vm2509_vm5 = vweird.f32 %v2503_v31 }
 0x48a   :  { %v2497_v26 = vpop.f32.mrf.mxu2  ;;  %4107 = vtanh.f32 %v2447_v10 }
 0x48b   :  { %v2516_v9 = vor.u32 1.1754944e-38, %v2515_v62  ;;  %vm2514_vm7 = vcmp.eq.f32.partialorder %v2513_v46, 8.507059e+37  ;;  %v6191_v62 = vld [vmem:[#allocation13_spill] sm:$0xff] }
 0x48c   :  { %v4104_v43 = vpop.eup %4103 }
 0x48d   :  { %v2523_v53 = vadd.f32 1.0, %v4104_v43 }
 0x48f   :  { %v4106_v6 = vpop.eup %4105  ;;  %4109 = vrcp.f32 %v2523_v53  ;;  %v2535_v26 = vand.u32 2147483648, %v2523_v53  ;;  %v2533_v33 = vand.u32 2147483647, %v2523_v53  ;;  %vm2529_vm9 = vweird.f32 %v2523_v53 }
 0x490   :  { %v2505_v5 = vmul.f32 %v4106_v6, %v2503_v31  ;;  %v4108_v18 = vpop.eup %4107  ;;  %vm2510_vm4 = vweird.f32 %v4106_v6  ;;  %v6189_v31 = vld [vmem:[#allocation58_spill] sm:$0xff] }
 0x491   :  { %v2450_v4 = vmul.f32 %v4108_v18, %v2449_v63  ;;  %vm2511_vm6 = vmor %vm2509_vm5, %vm2510_vm4  ;;  %v1339_v32 = vadd.f32 %v6189_v31, %v1310_v15  ;;  %vm2534_vm12 = vcmp.eq.f32.partialorder %v2533_v33, 8.507059e+37  ;;  %v6192_v15 = vld [vmem:[#allocation45_spill] sm:$0xff] }
 0x492   :  { %v2506_v39 = vsub.f32 1.0, %v2505_v5 }
 0x493   :  { %v5893_v47 = vadd.f32 %v2451_v30, %v2450_v4 }
 0x494   :  { %v2507_v21 = vmul.f32 %v4106_v6, %v2506_v39 }
 0x495   :  { %v4110_v11 = vpop.eup %4109  ;;  %3821 = vst.msk [vmem:[%s6099_s7 + $0x20] sm:$0xff] %vm1503_vm10, %v5893_v47  ;;  %v2556_v34 = vpack.c.bf16 %v5893_v47, %v5893_v47 }
 0x496   :  { %v2525_v45 = vmul.f32 %v4110_v11, %v2523_v53  ;;  %v2508_v59 = vadd.f32 %v4106_v6, %v2507_v21  ;;  %vm2530_vm8 = vweird.f32 %v4110_v11 }
 0x497   :  { %3823 = vmatmul.msk.bf16.vlgmr.msra.gmra.mxu0 %vm1503_vm10, %v2556_v34  ;;  %3824 = vmatmul.msk.bf16.vlgmr.msrb.gmra.mxu1 %vm1503_vm10, %v2556_v34  ;;  %vm2531_vm11 = vmor %vm2529_vm9, %vm2530_vm8 }
 0x498   :  { %v2526_v24 = vsub.f32 1.0, %v2525_v45  ;;  %v2512_v22 = vsel %vm2511_vm6, %v4106_v6, %v2508_v59  ;;  %3825 = vmatmul.msk.bf16.vlgmr.msrb.gmra.mxu3 %vm1503_vm10, %v2556_v34  ;;  %2784 = vmatpush.bf16.msra.mxu0 %v5270_v48  ;;  %v2536_v6 = vor.u32 1.1754944e-38, %v2535_v26 }
 0x499   :  { %v2517_v10 = vsel %vm2514_vm7, %v2516_v9, %v2512_v22  ;;  %2852 = vmatpush.bf16.msrb.mxu1 %v5275_v0  ;;  %2865 = vmatpush.bf16.msrb.mxu3 %v5355_v17 }
 0x49a   :  { %v2540_v49 = vmul.f32 %v2539_v57, %v2517_v10  ;;  %v2527_v44 = vmul.f32 %v4110_v11, %v2526_v24 }
 0x49c   :  { %v2541_v7 = vadd.f32 %v2540_v49, %v1339_v32  ;;  %v2528_v43 = vadd.f32 %v4110_v11, %v2527_v44  ;;  %2785 = vmatpush.bf16.msra.mxu0 %v5289_v58 }
 0x49d   :  { %2853 = vmatpush.bf16.msrb.mxu1 %v5296_v25  ;;  %2866 = vmatpush.bf16.msrb.mxu3 %v5370_v36 }
 0x49e   :  { %4111 = vtanh.f32 %v2541_v7  ;;  %v2532_v40 = vsel %vm2531_vm11, %v4110_v11, %v2528_v43 }
 0x49f   :  { %v2537_v63 = vsel %vm2534_vm12, %v2536_v6, %v2532_v40  ;;  %v6193_v40 = vld [vmem:[#allocation27_spill] sm:$0xff] }
 0x4a0   :  { %2786 = vmatpush.bf16.msra.mxu0 %v5310_v19  ;;  %v2543_v5 = vsub.f32 1.0, %v2537_v63  ;;  %v2545_v4 = vmul.f32 %v2537_v63, %v5850_v37 }
 0x4a1   :  { %2854 = vmatpush.bf16.msrb.mxu1 %v5315_v23  ;;  %2867 = vmatpush.bf16.msrb.mxu3 %v5390_v60 }
 0x4a4   :  { %v4112_v53 = vpop.eup %4111  ;;  %2787 = vmatpush.bf16.msra.mxu0 %v5331_v52 }
 0x4a5   :  { %v2544_v18 = vmul.f32 %v4112_v53, %v2543_v5  ;;  %2855 = vmatpush.bf16.msrb.mxu1 %v5338_v35  ;;  %2868 = vmatpush.bf16.msrb.mxu3 %v5407_v27 }
 0x4a7   :  { %v5928_v30 = vadd.f32 %v2545_v4, %v2544_v18 }
 0x4a9   :  { %2549 = vrot.lane.b32.xlu2 %v5928_v30, %s4176_s1  ;;  %v2650_v39 = vpack.c.bf16 %v5928_v30, %v5928_v30 }
 0x4ab   :  { %3828 = vmatmul.msk.bf16.vlgmr.msra.gmra.mxu2 %vm1503_vm10, %v2650_v39  ;;  %3829 = vmatmul.msk.bf16.vlgmr.msrb.gmra.mxu0 %vm1503_vm10, %v2650_v39 }
 0x4ac   :  { %3830 = vmatmul.msk.bf16.vlgmr.msra.gmra.mxu1 %vm1503_vm10, %v2650_v39  ;;  %2878 = vmatpush.bf16.msra.mxu2 %v5413_v41 }
 0x4ad   :  { %2952 = vmatpush.bf16.msrb.mxu0 %v5074_v28  ;;  %2965 = vmatpush.bf16.msra.mxu1 %v5078_v29 }
 0x4b0   :  { %2879 = vmatpush.bf16.msra.mxu2 %v5426_v54 }
 0x4b1   :  { %2953 = vmatpush.bf16.msrb.mxu0 %v5121_v14  ;;  %2966 = vmatpush.bf16.msra.mxu1 %v5126_v16  ;;  %v6190_v16 = vld [vmem:[#allocation5_spill] sm:$0xff] }
 0x4b4   :  { %2880 = vmatpush.bf16.msra.mxu2 %v5446_v38 }
 0x4b5   :  { %2954 = vmatpush.bf16.msrb.mxu0 %v5179_v2  ;;  %2967 = vmatpush.bf16.msra.mxu1 %v5191_v12 }
 0x4b8   :  { %2881 = vmatpush.bf16.msra.mxu2 %v5459_v55 }
 0x4b9   :  { %2955 = vmatpush.bf16.msrb.mxu0 %v5234_v13  ;;  %2968 = vmatpush.bf16.msra.mxu1 %v5241_v61 }
 0x503   :  { %v2550_v28 = vpop.permute.xlu2 %2549 }
 0x504   :  { %3822 = vst.msk [vmem:[%s6099_s7 + $0x18] sm:$0xff] %vm1769_vm3, %v2550_v28 }
 0x514   :  { %v2569_v29 = vpop.f32.mrf.mxu0  ;;  %v2582_v14 = vpop.f32.mrf.mxu1 }
 0x515   :  { %v2599_v37 = vadd.f32 %v2569_v29, %v6190_v16  ;;  %v2619_v2 = vadd.f32 %v2582_v14, %v6191_v62  ;;  %v6195_v62 = vld [vmem:[#allocation30_spill] sm:$0xff] }
 0x517   :  { %v3826_v21 = vmul.f32 -1.442695, %v2599_v37  ;;  %v3827_v12 = vmul.f32 -1.442695, %v2619_v2  ;;  %v6194_v37 = vld [vmem:[#allocation14_spill] sm:$0xff] }
 0x518   :  { %v1083_v2 = vadd.f32 %v6195_v62, %v6194_v37  ;;  %v6198_v62 = vld [vmem:[#allocation15_spill] sm:$0xff] }
 0x519   :  { %4113 = vpow2.f32 %v3826_v21 }
 0x51a   :  { %4115 = vpow2.f32 %v3827_v12 }
 0x51b   :  { %v2595_v46 = vpop.f32.mrf.mxu3 }
 0x51c   :  { %v2571_v13 = vpop.f32.mrf.mxu0  ;;  %v2584_v11 = vpop.f32.mrf.mxu1  ;;  %v2639_v28 = vadd.f32 %v5888_v42, %v2595_v46 }
 0x51f   :  { %v4114_v61 = vpop.eup %4113 }
 0x520   :  { %v4116_v51 = vpop.eup %4115  ;;  %v2603_v20 = vadd.f32 1.0, %v4114_v61 }
 0x521   :  { %v2623_v45 = vadd.f32 1.0, %v4116_v51 }
 0x522   :  { %4117 = vrcp.f32 %v2603_v20  ;;  %v2615_v44 = vand.u32 2147483648, %v2603_v20  ;;  %v2613_v33 = vand.u32 2147483647, %v2603_v20  ;;  %vm2609_vm14 = vweird.f32 %v2603_v20 }
 0x523   :  { %4119 = vrcp.f32 %v2623_v45  ;;  %v2597_v59 = vpop.f32.mrf.mxu3  ;;  %v2635_v21 = vand.u32 2147483648, %v2623_v45  ;;  %vm2629_vm2 = vweird.f32 %v2623_v45  ;;  %v2633_v11 = vand.u32 2147483647, %v2623_v45 }
 0x524   :  { %v2616_v53 = vor.u32 1.1754944e-38, %v2615_v44  ;;  %vm2614_vm0 = vcmp.eq.f32.partialorder %v2613_v33, 8.507059e+37 }
 0x525   :  { %v2636_v46 = vor.u32 1.1754944e-38, %v2635_v21  ;;  %vm2634_vm5 = vcmp.eq.f32.partialorder %v2633_v11, 8.507059e+37  ;;  %v6199_v11 = vld [vmem:[#allocation22_spill] sm:$0xff] }
 0x528   :  { %v2676_v34 = vpop.f32.mrf.mxu0  ;;  %v4118_v50 = vpop.eup %4117 }
 0x529   :  { %v2713_v9 = vadd.f32 %v2676_v34, %v6192_v15  ;;  %v5956_v24 = vpop.f32.mrf.mxu1  ;;  %v4120_v22 = vpop.eup %4119  ;;  %v2605_v57 = vmul.f32 %v4118_v50, %v2603_v20  ;;  %vm2610_vm13 = vweird.f32 %v4118_v50 }
 0x52a   :  { %v2625_v31 = vmul.f32 %v4120_v22, %v2623_v45  ;;  %vm2611_vm15 = vmor %vm2609_vm14, %vm2610_vm13  ;;  %vm2630_vm1 = vweird.f32 %v4120_v22 }
 0x52b   :  { %v3832_v32 = vmul.f32 -1.442695, %v2713_v9  ;;  %v2606_v10 = vsub.f32 1.0, %v2605_v57  ;;  %vm2631_vm4 = vmor %vm2629_vm2, %vm2630_vm1 }
 0x52c   :  { %v2626_v49 = vsub.f32 1.0, %v2625_v31 }
 0x52d   :  { %4121 = vpow2.f32 %v3832_v32  ;;  %v2607_v26 = vmul.f32 %v4118_v50, %v2606_v10 }
 0x52e   :  { %v2663_v7 = vpop.f32.mrf.mxu2  ;;  %v2627_v43 = vmul.f32 %v4120_v22, %v2626_v49 }
 0x52f   :  { %v2693_v6 = vadd.f32 %v2663_v7, %v6193_v40  ;;  %v2608_v63 = vadd.f32 %v4118_v50, %v2607_v26 }
 0x530   :  { %v2678_v5 = vpop.f32.mrf.mxu0  ;;  %v2628_v14 = vadd.f32 %v4120_v22, %v2627_v43 }
 0x531   :  { %v3831_v18 = vmul.f32 -1.442695, %v2693_v6  ;;  %v2691_v4 = vpop.f32.mrf.mxu1  ;;  %v2612_v39 = vsel %vm2611_vm15, %v4118_v50, %v2608_v63  ;;  %v2733_v5 = vadd.f32 %v5908_v3, %v5956_v24 }
 0x532   :  { %v2617_v16 = vsel %vm2614_vm0, %v2616_v53, %v2612_v39  ;;  %v2632_v20 = vsel %vm2631_vm4, %v4120_v22, %v2628_v14 }
 0x533   :  { %v4122_v29 = vpop.eup %4121  ;;  %4123 = vpow2.f32 %v3831_v18  ;;  %v2640_v12 = vmul.f32 %v2639_v28, %v2617_v16  ;;  %v2637_v34 = vsel %vm2634_vm5, %v2636_v46, %v2632_v20  ;;  %v6200_v46 = vld [vmem:[#allocation23_spill] sm:$0xff] }
 0x534   :  { %v5962_v13 = vadd.f32 1.0, %v4122_v29  ;;  %v2643_v9 = vsub.f32 1.0, %v2637_v34  ;;  %v2645_v32 = vmul.f32 %v2637_v34, %v5893_v47  ;;  %v6201_v34 = vld [vmem:[#allocation25_spill] sm:$0xff] }
 0x535   :  { %v2641_v61 = vadd.f32 %v2640_v12, %v1083_v2 }
 0x536   :  { %v2665_v51 = vpop.f32.mrf.mxu2  ;;  %4125 = vrcp.f32 %v5962_v13  ;;  %vm2723_vm12 = vweird.f32 %v5962_v13  ;;  %v2727_v4 = vand.u32 2147483647, %v5962_v13 }
 0x537   :  { %4127 = vtanh.f32 %v2641_v61  ;;  %v1102_v61 = vadd.f32 %v6199_v11, %v6163_v1 }
 0x538   :  { %vm2728_vm14 = vcmp.eq.f32.partialorder %v2727_v4, 8.507059e+37 }
 0x539   :  { %v4124_v59 = vpop.eup %4123 }
 0x53a   :  { %v2697_v50 = vadd.f32 1.0, %v4124_v59  ;;  %v1131_v59 = vadd.f32 %v6200_v46, %v1102_v61 }
 0x53c   :  { %4129 = vrcp.f32 %v2697_v50  ;;  %v4126_v15 = vpop.eup %4125  ;;  %v2709_v47 = vand.u32 2147483648, %v2697_v50  ;;  %v2707_v43 = vand.u32 2147483647, %v2697_v50  ;;  %vm2703_vm7 = vweird.f32 %v2697_v50 }
 0x53d   :  { %v4128_v57 = vpop.eup %4127  ;;  %v2719_v45 = vmul.f32 %v4126_v15, %v5962_v13  ;;  %vm2724_vm11 = vweird.f32 %v4126_v15 }
 0x53e   :  { %v2644_v31 = vmul.f32 %v4128_v57, %v2643_v9  ;;  %v2710_v63 = vor.u32 1.1754944e-38, %v2709_v47  ;;  %vm2708_vm9 = vcmp.eq.f32.partialorder %v2707_v43, 8.507059e+37  ;;  %vm2725_vm13 = vmor %vm2723_vm12, %vm2724_vm11  ;;  %v6204_v47 = vld [vmem:[#allocation42_spill] sm:$0xff] }
 0x53f   :  { %v2720_v26 = vsub.f32 1.0, %v2719_v45 }
 0x540   :  { %v5967_v10 = vadd.f32 %v2645_v32, %v2644_v31  ;;  %v6203_v32 = vld [vmem:[#allocation41_spill] sm:$0xff] }
 0x541   :  { %v2721_v40 = vmul.f32 %v4126_v15, %v2720_v26 }
 0x542   :  { %v4130_v22 = vpop.eup %4129  ;;  %3833 = vst.msk [vmem:[%s6099_s7 + $0x28] sm:$0xff] %vm1503_vm10, %v5967_v10  ;;  %v2750_v44 = vpack.c.bf16 %v5967_v10, %v5967_v10 }
 0x543   :  { %v2699_v49 = vmul.f32 %v4130_v22, %v2697_v50  ;;  %vm2704_vm6 = vweird.f32 %v4130_v22  ;;  %v1160_v50 = vadd.f32 %v6201_v34, %v1131_v59  ;;  %v6206_v59 = vld [vmem:[#allocation44_spill] sm:$0xff] }
 0x544   :  { %3835 = vmatmul.msk.bf16.vlgmr.msra.gmra.mxu3 %vm1503_vm10, %v2750_v44  ;;  %3836 = vmatmul.msk.bf16.vlgmr.msrb.gmra.mxu2 %vm1503_vm10, %v2750_v44  ;;  %vm2705_vm8 = vmor %vm2703_vm7, %vm2704_vm6  ;;  %v1276_v34 = vadd.f32 %v6206_v59, %v5537_v8 }
 0x545   :  { %v2700_v33 = vsub.f32 1.0, %v2699_v49  ;;  %3837 = vmatmul.msk.bf16.vlgmr.msra.gmra.mxu0 %vm1503_vm10, %v2750_v44  ;;  %2978 = vmatpush.bf16.msra.mxu3 %v5270_v48 }
 0x546   :  { %3046 = vmatpush.bf16.msrb.mxu2 %v5275_v0  ;;  %3059 = vmatpush.bf16.msra.mxu0 %v5355_v17  ;;  %v2722_v0 = vadd.f32 %v4126_v15, %v2721_v40  ;;  %v2729_v17 = vand.u32 2147483648, %v5962_v13 }
 0x547   :  { %v2701_v7 = vmul.f32 %v4130_v22, %v2700_v33 }
 0x549   :  { %v2702_v6 = vadd.f32 %v4130_v22, %v2701_v7  ;;  %2979 = vmatpush.bf16.msra.mxu3 %v5289_v58  ;;  %v6196_v58 = vld [vmem:[#allocation57_spill] sm:$0xff] }
 0x54a   :  { %3047 = vmatpush.bf16.msrb.mxu2 %v5296_v25  ;;  %3060 = vmatpush.bf16.msra.mxu0 %v5370_v36  ;;  %v2726_v25 = vsel %vm2725_vm13, %v4126_v15, %v2722_v0  ;;  %v2730_v36 = vor.u32 1.1754944e-38, %v2729_v17  ;;  %v6202_v15 = vld [vmem:[#allocation39_spill] sm:$0xff] }
 0x54b   :  { %v2706_v53 = vsel %vm2705_vm8, %v4130_v22, %v2702_v6  ;;  %v1189_v9 = vadd.f32 %v6202_v15, %v6167_v56 }
 0x54c   :  { %v2711_v48 = vsel %vm2708_vm9, %v2710_v63, %v2706_v53  ;;  %v2731_v39 = vsel %vm2728_vm14, %v2730_v36, %v2726_v25 }
 0x54d   :  { %v2734_v18 = vmul.f32 %v2733_v5, %v2711_v48  ;;  %2980 = vmatpush.bf16.msra.mxu3 %v5310_v19  ;;  %v2737_v28 = vsub.f32 1.0, %v2731_v39  ;;  %v2739_v14 = vmul.f32 %v2731_v39, %v5928_v30  ;;  %v6197_v30 = vld [vmem:[#allocation6_spill] sm:$0xff]  ;;  %v1218_v45 = vadd.f32 %v6203_v32, %v1189_v9  ;;  %v6207_v9 = vld [vmem:[#allocation53_spill] sm:$0xff] }
 0x54e   :  { %3048 = vmatpush.bf16.msrb.mxu2 %v5315_v23  ;;  %3061 = vmatpush.bf16.msra.mxu0 %v5390_v60 }
 0x54f   :  { %v2735_v24 = vadd.f32 %v2734_v18, %v6196_v58  ;;  %v1247_v7 = vadd.f32 %v6204_v47, %v1218_v45 }
 0x551   :  { %4131 = vtanh.f32 %v2735_v24  ;;  %2981 = vmatpush.bf16.msra.mxu3 %v5331_v52 }
 0x552   :  { %3049 = vmatpush.bf16.msrb.mxu2 %v5338_v35  ;;  %3062 = vmatpush.bf16.msra.mxu0 %v5407_v27 }
 0x557   :  { %v4132_v19 = vpop.eup %4131 }
 0x558   :  { %v2738_v29 = vmul.f32 %v4132_v19, %v2737_v28 }
 0x55a   :  { %v5998_v16 = vadd.f32 %v2739_v14, %v2738_v29 }
 0x55c   :  { %2743 = vrot.lane.b32.xlu2 %v5998_v16, %s4176_s1  ;;  %v2844_v23 = vpack.c.bf16 %v5998_v16, %v5998_v16 }
 0x55e   :  { %3840 = vmatmul.msk.bf16.vlgmr.msrb.gmra.mxu1 %vm1503_vm10, %v2844_v23  ;;  %3841 = vmatmul.msk.bf16.vlgmr.msrb.gmra.mxu3 %vm1503_vm10, %v2844_v23 }
 0x55f   :  { %3842 = vmatmul.msk.bf16.vlgmr.msra.gmra.mxu2 %vm1503_vm10, %v2844_v23  ;;  %3072 = vmatpush.bf16.msrb.mxu1 %v5413_v41  ;;  %v6205_v23 = vld [vmem:[#allocation32_spill] sm:$0xff] }
 0x563   :  { %3073 = vmatpush.bf16.msrb.mxu1 %v5426_v54 }
 0x567   :  { %3074 = vmatpush.bf16.msrb.mxu1 %v5446_v38 }
 0x56b   :  { %3075 = vmatpush.bf16.msrb.mxu1 %v5459_v55 }
 0x5b6   :  { %v2744_v52 = vpop.permute.xlu2 %2743 }
 0x5b7   :  { %3834 = vst.msk [vmem:[%s6099_s7 + $0x10] sm:$0xff] %vm1769_vm3, %v2744_v52 }
 0x5c2   :  { %v2789_v35 = vpop.f32.mrf.mxu0 }
 0x5c3   :  { %v2833_v58 = vadd.f32 %v5888_v42, %v2789_v35 }
 0x5c7   :  { %v2763_v60 = vpop.f32.mrf.mxu3  ;;  %v2776_v27 = vpop.f32.mrf.mxu2 }
 0x5c8   :  { %v2793_v37 = vadd.f32 %v2763_v60, %v6197_v30  ;;  %v2813_v2 = vadd.f32 %v2776_v27, %v6198_v62 }
 0x5ca   :  { %v3838_v41 = vmul.f32 -1.442695, %v2793_v37  ;;  %v3839_v21 = vmul.f32 -1.442695, %v2813_v2  ;;  %v2791_v54 = vpop.f32.mrf.mxu0 }
 0x5cc   :  { %4133 = vpow2.f32 %v3838_v41 }
 0x5cd   :  { %4135 = vpow2.f32 %v3839_v21 }
 0x5cf   :  { %v2765_v38 = vpop.f32.mrf.mxu3  ;;  %v2778_v55 = vpop.f32.mrf.mxu2 }
 0x5d2   :  { %v4134_v12 = vpop.eup %4133 }
 0x5d3   :  { %v4136_v13 = vpop.eup %4135  ;;  %v2797_v51 = vadd.f32 1.0, %v4134_v12 }
 0x5d4   :  { %v2817_v20 = vadd.f32 1.0, %v4136_v13 }
 0x5d5   :  { %4137 = vrcp.f32 %v2797_v51  ;;  %v2809_v43 = vand.u32 2147483648, %v2797_v51  ;;  %v2807_v63 = vand.u32 2147483647, %v2797_v51  ;;  %vm2803_vm0 = vweird.f32 %v2797_v51 }
 0x5d6   :  { %4139 = vrcp.f32 %v2817_v20  ;;  %v2829_v19 = vand.u32 2147483648, %v2817_v20  ;;  %vm2823_vm5 = vweird.f32 %v2817_v20  ;;  %v2827_v14 = vand.u32 2147483647, %v2817_v20 }
 0x5d7   :  { %v2810_v18 = vor.u32 1.1754944e-38, %v2809_v43  ;;  %vm2808_vm2 = vcmp.eq.f32.partialorder %v2807_v63, 8.507059e+37 }
 0x5d8   :  { %v2830_v35 = vor.u32 1.1754944e-38, %v2829_v19  ;;  %vm2828_vm7 = vcmp.eq.f32.partialorder %v2827_v14, 8.507059e+37 }
 0x5db   :  { %v2857_v57 = vpop.f32.mrf.mxu1  ;;  %v4138_v31 = vpop.eup %4137 }
 0x5dc   :  { %v2887_v22 = vadd.f32 %v2857_v57, %v1160_v50  ;;  %v4140_v49 = vpop.eup %4139  ;;  %v2799_v44 = vmul.f32 %v4138_v31, %v2797_v51  ;;  %vm2804_vm15 = vweird.f32 %v4138_v31  ;;  %v1305_v57 = vadd.f32 %v6207_v9, %v1276_v34  ;;  %v6212_v34 = vld [vmem:[#allocation21_spill] sm:$0xff] }
 0x5dd   :  { %v2819_v26 = vmul.f32 %v4140_v49, %v2817_v20  ;;  %vm2805_vm1 = vmor %vm2803_vm0, %vm2804_vm15  ;;  %vm2824_vm4 = vweird.f32 %v4140_v49 }
 0x5de   :  { %v3843_v1 = vmul.f32 -1.442695, %v2887_v22  ;;  %v2800_v33 = vsub.f32 1.0, %v2799_v44  ;;  %vm2825_vm6 = vmor %vm2823_vm5, %vm2824_vm4  ;;  %v6208_v22 = vld [vmem:[#allocation55_spill] sm:$0xff] }
 0x5df   :  { %v2820_v40 = vsub.f32 1.0, %v2819_v26 }
 0x5e0   :  { %4141 = vpow2.f32 %v3843_v1  ;;  %v2801_v6 = vmul.f32 %v4138_v31, %v2800_v33 }
 0x5e1   :  { %v2870_v5 = vpop.f32.mrf.mxu3  ;;  %v2821_v56 = vmul.f32 %v4140_v49, %v2820_v40 }
 0x5e2   :  { %v2907_v53 = vadd.f32 %v2870_v5, %v1247_v7  ;;  %v2883_v48 = vpop.f32.mrf.mxu2  ;;  %v2802_v0 = vadd.f32 %v4138_v31, %v2801_v6 }
 0x5e3   :  { %v2859_v17 = vpop.f32.mrf.mxu1  ;;  %v2822_v39 = vadd.f32 %v4140_v49, %v2821_v56  ;;  %v2927_v8 = vadd.f32 %v5908_v3, %v2883_v48 }
 0x5e4   :  { %v3844_v4 = vmul.f32 -1.442695, %v2907_v53  ;;  %v2806_v24 = vsel %vm2805_vm1, %v4138_v31, %v2802_v0 }
 0x5e5   :  { %v2811_v36 = vsel %vm2808_vm2, %v2810_v18, %v2806_v24  ;;  %v2826_v27 = vsel %vm2825_vm6, %v4140_v49, %v2822_v39  ;;  %v1334_v49 = vadd.f32 %v6208_v22, %v1305_v57  ;;  %v6215_v22 = vld [vmem:[#allocation19_spill] sm:$0xff] }
 0x5e6   :  { %v4142_v25 = vpop.eup %4141  ;;  %4143 = vpow2.f32 %v3844_v4  ;;  %v2834_v28 = vmul.f32 %v2833_v58, %v2811_v36  ;;  %v2831_v62 = vsel %vm2828_vm7, %v2830_v35, %v2826_v27  ;;  %v6209_v58 = vld [vmem:[#allocation7_spill] sm:$0xff] }
 0x5e7   :  { %v2891_v29 = vadd.f32 1.0, %v4142_v25  ;;  %v2837_v21 = vsub.f32 1.0, %v2831_v62  ;;  %v2839_v12 = vmul.f32 %v2831_v62, %v5967_v10  ;;  %v6210_v25 = vld [vmem:[#allocation16_spill] sm:$0xff] }
 0x5e8   :  { %v2835_v52 = vadd.f32 %v2834_v28, %v6205_v23  ;;  %v6211_v62 = vld [vmem:[#allocation40_spill] sm:$0xff] }
 0x5e9   :  { %4145 = vrcp.f32 %v2891_v29  ;;  %v2872_v60 = vpop.f32.mrf.mxu3  ;;  %v2903_v11 = vand.u32 2147483648, %v2891_v29  ;;  %v2901_v20 = vand.u32 2147483647, %v2891_v29  ;;  %vm2897_vm9 = vweird.f32 %v2891_v29 }
 0x5ea   :  { %v2885_v30 = vpop.f32.mrf.mxu2  ;;  %4147 = vtanh.f32 %v2835_v52 }
 0x5eb   :  { %v2904_v31 = vor.u32 1.1754944e-38, %v2903_v11  ;;  %vm2902_vm12 = vcmp.eq.f32.partialorder %v2901_v20, 8.507059e+37 }
 0x5ec   :  { %v4144_v37 = vpop.eup %4143 }
 0x5ed   :  { %v2911_v2 = vadd.f32 1.0, %v4144_v37 }
 0x5ef   :  { %v4146_v41 = vpop.eup %4145  ;;  %4149 = vrcp.f32 %v2911_v2  ;;  %v2923_v33 = vand.u32 2147483648, %v2911_v2  ;;  %v2921_v47 = vand.u32 2147483647, %v2911_v2  ;;  %vm2917_vm14 = vweird.f32 %v2911_v2 }
 0x5f0   :  { %v2893_v54 = vmul.f32 %v4146_v41, %v2891_v29  ;;  %v4148_v38 = vpop.eup %4147  ;;  %vm2898_vm8 = vweird.f32 %v4146_v41 }
 0x5f1   :  { %v2838_v55 = vmul.f32 %v4148_v38, %v2837_v21  ;;  %vm2899_vm11 = vmor %vm2897_vm9, %vm2898_vm8  ;;  %v2924_v6 = vor.u32 1.1754944e-38, %v2923_v33  ;;  %vm2922_vm0 = vcmp.eq.f32.partialorder %v2921_v47, 8.507059e+37 }
 0x5f2   :  { %v2894_v13 = vsub.f32 1.0, %v2893_v54 }
 0x5f3   :  { %v6028_v61 = vadd.f32 %v2839_v12, %v2838_v55 }
 0x5f4   :  { %v2895_v51 = vmul.f32 %v4146_v41, %v2894_v13 }
 0x5f5   :  { %v4150_v46 = vpop.eup %4149  ;;  %3845 = vst.msk [vmem:[%s6099_s7 + $0x30] sm:$0xff] %vm1503_vm10, %v6028_v61  ;;  %v2944_v10 = vpack.c.bf16 %v6028_v61, %v6028_v61 }
 0x5f6   :  { %v2913_v50 = vmul.f32 %v4150_v46, %v2911_v2  ;;  %v2896_v15 = vadd.f32 %v4146_v41, %v2895_v51  ;;  %vm2918_vm13 = vweird.f32 %v4150_v46 }
 0x5f7   :  { %3847 = vmatmul.msk.bf16.vlgmr.msrb.gmra.mxu0 %vm1503_vm10, %v2944_v10  ;;  %3848 = vmatmul.msk.bf16.vlgmr.msra.gmra.mxu1 %vm1503_vm10, %v2944_v10  ;;  %vm2919_vm15 = vmor %vm2917_vm14, %vm2918_vm13 }
 0x5f8   :  { %v2914_v32 = vsub.f32 1.0, %v2913_v50  ;;  %v2900_v45 = vsel %vm2899_vm11, %v4146_v41, %v2896_v15  ;;  %3849 = vmatmul.msk.bf16.vlgmr.msra.gmra.mxu3 %vm1503_vm10, %v2944_v10  ;;  %v6213_v15 = vld [vmem:[#allocation8_spill] sm:$0xff]  ;;  %v6214_v10 = vld [vmem:[#allocation17_spill] sm:$0xff] }
 0x5f9   :  { %v2905_v44 = vsel %vm2902_vm12, %v2904_v31, %v2900_v45  ;;  %v1030_v9 = vadd.f32 %v6214_v10, %v6213_v15 }
 0x5fa   :  { %v2928_v26 = vmul.f32 %v2927_v8, %v2905_v44  ;;  %v2915_v1 = vmul.f32 %v4150_v46, %v2914_v32 }
 0x5fc   :  { %v2929_v7 = vadd.f32 %v2928_v26, %v1334_v49  ;;  %v2916_v43 = vadd.f32 %v4150_v46, %v2915_v1  ;;  %v1059_v49 = vadd.f32 %v6215_v22, %v1030_v9 }
 0x5fe   :  { %4151 = vtanh.f32 %v2929_v7  ;;  %v2920_v40 = vsel %vm2919_vm15, %v4150_v46, %v2916_v43  ;;  %v6216_v7 = vld [vmem:[#allocation36_spill] sm:$0xff] }
 0x5ff   :  { %v2925_v63 = vsel %vm2922_vm0, %v2924_v6, %v2920_v40  ;;  %v1088_v43 = vadd.f32 %v6216_v7, %v1059_v49 }
 0x600   :  { %v2931_v5 = vsub.f32 1.0, %v2925_v63  ;;  %v2933_v48 = vmul.f32 %v2925_v63, %v5998_v16 }
 0x604   :  { %v4152_v56 = vpop.eup %4151 }
 0x605   :  { %v2932_v53 = vmul.f32 %v4152_v56, %v2931_v5 }
 0x607   :  { %v6046_v0 = vadd.f32 %v2933_v48, %v2932_v53 }
 0x609   :  { %2937 = vrot.lane.b32.xlu0 %v6046_v0, %s4176_s1  ;;  %v3038_v17 = vpack.c.bf16 %v6046_v0, %v6046_v0 }
 0x60b   :  { %3852 = vmatmul.msk.bf16.vlgmr.msrb.gmra.mxu2 %vm1503_vm10, %v3038_v17  ;;  %3853 = vmatmul.msk.bf16.vlgmr.msra.gmra.mxu0 %vm1503_vm10, %v3038_v17 }
 0x60c   :  { %3854 = vmatmul.msk.bf16.vlgmr.msrb.gmra.mxu1 %vm1503_vm10, %v3038_v17 }
 0x674   :  { %v2957_v18 = vpop.f32.mrf.mxu0  ;;  %v2970_v4 = vpop.f32.mrf.mxu1 }
 0x675   :  { %v2987_v24 = vadd.f32 %v2957_v18, %v6209_v58  ;;  %v3007_v16 = vadd.f32 %v2970_v4, %v6210_v25 }
 0x677   :  { %v3850_v36 = vmul.f32 -1.442695, %v2987_v24  ;;  %v3851_v39 = vmul.f32 -1.442695, %v3007_v16 }
 0x679   :  { %4153 = vpow2.f32 %v3850_v36 }
 0x67a   :  { %4155 = vpow2.f32 %v3851_v39 }
 0x67b   :  { %v2938_v28 = vpop.permute.xlu0 %2937  ;;  %v2983_v19 = vpop.f32.mrf.mxu3 }
 0x67c   :  { %3846 = vst.msk [vmem:[%s6099_s7 + $0x8] sm:$0xff] %vm1769_vm3, %v2938_v28  ;;  %v2959_v29 = vpop.f32.mrf.mxu0  ;;  %v2972_v14 = vpop.f32.mrf.mxu1  ;;  %v3027_v26 = vadd.f32 %v5888_v42, %v2983_v19 }
 0x67f   :  { %v4154_v23 = vpop.eup %4153 }
 0x680   :  { %v4156_v52 = vpop.eup %4155  ;;  %v2991_v60 = vadd.f32 1.0, %v4154_v23 }
 0x681   :  { %v3011_v27 = vadd.f32 1.0, %v4156_v52 }
 0x682   :  { %4157 = vrcp.f32 %v2991_v60  ;;  %v3003_v11 = vand.u32 2147483648, %v2991_v60  ;;  %v3001_v20 = vand.u32 2147483647, %v2991_v60  ;;  %vm2997_vm2 = vweird.f32 %v2991_v60 }
 0x683   :  { %4159 = vrcp.f32 %v3011_v27  ;;  %v2985_v30 = vpop.f32.mrf.mxu3  ;;  %v3023_v40 = vand.u32 2147483648, %v3011_v27  ;;  %vm3017_vm7 = vweird.f32 %v3011_v27  ;;  %v3021_v5 = vand.u32 2147483647, %v3011_v27 }
 0x684   :  { %v3004_v32 = vor.u32 1.1754944e-38, %v3003_v11  ;;  %vm3002_vm5 = vcmp.eq.f32.partialorder %v3001_v20, 8.507059e+37 }
 0x685   :  { %v3024_v17 = vor.u32 1.1754944e-38, %v3023_v40  ;;  %vm3022_vm9 = vcmp.eq.f32.partialorder %v3021_v5, 8.507059e+37 }
 0x688   :  { %v3064_v35 = vpop.f32.mrf.mxu0  ;;  %v4158_v37 = vpop.eup %4157 }
 0x689   :  { %v3101_v2 = vadd.f32 %v3064_v35, %v6211_v62  ;;  %v6062_v41 = vpop.f32.mrf.mxu1  ;;  %v4160_v21 = vpop.eup %4159  ;;  %v2993_v54 = vmul.f32 %v4158_v37, %v2991_v60  ;;  %vm2998_vm1 = vweird.f32 %v4158_v37 }
 0x68a   :  { %v3013_v38 = vmul.f32 %v4160_v21, %v3011_v27  ;;  %vm2999_vm4 = vmor %vm2997_vm2, %vm2998_vm1  ;;  %vm3018_vm6 = vweird.f32 %v4160_v21 }
 0x68b   :  { %v3856_v55 = vmul.f32 -1.442695, %v3101_v2  ;;  %v2994_v12 = vsub.f32 1.0, %v2993_v54  ;;  %vm3019_vm8 = vmor %vm3017_vm7, %vm3018_vm6 }
 0x68c   :  { %v3014_v13 = vsub.f32 1.0, %v3013_v38 }
 0x68d   :  { %4161 = vpow2.f32 %v3856_v55  ;;  %v2995_v51 = vmul.f32 %v4158_v37, %v2994_v12  ;;  %v6217_v12 = vld [vmem:[#allocation54_spill] sm:$0xff] }
 0x68e   :  { %v3051_v46 = vpop.f32.mrf.mxu2  ;;  %v3015_v59 = vmul.f32 %v4160_v21, %v3014_v13 }
 0x68f   :  { %v3081_v50 = vadd.f32 %v3051_v46, %v6212_v34  ;;  %v2996_v57 = vadd.f32 %v4158_v37, %v2995_v51 }
 0x690   :  { %v3066_v31 = vpop.f32.mrf.mxu0  ;;  %v3016_v33 = vadd.f32 %v4160_v21, %v3015_v59 }
 0x691   :  { %v3855_v45 = vmul.f32 -1.442695, %v3081_v50  ;;  %v3079_v8 = vpop.f32.mrf.mxu1  ;;  %v3000_v44 = vsel %vm2999_vm4, %v4158_v37, %v2996_v57  ;;  %v3121_v37 = vadd.f32 %v5908_v3, %v6062_v41 }
 0x692   :  { %v3005_v47 = vsel %vm3002_vm5, %v3004_v32, %v3000_v44  ;;  %v3020_v48 = vsel %vm3019_vm8, %v4160_v21, %v3016_v33 }
 0x693   :  { %v4162_v1 = vpop.eup %4161  ;;  %4163 = vpow2.f32 %v3855_v45  ;;  %v3028_v6 = vmul.f32 %v3027_v26, %v3005_v47  ;;  %v3025_v18 = vsel %vm3022_vm9, %v3024_v17, %v3020_v48 }
 0x694   :  { %v3105_v63 = vadd.f32 1.0, %v4162_v1  ;;  %v3031_v24 = vsub.f32 1.0, %v3025_v18  ;;  %v3033_v36 = vmul.f32 %v3025_v18, %v6028_v61 }
 0x695   :  { %v3029_v56 = vadd.f32 %v3028_v6, %v1088_v43 }
 0x696   :  { %v3053_v53 = vpop.f32.mrf.mxu2  ;;  %4165 = vrcp.f32 %v3105_v63  ;;  %v3117_v54 = vand.u32 2147483648, %v3105_v63  ;;  %vm3111_vm0 = vweird.f32 %v3105_v63  ;;  %v3115_v55 = vand.u32 2147483647, %v3105_v63 }
 0x697   :  { %4167 = vtanh.f32 %v3029_v56 }
 0x698   :  { %v3118_v51 = vor.u32 1.1754944e-38, %v3117_v54  ;;  %vm3116_vm2 = vcmp.eq.f32.partialorder %v3115_v55, 8.507059e+37 }
 0x699   :  { %v4164_v42 = vpop.eup %4163 }
 0x69a   :  { %v3085_v4 = vadd.f32 1.0, %v4164_v42 }
 0x69c   :  { %4169 = vrcp.f32 %v3085_v4  ;;  %v4166_v58 = vpop.eup %4165  ;;  %v3097_v52 = vand.u32 2147483648, %v3085_v4  ;;  %v3095_v61 = vand.u32 2147483647, %v3085_v4  ;;  %vm3091_vm12 = vweird.f32 %v3085_v4 }
 0x69d   :  { %v4168_v25 = vpop.eup %4167  ;;  %v3107_v39 = vmul.f32 %v4166_v58, %v3105_v63  ;;  %vm3112_vm15 = vweird.f32 %v4166_v58 }
 0x69e   :  { %v3032_v16 = vmul.f32 %v4168_v25, %v3031_v24  ;;  %v3098_v35 = vor.u32 1.1754944e-38, %v3097_v52  ;;  %vm3096_vm14 = vcmp.eq.f32.partialorder %v3095_v61, 8.507059e+37  ;;  %vm3113_vm1 = vmor %vm3111_vm0, %vm3112_vm15 }
 0x69f   :  { %v3108_v14 = vsub.f32 1.0, %v3107_v39 }
 0x6a0   :  { %v3034_v28 = vadd.f32 %v3033_v36, %v3032_v16 }
 0x6a1   :  { %v3109_v27 = vmul.f32 %v4166_v58, %v3108_v14 }
 0x6a2   :  { %v4170_v19 = vpop.eup %4169  ;;  %3857 = vst.msk [vmem:[%s6099_s7 + $0x38] sm:$0xff] %vm1503_vm10, %v3034_v28 }
 0x6a3   :  { %v3087_v29 = vmul.f32 %v4170_v19, %v3085_v4  ;;  %3135 = vst.msk [vmem:[%s6100_s8] sm:$0xff] %vm1503_vm10, %v3034_v28  ;;  %vm3092_vm11 = vweird.f32 %v4170_v19  ;;  %v3110_v21 = vadd.f32 %v4166_v58, %v3109_v27 }
 0x6a4   :  { %vm3093_vm13 = vmor %vm3091_vm12, %vm3092_vm11 }
 0x6a5   :  { %v3088_v23 = vsub.f32 1.0, %v3087_v29  ;;  %v3114_v11 = vsel %vm3113_vm1, %v4166_v58, %v3110_v21 }
 0x6a6   :  { %v3119_v20 = vsel %vm3116_vm2, %v3118_v51, %v3114_v11 }
 0x6a7   :  { %v3089_v60 = vmul.f32 %v4170_v19, %v3088_v23  ;;  %v3125_v46 = vsub.f32 1.0, %v3119_v20  ;;  %v3127_v41 = vmul.f32 %v3119_v20, %v6046_v0 }
 0x6a9   :  { %v3090_v30 = vadd.f32 %v4170_v19, %v3089_v60 }
 0x6ab   :  { %v3094_v62 = vsel %vm3093_vm13, %v4170_v19, %v3090_v30 }
 0x6ac   :  { %v3099_v2 = vsel %vm3096_vm14, %v3098_v35, %v3094_v62 }
 0x6ad   :  { %v3122_v38 = vmul.f32 %v3121_v37, %v3099_v2 }
 0x6af   :  { %v3123_v13 = vadd.f32 %v3122_v38, %v6217_v12 }
 0x6b1   :  { %4171 = vtanh.f32 %v3123_v13 }
 0x6b7   :  { %v4172_v59 = vpop.eup %4171 }
 0x6b8   :  { %v3126_v3 = vmul.f32 %v4172_v59, %v3125_v46 }
 0x6ba   :  { %v3128_v34 = vadd.f32 %v3127_v41, %v3126_v3 }
 0x6bc   :  { %3131 = vrot.lane.b32.xlu1 %v3128_v34, %s4176_s1  ;;  %3858 = vst.msk [vmem:[%s6100_s8 + $0x8] sm:$0xff] %vm1503_vm10, %v3128_v34 }
 0x72e   :  { %v3132_v50 = vpop.permute.xlu1 %3131 }
 0x72f   :  { %3134 = vst.msk [vmem:[%s6099_s7] sm:$0xff] %vm1769_vm3, %v3132_v50 }

</bundles_post_ra>
